<compile_context>
chip_gen: v7x
topology: tpu7x:2x2x1
jax: 0.10.0
libtpu: 0.0.40
codegen_flags: <defaults>
</compile_context>

<pallas_src>
import functools

import jax
import jax.numpy as jnp
from jax.experimental import pallas as pl
from jax.experimental.pallas import tpu as pltpu


# --------------------------------------------------------------------- hardware budget

def _vmem_budget_bytes() -> int:
    """Generation-aware VMEM budget (bytes) used for A residency / streamed tile sizing."""
    cap = None
    try:
        cap = int(pltpu.get_tpu_info().vmem_capacity_bytes)
    except Exception:
        cap = None
    if cap is None:
        kind = ""
        try:
            kind = jax.devices()[0].device_kind.lower()
        except Exception:
            pass
        if "v7" in kind:
            cap = 64 << 20            # v7x: 64 MiB physical per TensorCore
        elif any(t in kind for t in ("v4", "v5", "v6")):
            cap = 128 << 20           # v4 / v5e / v5p / v6e: 128 MiB
        else:
            cap = 64 << 20            # conservative default
    # Leave headroom for double-buffers / compiler scratch:
    #   v7x -> 48 MiB, v5e/v6e -> 96 MiB (matches the review's per-generation targets).
    return (cap * 3) // 4


# --------------------------------------------------------------------------- kernels

def _fused_kernel(x_ref, a_hbm, gw0_ref, gb0_ref, w1p_ref, b1p_ref,
                  lw1_ref, lb1_ref, out_ref, a_vmem, sem):
    """Whole forward with A resident in VMEM (A is read from HBM exactly once).

        z0  = X @ W_g0                               (overlapped with the A DMA)
        h1  = tanh(A @ z0 + b_g0)
        z1  = h1 @ (W_g1 @ W_l0)                     (graph layer 1 folded into linear0)
        h3  = tanh(A @ z1 + (b_g1 @ W_l0 + b_l0))
        out = h3 @ W_l1 + b_l1
    """
    cp = pltpu.make_async_copy(a_hbm, a_vmem, sem)
    cp.start()
    # Tiny [N,F]x[F,H] feature transform overlaps with the dominant A DMA.
    z0 = jnp.dot(x_ref[...], gw0_ref[...], preferred_element_type=jnp.float32)
    cp.wait()

    h1 = jnp.tanh(
        jnp.dot(a_vmem[...], z0, preferred_element_type=jnp.float32) + gb0_ref[...])
    z1 = jnp.dot(h1, w1p_ref[...], preferred_element_type=jnp.float32)
    h3 = jnp.tanh(
        jnp.dot(a_vmem[...], z1, preferred_element_type=jnp.float32) + b1p_ref[...])
    out_ref[...] = (
        jnp.dot(h3, lw1_ref[...], preferred_element_type=jnp.float32) + lb1_ref[...]
    ).astype(out_ref.dtype)


def _propagate_kernel(a_ref, z_ref, wpre_ref, b_ref, wpost_ref, bpost_ref,
                      out_ref, acc_ref, *, tk):
    """Streamed GCN propagation with fused pre/post heads:

        out[rows_i] = tanh((sum_k A[rows_i, cols_k] @ Z[cols_k]) @ W_pre + b) @ W_post + b_post

    Grid = (row blocks i, reduction blocks k).  Only A tiles stream from HBM (f32,
    no wrapper-side cast); Z, biases and the tiny weights stay VMEM-resident.
    """
    k = pl.program_id(1)

    @pl.when(k == 0)
    def _init():
        acc_ref[...] = jnp.zeros_like(acc_ref)

    start = pl.multiple_of(k * tk, tk)
    z_blk = z_ref[pl.ds(start, tk), :]                       # (tk, Zin), already in VMEM
    acc_ref[...] += jnp.dot(a_ref[...], z_blk,               # (tm, tk) @ (tk, Zin) -> f32
                            preferred_element_type=jnp.float32)

    @pl.when(k == pl.num_programs(1) - 1)
    def _finalize():
        h = jnp.tanh(
            jnp.dot(acc_ref[...], wpre_ref[...], preferred_element_type=jnp.float32)
            + b_ref[...])
        out_ref[...] = (
            jnp.dot(h, wpost_ref[...], preferred_element_type=jnp.float32)
            + bpost_ref[...]).astype(out_ref.dtype)


# --------------------------------------------------------------------------- wrappers

def _fused_forward(x, a, gw0, gb0, w1p, b1p, lw1, lb1, vmem_limit):
    n = a.shape[0]
    f = x.shape[1]
    h = gw0.shape[1]
    o = lw1.shape[1]
    vmem = pl.BlockSpec(memory_space=pltpu.MemorySpace.VMEM)
    bytes_accessed = (n * n + n * f + n * o) * 4 + 4 * (gw0.size + w1p.size + lw1.size + 3 * h + o)
    return pl.pallas_call(
        _fused_kernel,
        out_shape=jax.ShapeDtypeStruct((n, o), jnp.float32),
        in_specs=[vmem,                                   # X
                  pl.BlockSpec(memory_space=pl.ANY),      # A (stays in HBM; manual DMA)
                  vmem, vmem, vmem, vmem, vmem, vmem],    # small weights / biases
        out_specs=vmem,
        scratch_shapes=[pltpu.VMEM((n, n), a.dtype),      # A resident, read once from HBM
                        pltpu.SemaphoreType.DMA],
        compiler_params=pltpu.CompilerParams(vmem_limit_bytes=int(vmem_limit)),
        cost_estimate=pl.CostEstimate(
            flops=int(2 * n * f * h + 4 * n * n * h + 2 * n * h * h + 2 * n * h * o),
            transcendentals=int(2 * n * h),
            bytes_accessed=int(bytes_accessed),
        ),
    )(x, a, gw0, gb0, w1p, b1p, lw1, lb1)


def _gcn_propagate(a, z, wpre, b, wpost, bpost, tm, tk, vmem_limit):
    n = a.shape[0]
    zin = z.shape[1]
    hp = wpre.shape[1]
    ho = wpost.shape[1]
    return pl.pallas_call(
        functools.partial(_propagate_kernel, tk=tk),
        out_shape=jax.ShapeDtypeStruct((n, ho), jnp.float32),
        grid_spec=pltpu.PrefetchScalarGridSpec(
            num_scalar_prefetch=0,
            grid=(n // tm, n // tk),                          # reduction axis last
            in_specs=[
                pl.BlockSpec((tm, tk), lambda i, k: (i, k)),  # A: only streamed operand (f32)
                pl.BlockSpec((n, zin), lambda i, k: (0, 0)),  # Z: fully VMEM-resident
                pl.BlockSpec(wpre.shape, lambda i, k: (0, 0)),
                pl.BlockSpec((1, hp), lambda i, k: (0, 0)),
                pl.BlockSpec(wpost.shape, lambda i, k: (0, 0)),
                pl.BlockSpec((1, ho), lambda i, k: (0, 0)),
            ],
            out_specs=pl.BlockSpec((tm, ho), lambda i, k: (i, 0)),
            scratch_shapes=[pltpu.VMEM((tm, zin), jnp.float32)],
        ),
        compiler_params=pltpu.CompilerParams(
            dimension_semantics=("parallel", "arbitrary"),
            vmem_limit_bytes=int(vmem_limit),
        ),
        cost_estimate=pl.CostEstimate(
            flops=int(2 * n * n * zin + 2 * n * zin * hp + 2 * n * hp * ho),
            transcendentals=int(n * hp),
            bytes_accessed=int(a.size * a.dtype.itemsize + z.size * z.dtype.itemsize
                               + n * ho * 4),
        ),
    )(a, z, wpre, b, wpost, bpost)


def _choose_tiles(n, budget):
    """(tm, tk) for the streamed path, or None if no (8,128)-legal tiling exists."""
    if n % 8 != 0:
        return None                      # ragged N: handled by the fused path only
    # Reduction tile: whole rows for moderate N (collapses the reduction grid axis,
    # removing per-k accumulator RMW and step overhead); otherwise the largest
    # 128-multiple divisor <= 4096.
    if n <= 4096 or n % 128 != 0:
        tk = n
    else:
        tk = n
        for cand in (4096, 2048, 1024, 512, 256, 128):
            if n % cand == 0:
                tk = cand
                break
    # Row tile: large enough to amortize the ~0.35us per-step overhead, but keep
    # >= 2 row blocks so the "parallel" axis can shard across v7x's two TensorCores.
    tm = n if n <= 8 else 8
    for cand in (1024, 512, 256, 128, 64, 32, 16, 8):
        if cand <= n // 2 and n % cand == 0:
            tm = cand
            break
    # Keep the double-buffered f32 A tile within ~half the VMEM budget.
    while tm > 8 and 2 * tm * tk * 4 > budget // 2:
        tm //= 2
    if n % tm != 0 or n % tk != 0:
        return None
    return tm, tk


@functools.partial(jax.jit, static_argnames=("path",))
def multiclass_node_classification_forward(node_feat, adjacency, params, *, path="auto"):
    """node_feat: [N, num_inputs] f32, adjacency: [N, N] f32 -> scores [N, num_outputs] f32.

    path: "auto" (default), "fused" (A VMEM-resident, one HBM pass over A) or
    "streamed" (row x reduction grid, two HBM passes over A).
    """
    if path not in ("auto", "fused", "streamed"):
        raise ValueError(f"unknown path: {path!r}")

    n = adjacency.shape[0]
    budget = _vmem_budget_bytes()
    tiles = _choose_tiles(n, budget)
    # Fused needs the f32 A scratch plus a few MiB for small operands / headroom.
    fused_fits = (n * n * 4 + (4 << 20)) <= budget

    if path == "fused" or (path == "auto" and (fused_fits or tiles is None)):
        use_fused = True
    elif path == "streamed" and tiles is None:
        raise ValueError("streamed path requires N % 8 == 0; use path='fused'")
    else:
        use_fused = False

    h = params["gw0"].shape[1]
    # Fold graph layer 1 into linear0 (no tanh between them); exact up to f32 rounding.
    w1p = jnp.dot(params["gw1"], params["lw0"], preferred_element_type=jnp.float32)
    b1p = (jnp.dot(params["gb1"], params["lw0"], preferred_element_type=jnp.float32)
           + params["lb0"])

    x = node_feat.astype(jnp.float32)
    a = adjacency.astype(jnp.float32)   # no-op for f32 input: no bf16 copy is materialized

    if use_fused:
        return _fused_forward(x, a, params["gw0"], params["gb0"], w1p, b1p,
                              params["lw1"], params["lb1"], budget)

    tm, tk = tiles
    zero_b = jnp.zeros((1, h), jnp.float32)
    eye_h = jnp.eye(h, dtype=jnp.float32)
    # Pass 1: Z1 = tanh(A @ X @ W_g0 + b_g0) @ (W_g1 @ W_l0)   (W_g0 folded into finalize)
    z1 = _gcn_propagate(a, x, params["gw0"], params["gb0"], w1p, zero_b, tm, tk, budget)
    # Pass 2: scores = tanh(A @ Z1 + (b_g1 @ W_l0 + b_l0)) @ W_l1 + b_l1
    return _gcn_propagate(a, z1, eye_h, b1p, params["lw1"], params["lb1"], tm, tk, budget)


# --------------------------------------------------------------------- init / reference

def _xavier_uniform(key, shape, n_in, n_out, dtype=jnp.float32):
    bound = (6.0 / float(n_in + n_out)) ** 0.5
    return jax.random.uniform(key, shape, dtype, minval=-bound, maxval=bound)


def init_params(key, num_inputs, num_internals, num_outputs):
    """Deterministic Xavier-uniform init mirroring MulticlassNodeClassification.initialize."""
    ks = jax.random.split(key, 8)
    return {
        # graph conv layers: W stored (in, out); bias stored (1, out) for broadcasting
        "gw0": _xavier_uniform(ks[0], (num_inputs, num_internals), num_inputs, num_internals),
        "gb0": _xavier_uniform(ks[1], (1, num_internals), num_inputs, num_internals),
        "gw1": _xavier_uniform(ks[2], (num_internals, num_internals), num_internals, num_internals),
        "gb1": _xavier_uniform(ks[3], (1, num_internals), num_internals, num_internals),
        # linear layers: PyTorch stores (out, in); here kept (in, out) == pre-transposed
        "lw0": _xavier_uniform(ks[4], (num_internals, num_internals), num_internals, num_internals),
        "lb0": _xavier_uniform(ks[5], (1, num_internals), num_internals, num_internals),
        "lw1": _xavier_uniform(ks[6], (num_internals, num_outputs), num_internals, num_outputs),
        "lb1": _xavier_uniform(ks[7], (1, num_outputs), num_internals, num_outputs),
    }


def reference_forward(node_feat, adjacency, params):
    """Pure-JAX f32 reference (HIGHEST matmul precision) for correctness checking."""
    dot = functools.partial(jnp.matmul, precision=jax.lax.Precision.HIGHEST)
    h = jnp.tanh(dot(adjacency, dot(node_feat, params["gw0"])) + params["gb0"])
    h = dot(adjacency, dot(h, params["gw1"])) + params["gb1"]      # last graph layer: no tanh
    h = jnp.tanh(dot(h, params["lw0"]) + params["lb0"])
    return dot(h, params["lw1"]) + params["lb1"]


# --------------------------------------------------------------------------- demo

if __name__ == "__main__":
    # Small graph consistent with the module's forward:
    #   num_graph_layers = 2, num_inputs = 32, num_internals = 32, num_outputs = 8
    N = 512
    num_inputs = 32
    num_internals = 32
    num_outputs = 8

    key = jax.random.PRNGKey(0)
    k_feat, k_adj, k_param = jax.random.split(key, 3)

    node_feat = jax.random.normal(k_feat, (N, num_inputs), dtype=jnp.float32)

    # symmetric-ish adjacency with self loops, row-normalized
    adj_raw = (jax.random.uniform(k_adj, (N, N)) < 0.05).astype(jnp.float32)
    adj = jnp.maximum(adj_raw, adj_raw.T) + jnp.eye(N, dtype=jnp.float32)
    adjacency = adj / jnp.sum(adj, axis=1, keepdims=True)

    params = init_params(k_param, num_inputs, num_internals, num_outputs)
    ref = reference_forward(node_feat, adjacency, params)

    # Fused path (A DMA'd into VMEM once; auto-selected at this size).
    scores_fused = jax.block_until_ready(
        multiclass_node_classification_forward(node_feat, adjacency, params, path="fused"))
    # Streamed fallback path (row x reduction grid over A tiles) exercised explicitly.
    scores_streamed = jax.block_until_ready(
        multiclass_node_classification_forward(node_feat, adjacency, params, path="streamed"))

    for name, scores in (("fused", scores_fused), ("streamed", scores_streamed)):
        assert scores.shape == (N, num_outputs), (name, scores.shape)
        max_err = float(jnp.max(jnp.abs(scores - ref)))
        assert jnp.allclose(scores, ref, atol=2e-2, rtol=2e-2), (
            f"{name} path mismatch vs reference, max abs err = {max_err}")

    print("KERNEL_OK")
</pallas_src>

<mosaic_0001>
module attributes {stable_mosaic.version = 11 : i64} {
  func.func @_fused_kernel(%arg0: memref<512x32xf32, #tpu.memory_space<vmem>>, %arg1: memref<512x512xf32, #tpu.memory_space<any>>, %arg2: memref<32x32xf32, #tpu.memory_space<vmem>>, %arg3: memref<1x32xf32, #tpu.memory_space<vmem>>, %arg4: memref<32x32xf32, #tpu.memory_space<vmem>>, %arg5: memref<1x32xf32, #tpu.memory_space<vmem>>, %arg6: memref<32x8xf32, #tpu.memory_space<vmem>>, %arg7: memref<1x8xf32, #tpu.memory_space<vmem>>, %arg8: memref<512x8xf32, #tpu.memory_space<vmem>>, %arg9: memref<512x512xf32, #tpu.memory_space<vmem>>, %arg10: memref<!tpu.dma_semaphore, #tpu.memory_space<semaphore_mem>>) attributes {dimension_semantics = [], scalar_prefetch = 0 : i64, scratch_operands = 2 : i64, tpu.core_type = #tpu.core_type<tc>} {
    tpu.enqueue_dma source(%arg1 : memref<512x512xf32, #tpu.memory_space<any>>) target(%arg9 : memref<512x512xf32, #tpu.memory_space<vmem>>) target_semaphore(%arg10 : memref<!tpu.dma_semaphore, #tpu.memory_space<semaphore_mem>>)
    %c0 = arith.constant 0 : index
    %c0_0 = arith.constant 0 : index
    %0 = vector.load %arg0[%c0, %c0_0] : memref<512x32xf32, #tpu.memory_space<vmem>>, vector<512x32xf32>
    %c0_1 = arith.constant 0 : index
    %c0_2 = arith.constant 0 : index
    %1 = vector.load %arg2[%c0_1, %c0_2] : memref<32x32xf32, #tpu.memory_space<vmem>>, vector<32x32xf32>
    %cst = arith.constant dense<0.000000e+00> : vector<512x32xf32>
    %2 = tpu.matmul %0, %1, %cst {dimension_numbers = #tpu.dot_dimension_numbers<[1], [0], [0], [1], [0, 0, 1, 1], [], []>} : vector<512x32xf32>, vector<32x32xf32>, vector<512x32xf32> -> vector<512x32xf32>
    tpu.wait_dma2 semaphore(%arg10 : memref<!tpu.dma_semaphore, #tpu.memory_space<semaphore_mem>>) src(%arg1 : memref<512x512xf32, #tpu.memory_space<any>>) dst(%arg9 : memref<512x512xf32, #tpu.memory_space<vmem>>)
    %c0_3 = arith.constant 0 : index
    %c0_4 = arith.constant 0 : index
    %3 = vector.load %arg9[%c0_3, %c0_4] : memref<512x512xf32, #tpu.memory_space<vmem>>, vector<512x512xf32>
    %cst_5 = arith.constant dense<0.000000e+00> : vector<512x32xf32>
    %4 = tpu.matmul %3, %2, %cst_5 {dimension_numbers = #tpu.dot_dimension_numbers<[1], [0], [0], [1], [0, 0, 1, 1], [], []>} : vector<512x512xf32>, vector<512x32xf32>, vector<512x32xf32> -> vector<512x32xf32>
    %c0_6 = arith.constant 0 : index
    %c0_7 = arith.constant 0 : index
    %5 = vector.load %arg3[%c0_6, %c0_7] : memref<1x32xf32, #tpu.memory_space<vmem>>, vector<1x32xf32>
    %6 = vector.broadcast %5 : vector<1x32xf32> to vector<512x32xf32>
    %7 = arith.addf %4, %6 : vector<512x32xf32>
    %8 = math.tanh %7 : vector<512x32xf32>
    %c0_8 = arith.constant 0 : index
    %c0_9 = arith.constant 0 : index
    %9 = vector.load %arg4[%c0_8, %c0_9] : memref<32x32xf32, #tpu.memory_space<vmem>>, vector<32x32xf32>
    %cst_10 = arith.constant dense<0.000000e+00> : vector<512x32xf32>
    %10 = tpu.matmul %8, %9, %cst_10 {dimension_numbers = #tpu.dot_dimension_numbers<[1], [0], [0], [1], [0, 0, 1, 1], [], []>} : vector<512x32xf32>, vector<32x32xf32>, vector<512x32xf32> -> vector<512x32xf32>
    %c0_11 = arith.constant 0 : index
    %c0_12 = arith.constant 0 : index
    %11 = vector.load %arg9[%c0_11, %c0_12] : memref<512x512xf32, #tpu.memory_space<vmem>>, vector<512x512xf32>
    %cst_13 = arith.constant dense<0.000000e+00> : vector<512x32xf32>
    %12 = tpu.matmul %11, %10, %cst_13 {dimension_numbers = #tpu.dot_dimension_numbers<[1], [0], [0], [1], [0, 0, 1, 1], [], []>} : vector<512x512xf32>, vector<512x32xf32>, vector<512x32xf32> -> vector<512x32xf32>
    %c0_14 = arith.constant 0 : index
    %c0_15 = arith.constant 0 : index
    %13 = vector.load %arg5[%c0_14, %c0_15] : memref<1x32xf32, #tpu.memory_space<vmem>>, vector<1x32xf32>
    %14 = vector.broadcast %13 : vector<1x32xf32> to vector<512x32xf32>
    %15 = arith.addf %12, %14 : vector<512x32xf32>
    %16 = math.tanh %15 : vector<512x32xf32>
    %c0_16 = arith.constant 0 : index
    %c0_17 = arith.constant 0 : index
    %17 = vector.load %arg6[%c0_16, %c0_17] : memref<32x8xf32, #tpu.memory_space<vmem>>, vector<32x8xf32>
    %cst_18 = arith.constant dense<0.000000e+00> : vector<512x8xf32>
    %18 = tpu.matmul %16, %17, %cst_18 {dimension_numbers = #tpu.dot_dimension_numbers<[1], [0], [0], [1], [0, 0, 1, 1], [], []>} : vector<512x32xf32>, vector<32x8xf32>, vector<512x8xf32> -> vector<512x8xf32>
    %c0_19 = arith.constant 0 : index
    %c0_20 = arith.constant 0 : index
    %19 = vector.load %arg7[%c0_19, %c0_20] : memref<1x8xf32, #tpu.memory_space<vmem>>, vector<1x8xf32>
    %20 = vector.broadcast %19 : vector<1x8xf32> to vector<512x8xf32>
    %21 = arith.addf %18, %20 : vector<512x8xf32>
    %c0_21 = arith.constant 0 : index
    %c0_22 = arith.constant 0 : index
    %22 = vector.load %arg8[%c0_21, %c0_22] : memref<512x8xf32, #tpu.memory_space<vmem>>, vector<512x8xf32>
    tpu.vector_store %arg8[%c0_21, %c0_22], %21 {strides = array<i32>} : memref<512x8xf32, #tpu.memory_space<vmem>>, vector<512x8xf32>,
    return
  }
}

</mosaic_0001>

<bundles_post_ra>
// kernel: multiclass_node_classification_forward.1
= control target key start
LH: loop header
LB: loop body
LE: loop exit
PB: predicated region body
PF: predicated region fallthrough
CT: control target
= control target key end

     0   :  { %vm106_vm0 = vcmask 261120   ;;  %s5724_s25 = smov [#allocation2]   ;;  %s6874_s2 = inlined_call_operand.vmem [shape: f32[32,32], index: 2, kind: input, shape index: {}]   ;;  %s6875_s0 = inlined_call_operand.vmem [shape: f32[512,32], index: 0, kind: input, shape index: {}]   ;;  %s6876_s1 = inlined_call_operand.hbm [shape: f32[512,512], index: 1, kind: input, shape index: {}]   ;;  %s6877_s3 = inlined_call_operand.vmem [shape: f32[1,32], index: 3, kind: input, shape index: {}]   ;;  %s6878_s4 = inlined_call_operand.vmem [shape: f32[32,32], index: 4, kind: input, shape index: {}]   ;;  %s6879_s5 = inlined_call_operand.vmem [shape: f32[1,32], index: 5, kind: input, shape index: {}]   ;;  %s6880_s6 = inlined_call_operand.vmem [shape: f32[32,8], index: 6, kind: input, shape index: {}]   ;;  %s6881_s7 = inlined_call_operand.vmem [shape: f32[1,8], index: 7, kind: input, shape index: {}]   ;;  %s6882_s8 = inlined_call_operand.vmem [shape: f32[512,8], index: 8, kind: output, shape index: {}]  }
   0x1   :  { %v102_v0 = vld [vmem:[%s6874_s2] sm:$0xff]  ;;  %v103_v1 = vld [vmem:[%s6874_s2 + $0x8] sm:$0xff]  ;;  %v104_v2 = vld [vmem:[%s6874_s2 + $0x10] sm:$0xff]  ;;  %s34_s26 = sshll.u32 %s5724_s25, 4  ;;  %s5700_s29 = scalar_lea.hbm %s6876_s1, 32768  ;;  %s35_s26 = int_to_ptr.vmem [resolvable:$true] %s34_s26 }
   0x2   :  { %v4582_v3 = vpack.c.bf16 %v103_v1, %v102_v0  ;;  %v105_v4 = vld [vmem:[%s6874_s2 + $0x18] sm:$0xff]  ;;  %v38_v5 = vld [vmem:[%s6875_s0] sm:$0xff]  ;;  %v39_v8 = vld [vmem:[%s6875_s0 + $0x8] sm:$0xff]  ;;  %p5701_p0 = scmp.ne.s32.totalorder %s6876_s1, %s5700_s29  ;;  %p5704_p1 = scmp.lt.u32.totalorder %s5700_s29, %s6876_s1 }
   0x3   :  { %v70_v6 = vld [vmem:[%s6875_s0 + $0x100] sm:$0xff]  ;;  %v4586_v7 = vpack.c.bf16 %v105_v4, %v104_v2  ;;  %4278 = vmatprep.mubr.msk.f32.mxu0 %vm106_vm0, %v38_v5  ;;  %v71_v9 = vld [vmem:[%s6875_s0 + $0x108] sm:$0xff]  ;;  %v40_v10 = vld [vmem:[%s6875_s0 + $0x10] sm:$0xff] }
   0x4   :  { %4326 = vmatprep.mubr.msk.f32.mxu1 %vm106_vm0, %v70_v6  ;;  %4583 = vmatprep.subr.bf16.mxu0 %v4582_v3  ;;  %v72_v11 = vld [vmem:[%s6875_s0 + $0x110] sm:$0xff]  ;;  %v41_v12 = vld [vmem:[%s6875_s0 + $0x18] sm:$0xff]  ;;  %v42_v14 = vld [vmem:[%s6875_s0 + $0x20] sm:$0xff]  ;;  %p5706_p2 = pnand %p5704_p1, %p5701_p0 }
   0x5   :  { %4798 = vmatprep.subr.bf16.mxu1 %v4582_v3  ;;  %4585 = vmatpush3.bf16.msra.mxu0 %v4582_v3  ;;  %v73_v13 = vld [vmem:[%s6875_s0 + $0x118] sm:$0xff]  ;;  %v74_v15 = vld [vmem:[%s6875_s0 + $0x120] sm:$0xff]  ;;  %v43_v16 = vld [vmem:[%s6875_s0 + $0x28] sm:$0xff] }
   0x6   :  { %4800 = vmatpush3.bf16.msra.mxu1 %v4582_v3  ;;  %4587 = vmatprep.subr.bf16.mxu0 %v4586_v7  ;;  %v75_v17 = vld [vmem:[%s6875_s0 + $0x128] sm:$0xff]  ;;  %v44_v18 = vld [vmem:[%s6875_s0 + $0x30] sm:$0xff]  ;;  %v45_v20 = vld [vmem:[%s6875_s0 + $0x38] sm:$0xff] }
   0x7   :  { %4799 = vmatprep.subr.bf16.mxu1 %v4586_v7  ;;  %v76_v19 = vld [vmem:[%s6875_s0 + $0x130] sm:$0xff]  ;;  %v77_v21 = vld [vmem:[%s6875_s0 + $0x138] sm:$0xff]  ;;  %v46_v22 = vld [vmem:[%s6875_s0 + $0x40] sm:$0xff] }
   0x8   :  { %v78_v23 = vld [vmem:[%s6875_s0 + $0x140] sm:$0xff]  ;;  %v47_v24 = vld [vmem:[%s6875_s0 + $0x48] sm:$0xff]  ;;  %v48_v26 = vld [vmem:[%s6875_s0 + $0x50] sm:$0xff] }
   0x9   :  { %4589 = vmatpush3.bf16.msra.mxu0 %v4586_v7  ;;  %v79_v25 = vld [vmem:[%s6875_s0 + $0x148] sm:$0xff]  ;;  %v80_v27 = vld [vmem:[%s6875_s0 + $0x150] sm:$0xff]  ;;  %v49_v28 = vld [vmem:[%s6875_s0 + $0x58] sm:$0xff] }
   0xa   :  { %4801 = vmatpush3.bf16.msra.mxu1 %v4586_v7  ;;  %v81_v29 = vld [vmem:[%s6875_s0 + $0x158] sm:$0xff]  ;;  %v50_v30 = vld [vmem:[%s6875_s0 + $0x60] sm:$0xff]  ;;  %v51_v32 = vld [vmem:[%s6875_s0 + $0x68] sm:$0xff] }
   0xb   :  { %v82_v31 = vld [vmem:[%s6875_s0 + $0x160] sm:$0xff]  ;;  %v83_v33 = vld [vmem:[%s6875_s0 + $0x168] sm:$0xff]  ;;  %v52_v34 = vld [vmem:[%s6875_s0 + $0x70] sm:$0xff] }
   0xc   :  { %4279 = vmatmul.mubr.msk.f32.vlgmr.msra.gmra.mrb[0].mxu0 %vm106_vm0, %v39_v8  ;;  %v84_v35 = vld [vmem:[%s6875_s0 + $0x170] sm:$0xff]  ;;  %v53_v36 = vld [vmem:[%s6875_s0 + $0x78] sm:$0xff]  ;;  %v54_v38 = vld [vmem:[%s6875_s0 + $0x80] sm:$0xff] }
   0xd   :  { %4327 = vmatmul.mubr.msk.f32.vlgmr.msra.gmra.mrb[0].mxu1 %vm106_vm0, %v71_v9  ;;  %4281 = vmatprep.mubr.msk.f32.mxu0 %vm106_vm0, %v40_v10  ;;  %v85_v37 = vld [vmem:[%s6875_s0 + $0x178] sm:$0xff]  ;;  %v86_v39 = vld [vmem:[%s6875_s0 + $0x180] sm:$0xff]  ;;  %v55_v40 = vld [vmem:[%s6875_s0 + $0x88] sm:$0xff] }
   0xe   :  { %4329 = vmatprep.mubr.msk.f32.mxu1 %vm106_vm0, %v72_v11  ;;  %v87_v41 = vld [vmem:[%s6875_s0 + $0x188] sm:$0xff]  ;;  %v56_v42 = vld [vmem:[%s6875_s0 + $0x90] sm:$0xff]  ;;  %v57_v44 = vld [vmem:[%s6875_s0 + $0x98] sm:$0xff] }
   0xf   :  { %v88_v43 = vld [vmem:[%s6875_s0 + $0x190] sm:$0xff]  ;;  %v89_v45 = vld [vmem:[%s6875_s0 + $0x198] sm:$0xff]  ;;  %v58_v46 = vld [vmem:[%s6875_s0 + $0xa0] sm:$0xff] }
  0x10   :  { %4282 = vmatmul.mubr.msk.f32.gmra.mrb[2].mxu0 %vm106_vm0, %v41_v12  ;;  %v90_v47 = vld [vmem:[%s6875_s0 + $0x1a0] sm:$0xff]  ;;  %v59_v48 = vld [vmem:[%s6875_s0 + $0xa8] sm:$0xff]  ;;  %v60_v50 = vld [vmem:[%s6875_s0 + $0xb0] sm:$0xff] }
  0x11   :  { %4330 = vmatmul.mubr.msk.f32.gmra.mrb[2].mxu1 %vm106_vm0, %v73_v13  ;;  %4284 = vmatprep.mubr.msk.f32.mxu0 %vm106_vm0, %v42_v14  ;;  %v91_v49 = vld [vmem:[%s6875_s0 + $0x1a8] sm:$0xff]  ;;  %v92_v51 = vld [vmem:[%s6875_s0 + $0x1b0] sm:$0xff]  ;;  %v61_v52 = vld [vmem:[%s6875_s0 + $0xb8] sm:$0xff] }
  0x12   :  { %4332 = vmatprep.mubr.msk.f32.mxu1 %vm106_vm0, %v74_v15  ;;  %v93_v53 = vld [vmem:[%s6875_s0 + $0x1b8] sm:$0xff]  ;;  %v62_v54 = vld [vmem:[%s6875_s0 + $0xc0] sm:$0xff]  ;;  %v63_v56 = vld [vmem:[%s6875_s0 + $0xc8] sm:$0xff] }
  0x13   :  { %v94_v55 = vld [vmem:[%s6875_s0 + $0x1c0] sm:$0xff]  ;;  %v95_v57 = vld [vmem:[%s6875_s0 + $0x1c8] sm:$0xff]  ;;  %v64_v58 = vld [vmem:[%s6875_s0 + $0xd0] sm:$0xff] }
  0x14   :  { %4285 = vmatmul.mubr.msk.f32.gmra.mrb[4].mxu0 %vm106_vm0, %v43_v16  ;;  %v96_v59 = vld [vmem:[%s6875_s0 + $0x1d0] sm:$0xff]  ;;  %v65_v60 = vld [vmem:[%s6875_s0 + $0xd8] sm:$0xff]  ;;  %v66_v62 = vld [vmem:[%s6875_s0 + $0xe0] sm:$0xff] }
  0x15   :  { %4333 = vmatmul.mubr.msk.f32.gmra.mrb[4].mxu1 %vm106_vm0, %v75_v17  ;;  %4287 = vmatprep.mubr.msk.f32.mxu0 %vm106_vm0, %v44_v18  ;;  %v97_v61 = vld [vmem:[%s6875_s0 + $0x1d8] sm:$0xff]  ;;  %v98_v63 = vld [vmem:[%s6875_s0 + $0x1e0] sm:$0xff]  ;;  %v67_v0 = vld [vmem:[%s6875_s0 + $0xe8] sm:$0xff] }
  0x16   :  { %4335 = vmatprep.mubr.msk.f32.mxu1 %vm106_vm0, %v76_v19  ;;  %v99_v1 = vld [vmem:[%s6875_s0 + $0x1e8] sm:$0xff]  ;;  %v68_v2 = vld [vmem:[%s6875_s0 + $0xf0] sm:$0xff]  ;;  %v69_v4 = vld [vmem:[%s6875_s0 + $0xf8] sm:$0xff] }
  0x17   :  { %v100_v3 = vld [vmem:[%s6875_s0 + $0x1f0] sm:$0xff]  ;;  %v101_v5 = vld [vmem:[%s6875_s0 + $0x1f8] sm:$0xff] }
  0x18   :  { %4288 = vmatmul.mubr.msk.f32.gmra.mrb[6].mxu0 %vm106_vm0, %v45_v20 }
  0x19   :  { %4336 = vmatmul.mubr.msk.f32.gmra.mrb[6].mxu1 %vm106_vm0, %v77_v21  ;;  %4290 = vmatprep.mubr.msk.f32.mxu0 %vm106_vm0, %v46_v22 }
  0x1a   :  { %4338 = vmatprep.mubr.msk.f32.mxu1 %vm106_vm0, %v78_v23 }
  0x1c   :  { %4291 = vmatmul.mubr.msk.f32.gmra.mrb[8].mxu0 %vm106_vm0, %v47_v24 }
  0x1d   :  { %4339 = vmatmul.mubr.msk.f32.gmra.mrb[8].mxu1 %vm106_vm0, %v79_v25  ;;  %4293 = vmatprep.mubr.msk.f32.mxu0 %vm106_vm0, %v48_v26 }
  0x1e   :  { %4341 = vmatprep.mubr.msk.f32.mxu1 %vm106_vm0, %v80_v27 }
  0x20   :  { %4294 = vmatmul.mubr.msk.f32.gmra.mrb[10].mxu0 %vm106_vm0, %v49_v28 }
  0x21   :  { %4342 = vmatmul.mubr.msk.f32.gmra.mrb[10].mxu1 %vm106_vm0, %v81_v29  ;;  %4296 = vmatprep.mubr.msk.f32.mxu0 %vm106_vm0, %v50_v30 }
  0x22   :  { %4344 = vmatprep.mubr.msk.f32.mxu1 %vm106_vm0, %v82_v31 }
  0x24   :  { %4297 = vmatmul.mubr.msk.f32.gmra.mrb[12].mxu0 %vm106_vm0, %v51_v32 }
  0x25   :  { %4345 = vmatmul.mubr.msk.f32.gmra.mrb[12].mxu1 %vm106_vm0, %v83_v33  ;;  %4299 = vmatprep.mubr.msk.f32.mxu0 %vm106_vm0, %v52_v34 }
  0x26   :  { %4347 = vmatprep.mubr.msk.f32.mxu1 %vm106_vm0, %v84_v35 }
  0x28   :  { %4300 = vmatmul.mubr.msk.f32.gmra.mrb[14].mxu0 %vm106_vm0, %v53_v36 }
  0x29   :  { %4348 = vmatmul.mubr.msk.f32.gmra.mrb[14].mxu1 %vm106_vm0, %v85_v37  ;;  %4302 = vmatprep.mubr.msk.f32.mxu0 %vm106_vm0, %v54_v38 }
  0x2a   :  { %4350 = vmatprep.mubr.msk.f32.mxu1 %vm106_vm0, %v86_v39 }
  0x2c   :  { %4303 = vmatmul.mubr.msk.f32.gmra.mrb[16].mxu0 %vm106_vm0, %v55_v40 }
  0x2d   :  { %4351 = vmatmul.mubr.msk.f32.gmra.mrb[16].mxu1 %vm106_vm0, %v87_v41  ;;  %4305 = vmatprep.mubr.msk.f32.mxu0 %vm106_vm0, %v56_v42 }
  0x2e   :  { %4353 = vmatprep.mubr.msk.f32.mxu1 %vm106_vm0, %v88_v43 }
  0x30   :  { %4306 = vmatmul.mubr.msk.f32.gmra.mrb[18].mxu0 %vm106_vm0, %v57_v44 }
  0x31   :  { %4354 = vmatmul.mubr.msk.f32.gmra.mrb[18].mxu1 %vm106_vm0, %v89_v45  ;;  %4308 = vmatprep.mubr.msk.f32.mxu0 %vm106_vm0, %v58_v46 }
  0x32   :  { %4356 = vmatprep.mubr.msk.f32.mxu1 %vm106_vm0, %v90_v47 }
  0x34   :  { %4309 = vmatmul.mubr.msk.f32.gmra.mrb[20].mxu0 %vm106_vm0, %v59_v48 }
  0x35   :  { %4357 = vmatmul.mubr.msk.f32.gmra.mrb[20].mxu1 %vm106_vm0, %v91_v49  ;;  %4311 = vmatprep.mubr.msk.f32.mxu0 %vm106_vm0, %v60_v50 }
  0x36   :  { %4359 = vmatprep.mubr.msk.f32.mxu1 %vm106_vm0, %v92_v51 }
  0x38   :  { %4312 = vmatmul.mubr.msk.f32.gmra.mrb[22].mxu0 %vm106_vm0, %v61_v52 }
  0x39   :  { %4360 = vmatmul.mubr.msk.f32.gmra.mrb[22].mxu1 %vm106_vm0, %v93_v53  ;;  %4314 = vmatprep.mubr.msk.f32.mxu0 %vm106_vm0, %v62_v54 }
  0x3a   :  { %4362 = vmatprep.mubr.msk.f32.mxu1 %vm106_vm0, %v94_v55 }
  0x3c   :  { %4315 = vmatmul.mubr.msk.f32.gmra.mrb[24].mxu0 %vm106_vm0, %v63_v56 }
  0x3d   :  { %4363 = vmatmul.mubr.msk.f32.gmra.mrb[24].mxu1 %vm106_vm0, %v95_v57  ;;  %4317 = vmatprep.mubr.msk.f32.mxu0 %vm106_vm0, %v64_v58 }
  0x3e   :  { %4365 = vmatprep.mubr.msk.f32.mxu1 %vm106_vm0, %v96_v59 }
  0x40   :  { %4318 = vmatmul.mubr.msk.f32.gmra.mrb[26].mxu0 %vm106_vm0, %v65_v60 }
  0x41   :  { %4366 = vmatmul.mubr.msk.f32.gmra.mrb[26].mxu1 %vm106_vm0, %v97_v61  ;;  %4320 = vmatprep.mubr.msk.f32.mxu0 %vm106_vm0, %v66_v62 }
  0x42   :  { %4368 = vmatprep.mubr.msk.f32.mxu1 %vm106_vm0, %v98_v63 }
  0x44   :  { %4321 = vmatmul.mubr.msk.f32.gmra.mrb[28].mxu0 %vm106_vm0, %v67_v0 }
  0x45   :  { %4369 = vmatmul.mubr.msk.f32.gmra.mrb[28].mxu1 %vm106_vm0, %v99_v1  ;;  %4323 = vmatprep.mubr.msk.f32.mxu0 %vm106_vm0, %v68_v2 }
  0x46   :  { %4371 = vmatprep.mubr.msk.f32.mxu1 %vm106_vm0, %v100_v3 }
  0x48   :  { %4324 = vmatmul.mubr.msk.f32.gmra.mrb[30].mxu0 %vm106_vm0, %v69_v4 }
  0x49   :  { %4372 = vmatmul.mubr.msk.f32.gmra.mrb[30].mxu1 %vm106_vm0, %v101_v5 }
  0x4a   :  { %5709 = shalt.err (!%p5706_p2)  }
  0x4b   :  { %s5710_s0 = scalar_lea.vmem %s35_s26, 32768  ;;  %p5715_p4 = scmp.lt.s32.totalorder %s35_s26, %s35_s26 }
  0x4c   :  { %p5711_p3 = scmp.ne.s32.totalorder %s35_s26, %s5710_s0  ;;  %p5716_p5 = scmp.lt.s32.totalorder %s5710_s0, %s5710_s0 }
  0x4e   :  { %p5717_p6 = por %p5716_p5, %p5715_p4 }
  0x50   :  { %p5718_p7 = pnand %p5717_p6, %p5711_p3 }
  0x52   :  { %5721 = shalt.err (!%p5718_p7)  }
  0x53   :  { %37 = dma.hbm_to_vmem [thread:$0]  %s6876_s1, 32768, %s35_s26, [#allocation3] }
  0xdf   :  { %v6051_v6 = vpop.f32.mrb[0].mxu0 }
  0xe0   :  { %v6053_v7 = vpop.f32.mrb[0].mxu1  ;;  %v6055_v8 = vpop.f32.mrb[1].mxu0 }
  0xe1   :  { %v6057_v9 = vpop.f32.mrb[1].mxu1 }
  0xe3   :  { %v6059_v10 = vpop.f32.mrb[2].mxu0 }
  0xe4   :  { %v6061_v11 = vpop.f32.mrb[2].mxu1  ;;  %v6063_v12 = vpop.f32.mrb[3].mxu0 }
  0xe5   :  { %v6065_v13 = vpop.f32.mrb[3].mxu1 }
  0xe7   :  { %v6067_v14 = vpop.f32.mrb[4].mxu0 }
  0xe8   :  { %v6069_v15 = vpop.f32.mrb[4].mxu1  ;;  %v6071_v16 = vpop.f32.mrb[5].mxu0 }
  0xe9   :  { %v6073_v17 = vpop.f32.mrb[5].mxu1 }
  0xeb   :  { %v6075_v18 = vpop.f32.mrb[6].mxu0 }
  0xec   :  { %v6077_v19 = vpop.f32.mrb[6].mxu1  ;;  %v6079_v20 = vpop.f32.mrb[7].mxu0 }
  0xed   :  { %v6081_v21 = vpop.f32.mrb[7].mxu1 }
  0xef   :  { %v6083_v22 = vpop.f32.mrb[8].mxu0 }
  0xf0   :  { %v6085_v23 = vpop.f32.mrb[8].mxu1  ;;  %v6087_v24 = vpop.f32.mrb[9].mxu0 }
  0xf1   :  { %v6089_v25 = vpop.f32.mrb[9].mxu1 }
  0xf3   :  { %v6091_v26 = vpop.f32.mrb[10].mxu0 }
  0xf4   :  { %v6093_v27 = vpop.f32.mrb[10].mxu1  ;;  %v6095_v28 = vpop.f32.mrb[11].mxu0 }
  0xf5   :  { %v6097_v29 = vpop.f32.mrb[11].mxu1 }
  0xf7   :  { %v6099_v30 = vpop.f32.mrb[12].mxu0 }
  0xf8   :  { %v6101_v31 = vpop.f32.mrb[12].mxu1  ;;  %v6103_v32 = vpop.f32.mrb[13].mxu0 }
  0xf9   :  { %v6105_v33 = vpop.f32.mrb[13].mxu1 }
  0xfb   :  { %v6107_v34 = vpop.f32.mrb[14].mxu0 }
  0xfc   :  { %v6109_v35 = vpop.f32.mrb[14].mxu1  ;;  %v435_v36 = vpop.f32.mrb[15].mxu0 }
  0xfd   :  { %v6111_v37 = vpop.f32.mrb[15].mxu1 }
  0xff   :  { %v6113_v38 = vpop.f32.mrb[16].mxu0 }
 0x100   :  { %v6115_v39 = vpop.f32.mrb[16].mxu1  ;;  %v445_v40 = vpop.f32.mrb[17].mxu0 }
 0x101   :  { %v6117_v41 = vpop.f32.mrb[17].mxu1 }
 0x103   :  { %v4307_v42 = vpop.f32.mrb[18].mxu0 }
 0x104   :  { %v6119_v43 = vpop.f32.mrb[18].mxu1  ;;  %v455_v44 = vpop.f32.mrb[19].mxu0 }
 0x105   :  { %v6121_v45 = vpop.f32.mrb[19].mxu1 }
 0x107   :  { %v4310_v46 = vpop.f32.mrb[20].mxu0 }
 0x108   :  { %v6123_v47 = vpop.f32.mrb[20].mxu1  ;;  %v465_v48 = vpop.f32.mrb[21].mxu0 }
 0x109   :  { %v6125_v49 = vpop.f32.mrb[21].mxu1 }
 0x10b   :  { %v4313_v50 = vpop.f32.mrb[22].mxu0 }
 0x10c   :  { %v6127_v51 = vpop.f32.mrb[22].mxu1  ;;  %v475_v52 = vpop.f32.mrb[23].mxu0 }
 0x10d   :  { %v6129_v53 = vpop.f32.mrb[23].mxu1 }
 0x10f   :  { %v4316_v54 = vpop.f32.mrb[24].mxu0 }
 0x110   :  { %v6131_v55 = vpop.f32.mrb[24].mxu1  ;;  %v485_v56 = vpop.f32.mrb[25].mxu0 }
 0x111   :  { %6883 = vst [vmem:[#allocation9_spill] sm:$0xff] %v6131_v55  ;;  %v6133_v57 = vpop.f32.mrb[25].mxu1  ;;  %v4591_v55 = vpack.c.bf16 %v6051_v6, %v6055_v8 }
 0x113   :  { %v4319_v58 = vpop.f32.mrb[26].mxu0 }
 0x114   :  { %v6135_v59 = vpop.f32.mrb[26].mxu1  ;;  %v495_v60 = vpop.f32.mrb[27].mxu0 }
 0x115   :  { %6884 = vst [vmem:[#allocation10_spill] sm:$0xff] %v6135_v59  ;;  %v6137_v61 = vpop.f32.mrb[27].mxu1 }
 0x117   :  { %v4322_v62 = vpop.f32.mrb[28].mxu0 }
 0x118   :  { %v6139_v63 = vpop.f32.mrb[28].mxu1  ;;  %v505_v0 = vpop.f32.mrb[29].mxu0 }
 0x119   :  { %6885 = vst [vmem:[#allocation11_spill] sm:$0xff] %v6139_v63  ;;  %v6141_v1 = vpop.f32.mrb[29].mxu1 }
 0x11b   :  { %v4325_v2 = vpop.f32.mrb[30].mxu0 }
 0x11c   :  { %v6143_v3 = vpop.f32.mrb[30].mxu1  ;;  %v515_v4 = vpop.f32.mrb[31].mxu0 }
 0x11d   :  { %6886 = vst [vmem:[#allocation12_spill] sm:$0xff] %v6143_v3  ;;  %v6145_v5 = vpop.f32.mrb[31].mxu1 }
 0x11e   :  { %6887 = vst [vmem:[#allocation13_spill] sm:$0xff] %v6145_v5 }
 0x11f   :  { %5722 = dma.done.wait [#allocation3], 32768 }
 0x120   :  { %5723 = vsyncadd [#allocation3], 4294934528  ;;  %v5725_v59 = vmov 0.0|0.0   ;;  %v4594_v63 = vpack.c.bf16 %v6059_v10, %v6063_v12  ;;  %v4597_v3 = vpack.c.bf16 %v6067_v14, %v6071_v16  ;;  %v689_v5 = vld [vmem:[#allocation2 + $0x8] sm:$0xff]  ;;  %v4600_v6 = vpack.c.bf16 %v6075_v18, %v6079_v20 }
 0x121   :  { %4590 = vmatprep.subr.bf16.mxu1 %v5725_v59  ;;  %1015 = vmatprep.mubr.f32.mxu1 %v689_v5  ;;  %v4603_v8 = vpack.c.bf16 %v6083_v22, %v6087_v24  ;;  %v4606_v10 = vpack.c.bf16 %v6091_v26, %v6095_v28  ;;  %v4609_v12 = vpack.c.bf16 %v6099_v30, %v6103_v32  ;;  %v688_v32 = vld [vmem:[#allocation2] sm:$0xff]  ;;  %vm3795_vm1 = vcmask 64512  }
 0x122   :  { %4592 = vmatpush1.bf16.msra.mxu1 %v4591_v55  ;;  %v4612_v14 = vpack.c.bf16 %v6107_v34, %v435_v36  ;;  %v4615_v16 = vpack.c.bf16 %v6113_v38, %v445_v40  ;;  %v4618_v18 = vpack.c.bf16 %v4307_v42, %v455_v44  ;;  %v4621_v20 = vpack.c.bf16 %v4310_v46, %v465_v48  ;;  %v693_v36 = vld [vmem:[#allocation2 + $0x28] sm:$0xff]  ;;  %v692_v38 = vld [vmem:[#allocation2 + $0x20] sm:$0xff] }
 0x123   :  { %4593 = vmatprep.subr.bf16.mxu1 %v5725_v59  ;;  %v4624_v22 = vpack.c.bf16 %v4313_v50, %v475_v52  ;;  %v4627_v24 = vpack.c.bf16 %v4316_v54, %v485_v56  ;;  %v4630_v26 = vpack.c.bf16 %v4319_v58, %v495_v60  ;;  %v4633_v28 = vpack.c.bf16 %v4322_v62, %v505_v0  ;;  %v697_v42 = vld [vmem:[#allocation2 + $0x48] sm:$0xff]  ;;  %v696_v44 = vld [vmem:[#allocation2 + $0x40] sm:$0xff] }
 0x124   :  { %v4636_v30 = vpack.c.bf16 %v4325_v2, %v515_v4  ;;  %v4639_v34 = vpack.c.bf16 %v6053_v7, %v6057_v9  ;;  %v4642_v40 = vpack.c.bf16 %v6061_v11, %v6065_v13  ;;  %v4645_v7 = vpack.c.bf16 %v6069_v15, %v6073_v17  ;;  %v701_v9 = vld [vmem:[#allocation2 + $0x68] sm:$0xff]  ;;  %v700_v46 = vld [vmem:[#allocation2 + $0x60] sm:$0xff] }
 0x125   :  { %v4648_v11 = vpack.c.bf16 %v6077_v19, %v6081_v21  ;;  %v705_v13 = vld [vmem:[#allocation2 + $0x88] sm:$0xff]  ;;  %v704_v48 = vld [vmem:[#allocation2 + $0x80] sm:$0xff]  ;;  %v4651_v15 = vpack.c.bf16 %v6085_v23, %v6089_v25  ;;  %v4654_v19 = vpack.c.bf16 %v6093_v27, %v6097_v29  ;;  %v4657_v23 = vpack.c.bf16 %v6101_v31, %v6105_v33 }
 0x126   :  { %4595 = vmatpush1.bf16.msra.mxu1 %v4594_v63  ;;  %v709_v17 = vld [vmem:[#allocation2 + $0xa8] sm:$0xff]  ;;  %v708_v50 = vld [vmem:[#allocation2 + $0xa0] sm:$0xff]  ;;  %v4660_v27 = vpack.c.bf16 %v6109_v35, %v6111_v37  ;;  %v4663_v31 = vpack.c.bf16 %v6115_v39, %v6117_v41  ;;  %v4666_v35 = vpack.c.bf16 %v6119_v43, %v6121_v45  ;;  %v4669_v39 = vpack.c.bf16 %v6123_v47, %v6125_v49 }
 0x127   :  { %4596 = vmatprep.subr.bf16.mxu1 %v5725_v59  ;;  %v713_v21 = vld [vmem:[#allocation2 + $0xc8] sm:$0xff]  ;;  %v712_v52 = vld [vmem:[#allocation2 + $0xc0] sm:$0xff]  ;;  %v4672_v47 = vpack.c.bf16 %v6127_v51, %v6129_v53 }
 0x128   :  { %v717_v25 = vld [vmem:[#allocation2 + $0xe8] sm:$0xff]  ;;  %v716_v54 = vld [vmem:[#allocation2 + $0xe0] sm:$0xff] }
 0x129   :  { %v721_v29 = vld [vmem:[#allocation2 + $0x108] sm:$0xff]  ;;  %v720_v55 = vld [vmem:[#allocation2 + $0x100] sm:$0xff] }
 0x12a   :  { %4598 = vmatpush1.bf16.msra.mxu1 %v4597_v3  ;;  %v725_v33 = vld [vmem:[#allocation2 + $0x128] sm:$0xff]  ;;  %v724_v56 = vld [vmem:[#allocation2 + $0x120] sm:$0xff] }
 0x12b   :  { %4599 = vmatprep.subr.bf16.mxu1 %v5725_v59  ;;  %v729_v37 = vld [vmem:[#allocation2 + $0x148] sm:$0xff]  ;;  %v728_v58 = vld [vmem:[#allocation2 + $0x140] sm:$0xff] }
 0x12c   :  { %v733_v41 = vld [vmem:[#allocation2 + $0x168] sm:$0xff]  ;;  %v732_v60 = vld [vmem:[#allocation2 + $0x160] sm:$0xff] }
 0x12d   :  { %v737_v62 = vld [vmem:[#allocation2 + $0x188] sm:$0xff]  ;;  %v736_v43 = vld [vmem:[#allocation2 + $0x180] sm:$0xff] }
 0x12e   :  { %4601 = vmatpush1.bf16.msra.mxu1 %v4600_v6  ;;  %v741_v45 = vld [vmem:[#allocation2 + $0x1a8] sm:$0xff]  ;;  %v740_v63 = vld [vmem:[#allocation2 + $0x1a0] sm:$0xff] }
 0x12f   :  { %4602 = vmatprep.subr.bf16.mxu1 %v5725_v59  ;;  %v745_v0 = vld [vmem:[#allocation2 + $0x1c8] sm:$0xff]  ;;  %v744_v49 = vld [vmem:[#allocation2 + $0x1c0] sm:$0xff] }
 0x130   :  { %v749_v2 = vld [vmem:[#allocation2 + $0x1e8] sm:$0xff]  ;;  %v748_v3 = vld [vmem:[#allocation2 + $0x1e0] sm:$0xff] }
 0x131   :  { %v753_v4 = vld [vmem:[#allocation2 + $0x208] sm:$0xff]  ;;  %v752_v5 = vld [vmem:[#allocation2 + $0x200] sm:$0xff] }
 0x132   :  { %4604 = vmatpush1.bf16.msra.mxu1 %v4603_v8  ;;  %v757_v6 = vld [vmem:[#allocation2 + $0x228] sm:$0xff]  ;;  %v756_v8 = vld [vmem:[#allocation2 + $0x220] sm:$0xff] }
 0x133   :  { %4605 = vmatprep.subr.bf16.mxu1 %v5725_v59  ;;  %v6888_v51 = vld [vmem:[#allocation9_spill] sm:$0xff] }
 0x134   :  { %v4675_v53 = vpack.c.bf16 %v6888_v51, %v6133_v57  ;;  %v6889_v57 = vld [vmem:[#allocation10_spill] sm:$0xff]  ;;  %v868_v51 = vld [vmem:[#allocation2 + $0x5a0] sm:$0xff] }
 0x136   :  { %4607 = vmatpush1.bf16.msra.mxu1 %v4606_v10  ;;  %v761_v10 = vld [vmem:[#allocation2 + $0x248] sm:$0xff] }
 0x137   :  { %4608 = vmatprep.subr.bf16.mxu1 %v5725_v59 }
 0x13a   :  { %4610 = vmatpush1.bf16.msra.mxu1 %v4609_v12  ;;  %v760_v12 = vld [vmem:[#allocation2 + $0x240] sm:$0xff] }
 0x13b   :  { %4611 = vmatprep.subr.bf16.mxu1 %v5725_v59 }
 0x13e   :  { %4613 = vmatpush1.bf16.msra.mxu1 %v4612_v14  ;;  %v765_v14 = vld [vmem:[#allocation2 + $0x268] sm:$0xff] }
 0x13f   :  { %4614 = vmatprep.subr.bf16.mxu1 %v5725_v59 }
 0x142   :  { %4616 = vmatpush1.bf16.msra.mxu1 %v4615_v16  ;;  %v764_v16 = vld [vmem:[#allocation2 + $0x260] sm:$0xff] }
 0x143   :  { %4617 = vmatprep.subr.bf16.mxu1 %v5725_v59 }
 0x146   :  { %4619 = vmatpush1.bf16.msra.mxu1 %v4618_v18  ;;  %v769_v18 = vld [vmem:[#allocation2 + $0x288] sm:$0xff] }
 0x147   :  { %4620 = vmatprep.subr.bf16.mxu1 %v5725_v59 }
 0x14a   :  { %4622 = vmatpush1.bf16.msra.mxu1 %v4621_v20  ;;  %v768_v20 = vld [vmem:[#allocation2 + $0x280] sm:$0xff] }
 0x14b   :  { %4623 = vmatprep.subr.bf16.mxu1 %v5725_v59 }
 0x14e   :  { %4625 = vmatpush1.bf16.msra.mxu1 %v4624_v22  ;;  %v773_v22 = vld [vmem:[#allocation2 + $0x2a8] sm:$0xff] }
 0x14f   :  { %4626 = vmatprep.subr.bf16.mxu1 %v5725_v59 }
 0x152   :  { %4628 = vmatpush1.bf16.msra.mxu1 %v4627_v24  ;;  %v772_v24 = vld [vmem:[#allocation2 + $0x2a0] sm:$0xff] }
 0x153   :  { %4629 = vmatprep.subr.bf16.mxu1 %v5725_v59 }
 0x156   :  { %4631 = vmatpush1.bf16.msra.mxu1 %v4630_v26  ;;  %v777_v26 = vld [vmem:[#allocation2 + $0x2c8] sm:$0xff] }
 0x157   :  { %4632 = vmatprep.subr.bf16.mxu1 %v5725_v59 }
 0x15a   :  { %4634 = vmatpush1.bf16.msra.mxu1 %v4633_v28  ;;  %v4678_v28 = vpack.c.bf16 %v6889_v57, %v6137_v61  ;;  %v6890_v61 = vld [vmem:[#allocation11_spill] sm:$0xff]  ;;  %v888_v57 = vld [vmem:[#allocation2 + $0x640] sm:$0xff] }
 0x15b   :  { %4635 = vmatprep.subr.bf16.mxu1 %v5725_v59 }
 0x15e   :  { %4637 = vmatpush1.bf16.msra.mxu1 %v4636_v30  ;;  %v776_v30 = vld [vmem:[#allocation2 + $0x2c0] sm:$0xff] }
 0x15f   :  { %4638 = vmatprep.subr.bf16.mxu1 %v5725_v59 }
 0x161   :  { %1016 = vmatmul.mubr.f32.vlgmr.msra.gmra.mrb[32].mxu1 %v688_v32  ;;  %v781_v32 = vld [vmem:[#allocation2 + $0x2e8] sm:$0xff] }
 0x162   :  { %1020 = vmatprep.mubr.f32.mxu1 %v693_v36  ;;  %4640 = vmatpush1.bf16.msra.mxu1 %v4639_v34  ;;  %v780_v34 = vld [vmem:[#allocation2 + $0x2e0] sm:$0xff]  ;;  %v785_v36 = vld [vmem:[#allocation2 + $0x308] sm:$0xff] }
 0x163   :  { %4641 = vmatprep.subr.bf16.mxu1 %v5725_v59 }
 0x165   :  { %1021 = vmatmul.mubr.f32.gmra.mrb[34].mxu1 %v692_v38  ;;  %v784_v38 = vld [vmem:[#allocation2 + $0x300] sm:$0xff] }
 0x166   :  { %1025 = vmatprep.mubr.f32.mxu1 %v697_v42  ;;  %4643 = vmatpush1.bf16.msra.mxu1 %v4642_v40  ;;  %v789_v40 = vld [vmem:[#allocation2 + $0x328] sm:$0xff]  ;;  %v788_v42 = vld [vmem:[#allocation2 + $0x320] sm:$0xff] }
 0x167   :  { %4644 = vmatprep.subr.bf16.mxu1 %v5725_v59 }
 0x169   :  { %1026 = vmatmul.mubr.f32.gmra.mrb[36].mxu1 %v696_v44  ;;  %v793_v44 = vld [vmem:[#allocation2 + $0x348] sm:$0xff] }
 0x16a   :  { %1030 = vmatprep.mubr.f32.mxu1 %v701_v9  ;;  %4646 = vmatpush1.bf16.msra.mxu1 %v4645_v7  ;;  %v4681_v7 = vpack.c.bf16 %v6890_v61, %v6141_v1  ;;  %v792_v9 = vld [vmem:[#allocation2 + $0x340] sm:$0xff] }
 0x16b   :  { %4647 = vmatprep.subr.bf16.mxu1 %v5725_v59  ;;  %v6891_v1 = vld [vmem:[#allocation13_spill] sm:$0xff] }
 0x16c   :  { %v908_v61 = vld [vmem:[#allocation2 + $0x6e0] sm:$0xff] }
 0x16d   :  { %1031 = vmatmul.mubr.f32.gmra.mrb[38].mxu1 %v700_v46  ;;  %v797_v46 = vld [vmem:[#allocation2 + $0x368] sm:$0xff] }
 0x16e   :  { %1035 = vmatprep.mubr.f32.mxu1 %v705_v13  ;;  %4649 = vmatpush1.bf16.msra.mxu1 %v4648_v11  ;;  %v796_v11 = vld [vmem:[#allocation2 + $0x360] sm:$0xff]  ;;  %v801_v13 = vld [vmem:[#allocation2 + $0x388] sm:$0xff] }
 0x16f   :  { %4650 = vmatprep.subr.bf16.mxu1 %v5725_v59 }
 0x171   :  { %1036 = vmatmul.mubr.f32.gmra.mrb[40].mxu1 %v704_v48  ;;  %v800_v48 = vld [vmem:[#allocation2 + $0x380] sm:$0xff] }
 0x172   :  { %1040 = vmatprep.mubr.f32.mxu1 %v709_v17  ;;  %4652 = vmatpush1.bf16.msra.mxu1 %v4651_v15  ;;  %v805_v15 = vld [vmem:[#allocation2 + $0x3a8] sm:$0xff]  ;;  %v804_v17 = vld [vmem:[#allocation2 + $0x3a0] sm:$0xff] }
 0x173   :  { %4653 = vmatprep.subr.bf16.mxu1 %v5725_v59 }
 0x175   :  { %1041 = vmatmul.mubr.f32.gmra.mrb[42].mxu1 %v708_v50  ;;  %v809_v50 = vld [vmem:[#allocation2 + $0x3c8] sm:$0xff] }
 0x176   :  { %1045 = vmatprep.mubr.f32.mxu1 %v713_v21  ;;  %4655 = vmatpush1.bf16.msra.mxu1 %v4654_v19  ;;  %v6892_v19 = vld [vmem:[#allocation12_spill] sm:$0xff] }
 0x177   :  { %4656 = vmatprep.subr.bf16.mxu1 %v5725_v59  ;;  %v4684_v21 = vpack.c.bf16 %v6892_v19, %v6891_v1  ;;  %v928_v1 = vld [vmem:[#allocation2 + $0x780] sm:$0xff]  ;;  %v933_v19 = vld [vmem:[#allocation2 + $0x7a8] sm:$0xff] }
 0x179   :  { %1046 = vmatmul.mubr.f32.gmra.mrb[44].mxu1 %v712_v52  ;;  %v808_v52 = vld [vmem:[#allocation2 + $0x3c0] sm:$0xff] }
 0x17a   :  { %1050 = vmatprep.mubr.f32.mxu1 %v717_v25  ;;  %4658 = vmatpush1.bf16.msra.mxu1 %v4657_v23  ;;  %v813_v23 = vld [vmem:[#allocation2 + $0x3e8] sm:$0xff]  ;;  %v812_v25 = vld [vmem:[#allocation2 + $0x3e0] sm:$0xff] }
 0x17b   :  { %4659 = vmatprep.subr.bf16.mxu1 %v5725_v59 }
 0x17d   :  { %1051 = vmatmul.mubr.f32.gmra.mrb[46].mxu1 %v716_v54  ;;  %v817_v54 = vld [vmem:[#allocation2 + $0x408] sm:$0xff] }
 0x17e   :  { %1055 = vmatprep.mubr.f32.mxu1 %v721_v29  ;;  %4661 = vmatpush1.bf16.msra.mxu1 %v4660_v27  ;;  %v816_v27 = vld [vmem:[#allocation2 + $0x400] sm:$0xff]  ;;  %v821_v29 = vld [vmem:[#allocation2 + $0x428] sm:$0xff] }
 0x17f   :  { %4662 = vmatprep.subr.bf16.mxu1 %v5725_v59 }
 0x181   :  { %1056 = vmatmul.mubr.f32.gmra.mrb[48].mxu1 %v720_v55  ;;  %v820_v55 = vld [vmem:[#allocation2 + $0x420] sm:$0xff] }
 0x182   :  { %1060 = vmatprep.mubr.f32.mxu1 %v725_v33  ;;  %4664 = vmatpush1.bf16.msra.mxu1 %v4663_v31  ;;  %v825_v31 = vld [vmem:[#allocation2 + $0x448] sm:$0xff]  ;;  %v824_v33 = vld [vmem:[#allocation2 + $0x440] sm:$0xff] }
 0x183   :  { %4665 = vmatprep.subr.bf16.mxu1 %v5725_v59 }
 0x185   :  { %1061 = vmatmul.mubr.f32.gmra.mrb[50].mxu1 %v724_v56  ;;  %v829_v56 = vld [vmem:[#allocation2 + $0x468] sm:$0xff] }
 0x186   :  { %1065 = vmatprep.mubr.f32.mxu1 %v729_v37  ;;  %4667 = vmatpush1.bf16.msra.mxu1 %v4666_v35  ;;  %v828_v35 = vld [vmem:[#allocation2 + $0x460] sm:$0xff]  ;;  %v833_v37 = vld [vmem:[#allocation2 + $0x488] sm:$0xff] }
 0x187   :  { %4668 = vmatprep.subr.bf16.mxu1 %v5725_v59 }
 0x189   :  { %1066 = vmatmul.mubr.f32.gmra.mrb[52].mxu1 %v728_v58  ;;  %v832_v58 = vld [vmem:[#allocation2 + $0x480] sm:$0xff] }
 0x18a   :  { %1070 = vmatprep.mubr.f32.mxu1 %v733_v41  ;;  %4670 = vmatpush1.bf16.msra.mxu1 %v4669_v39  ;;  %v837_v39 = vld [vmem:[#allocation2 + $0x4a8] sm:$0xff]  ;;  %v836_v41 = vld [vmem:[#allocation2 + $0x4a0] sm:$0xff] }
 0x18b   :  { %4671 = vmatprep.subr.bf16.mxu1 %v5725_v59 }
 0x18d   :  { %1071 = vmatmul.mubr.f32.gmra.mrb[54].mxu1 %v732_v60  ;;  %v841_v60 = vld [vmem:[#allocation2 + $0x4c8] sm:$0xff] }
 0x18e   :  { %1075 = vmatprep.mubr.f32.mxu1 %v737_v62  ;;  %4673 = vmatpush1.bf16.msra.mxu1 %v4672_v47  ;;  %v840_v62 = vld [vmem:[#allocation2 + $0x4c0] sm:$0xff]  ;;  %v853_v47 = vld [vmem:[#allocation2 + $0x528] sm:$0xff] }
 0x18f   :  { %4674 = vmatprep.subr.bf16.mxu1 %v5725_v59 }
 0x191   :  { %1076 = vmatmul.mubr.f32.gmra.mrb[56].mxu1 %v736_v43  ;;  %v845_v43 = vld [vmem:[#allocation2 + $0x4e8] sm:$0xff] }
 0x192   :  { %1080 = vmatprep.mubr.f32.mxu1 %v741_v45  ;;  %4676 = vmatpush1.bf16.msra.mxu1 %v4675_v53  ;;  %v844_v45 = vld [vmem:[#allocation2 + $0x4e0] sm:$0xff]  ;;  %v873_v53 = vld [vmem:[#allocation2 + $0x5c8] sm:$0xff] }
 0x193   :  { %4677 = vmatprep.subr.bf16.mxu1 %v5725_v59 }
 0x195   :  { %1081 = vmatmul.mubr.f32.gmra.mrb[58].mxu1 %v740_v63  ;;  %v849_v63 = vld [vmem:[#allocation2 + $0x508] sm:$0xff] }
 0x196   :  { %1085 = vmatprep.mubr.f32.mxu1 %v745_v0  ;;  %4679 = vmatpush1.bf16.msra.mxu1 %v4678_v28  ;;  %v848_v0 = vld [vmem:[#allocation2 + $0x500] sm:$0xff]  ;;  %v893_v28 = vld [vmem:[#allocation2 + $0x668] sm:$0xff] }
 0x197   :  { %4680 = vmatprep.subr.bf16.mxu1 %v5725_v59 }
 0x199   :  { %1086 = vmatmul.mubr.f32.gmra.mrb[60].mxu1 %v744_v49  ;;  %v852_v49 = vld [vmem:[#allocation2 + $0x520] sm:$0xff] }
 0x19a   :  { %1090 = vmatprep.mubr.f32.mxu1 %v749_v2  ;;  %4682 = vmatpush1.bf16.msra.mxu1 %v4681_v7  ;;  %v857_v2 = vld [vmem:[#allocation2 + $0x548] sm:$0xff] }
 0x19b   :  { %4683 = vmatprep.subr.bf16.mxu1 %v5725_v59  ;;  %v913_v7 = vld [vmem:[#allocation2 + $0x708] sm:$0xff] }
 0x19d   :  { %1091 = vmatmul.mubr.f32.gmra.mrb[62].mxu1 %v748_v3  ;;  %v856_v3 = vld [vmem:[#allocation2 + $0x540] sm:$0xff] }
 0x19e   :  { %1095 = vmatprep.mubr.f32.mxu1 %v753_v4  ;;  %4685 = vmatpush1.bf16.msra.mxu1 %v4684_v21  ;;  %v861_v4 = vld [vmem:[#allocation2 + $0x568] sm:$0xff]  ;;  %v932_v21 = vld [vmem:[#allocation2 + $0x7a0] sm:$0xff] }
 0x1a1   :  { %1096 = vmatmul.mubr.f32.gmra.mrb[64].mxu1 %v752_v5  ;;  %v860_v5 = vld [vmem:[#allocation2 + $0x560] sm:$0xff] }
 0x1a2   :  { %1100 = vmatprep.mubr.f32.mxu1 %v757_v6  ;;  %v865_v6 = vld [vmem:[#allocation2 + $0x588] sm:$0xff] }
 0x1a5   :  { %1101 = vmatmul.mubr.f32.gmra.mrb[66].mxu1 %v756_v8  ;;  %v864_v8 = vld [vmem:[#allocation2 + $0x580] sm:$0xff] }
 0x1a6   :  { %1105 = vmatprep.mubr.f32.mxu1 %v761_v10  ;;  %v869_v10 = vld [vmem:[#allocation2 + $0x5a8] sm:$0xff] }
 0x1a9   :  { %1106 = vmatmul.mubr.f32.gmra.mrb[68].mxu1 %v760_v12  ;;  %v872_v12 = vld [vmem:[#allocation2 + $0x5c0] sm:$0xff] }
 0x1aa   :  { %1110 = vmatprep.mubr.f32.mxu1 %v765_v14  ;;  %v877_v14 = vld [vmem:[#allocation2 + $0x5e8] sm:$0xff] }
 0x1ad   :  { %1111 = vmatmul.mubr.f32.gmra.mrb[70].mxu1 %v764_v16  ;;  %v876_v16 = vld [vmem:[#allocation2 + $0x5e0] sm:$0xff] }
 0x1ae   :  { %1115 = vmatprep.mubr.f32.mxu1 %v769_v18  ;;  %v881_v18 = vld [vmem:[#allocation2 + $0x608] sm:$0xff] }
 0x1b1   :  { %1116 = vmatmul.mubr.f32.gmra.mrb[72].mxu1 %v768_v20  ;;  %v880_v20 = vld [vmem:[#allocation2 + $0x600] sm:$0xff] }
 0x1b2   :  { %1120 = vmatprep.mubr.f32.mxu1 %v773_v22  ;;  %v885_v22 = vld [vmem:[#allocation2 + $0x628] sm:$0xff] }
 0x1b5   :  { %1121 = vmatmul.mubr.f32.gmra.mrb[74].mxu1 %v772_v24  ;;  %v884_v24 = vld [vmem:[#allocation2 + $0x620] sm:$0xff] }
 0x1b6   :  { %1125 = vmatprep.mubr.f32.mxu1 %v777_v26  ;;  %v889_v26 = vld [vmem:[#allocation2 + $0x648] sm:$0xff] }
 0x1b9   :  { %1126 = vmatmul.mubr.f32.gmra.mrb[76].mxu1 %v776_v30  ;;  %v892_v30 = vld [vmem:[#allocation2 + $0x660] sm:$0xff] }
 0x1ba   :  { %1130 = vmatprep.mubr.f32.mxu1 %v781_v32  ;;  %v897_v32 = vld [vmem:[#allocation2 + $0x688] sm:$0xff] }
 0x1bd   :  { %1131 = vmatmul.mubr.f32.gmra.mrb[78].mxu1 %v780_v34  ;;  %v896_v34 = vld [vmem:[#allocation2 + $0x680] sm:$0xff] }
 0x1be   :  { %1135 = vmatprep.mubr.f32.mxu1 %v785_v36  ;;  %v901_v36 = vld [vmem:[#allocation2 + $0x6a8] sm:$0xff] }
 0x1c1   :  { %1136 = vmatmul.mubr.f32.gmra.mrb[80].mxu1 %v784_v38  ;;  %v900_v38 = vld [vmem:[#allocation2 + $0x6a0] sm:$0xff] }
 0x1c2   :  { %1140 = vmatprep.mubr.f32.mxu1 %v789_v40  ;;  %v905_v40 = vld [vmem:[#allocation2 + $0x6c8] sm:$0xff] }
 0x1c5   :  { %1141 = vmatmul.mubr.f32.gmra.mrb[82].mxu1 %v788_v42  ;;  %v904_v42 = vld [vmem:[#allocation2 + $0x6c0] sm:$0xff] }
 0x1c6   :  { %1145 = vmatprep.mubr.f32.mxu1 %v793_v44  ;;  %v909_v44 = vld [vmem:[#allocation2 + $0x6e8] sm:$0xff] }
 0x1c9   :  { %1146 = vmatmul.mubr.f32.gmra.mrb[84].mxu1 %v792_v9  ;;  %v912_v9 = vld [vmem:[#allocation2 + $0x700] sm:$0xff] }
 0x1ca   :  { %1150 = vmatprep.mubr.f32.mxu1 %v797_v46  ;;  %v917_v46 = vld [vmem:[#allocation2 + $0x728] sm:$0xff] }
 0x1cd   :  { %1151 = vmatmul.mubr.f32.gmra.mrb[86].mxu1 %v796_v11  ;;  %v916_v11 = vld [vmem:[#allocation2 + $0x720] sm:$0xff] }
 0x1ce   :  { %1155 = vmatprep.mubr.f32.mxu1 %v801_v13  ;;  %v921_v13 = vld [vmem:[#allocation2 + $0x748] sm:$0xff] }
 0x1d1   :  { %1156 = vmatmul.mubr.f32.gmra.mrb[88].mxu1 %v800_v48  ;;  %v920_v48 = vld [vmem:[#allocation2 + $0x740] sm:$0xff] }
 0x1d2   :  { %1160 = vmatprep.mubr.f32.mxu1 %v805_v15  ;;  %v925_v15 = vld [vmem:[#allocation2 + $0x768] sm:$0xff] }
 0x1d5   :  { %1161 = vmatmul.mubr.f32.gmra.mrb[90].mxu1 %v804_v17  ;;  %v924_v17 = vld [vmem:[#allocation2 + $0x760] sm:$0xff] }
 0x1d6   :  { %1165 = vmatprep.mubr.f32.mxu1 %v809_v50  ;;  %v929_v50 = vld [vmem:[#allocation2 + $0x788] sm:$0xff] }
 0x1d9   :  { %1166 = vmatmul.mubr.f32.gmra.mrb[92].mxu1 %v808_v52  ;;  %v937_v52 = vld [vmem:[#allocation2 + $0x7c8] sm:$0xff] }
 0x1da   :  { %1170 = vmatprep.mubr.f32.mxu1 %v813_v23  ;;  %v936_v23 = vld [vmem:[#allocation2 + $0x7c0] sm:$0xff] }
 0x1dd   :  { %1171 = vmatmul.mubr.f32.gmra.mrb[94].mxu1 %v812_v25  ;;  %v941_v25 = vld [vmem:[#allocation2 + $0x7e8] sm:$0xff] }
 0x1de   :  { %1175 = vmatprep.mubr.f32.mxu1 %v817_v54  ;;  %v940_v54 = vld [vmem:[#allocation2 + $0x7e0] sm:$0xff] }
 0x1e1   :  { %1176 = vmatmul.mubr.f32.gmra.mrb[96].mxu1 %v816_v27  ;;  %v691_v27 = vld [vmem:[#allocation2 + $0x18] sm:$0xff] }
 0x1e2   :  { %1180 = vmatprep.mubr.f32.mxu1 %v821_v29  ;;  %v690_v29 = vld [vmem:[#allocation2 + $0x10] sm:$0xff] }
 0x1e5   :  { %1181 = vmatmul.mubr.f32.gmra.mrb[98].mxu1 %v820_v55  ;;  %v695_v55 = vld [vmem:[#allocation2 + $0x38] sm:$0xff] }
 0x1e6   :  { %1185 = vmatprep.mubr.f32.mxu1 %v825_v31  ;;  %v694_v31 = vld [vmem:[#allocation2 + $0x30] sm:$0xff] }
 0x1e9   :  { %1186 = vmatmul.mubr.f32.gmra.mrb[100].mxu1 %v824_v33  ;;  %v699_v33 = vld [vmem:[#allocation2 + $0x58] sm:$0xff] }
 0x1ea   :  { %1190 = vmatprep.mubr.f32.mxu1 %v829_v56  ;;  %v698_v56 = vld [vmem:[#allocation2 + $0x50] sm:$0xff] }
 0x1ed   :  { %1191 = vmatmul.mubr.f32.gmra.mrb[102].mxu1 %v828_v35  ;;  %v703_v35 = vld [vmem:[#allocation2 + $0x78] sm:$0xff] }
 0x1ee   :  { %1195 = vmatprep.mubr.f32.mxu1 %v833_v37  ;;  %v702_v37 = vld [vmem:[#allocation2 + $0x70] sm:$0xff] }
 0x1f1   :  { %1196 = vmatmul.mubr.f32.gmra.mrb[104].mxu1 %v832_v58  ;;  %v707_v58 = vld [vmem:[#allocation2 + $0x98] sm:$0xff] }
 0x1f2   :  { %1200 = vmatprep.mubr.f32.mxu1 %v837_v39  ;;  %v706_v39 = vld [vmem:[#allocation2 + $0x90] sm:$0xff] }
 0x1f5   :  { %1201 = vmatmul.mubr.f32.gmra.mrb[106].mxu1 %v836_v41  ;;  %v711_v41 = vld [vmem:[#allocation2 + $0xb8] sm:$0xff] }
 0x1f6   :  { %1205 = vmatprep.mubr.f32.mxu1 %v841_v60  ;;  %v710_v60 = vld [vmem:[#allocation2 + $0xb0] sm:$0xff] }
 0x1f9   :  { %1206 = vmatmul.mubr.f32.gmra.mrb[108].mxu1 %v840_v62  ;;  %v715_v62 = vld [vmem:[#allocation2 + $0xd8] sm:$0xff] }
 0x1fa   :  { %1210 = vmatprep.mubr.f32.mxu1 %v845_v43  ;;  %v714_v43 = vld [vmem:[#allocation2 + $0xd0] sm:$0xff] }
 0x1fd   :  { %1211 = vmatmul.mubr.f32.gmra.mrb[110].mxu1 %v844_v45  ;;  %v719_v45 = vld [vmem:[#allocation2 + $0xf8] sm:$0xff] }
 0x1fe   :  { %1215 = vmatprep.mubr.f32.mxu1 %v849_v63  ;;  %v718_v63 = vld [vmem:[#allocation2 + $0xf0] sm:$0xff] }
 0x201   :  { %1216 = vmatmul.mubr.f32.gmra.mrb[112].mxu1 %v848_v0  ;;  %v723_v0 = vld [vmem:[#allocation2 + $0x118] sm:$0xff] }
 0x202   :  { %1220 = vmatprep.mubr.f32.mxu1 %v853_v47  ;;  %v722_v47 = vld [vmem:[#allocation2 + $0x110] sm:$0xff] }
 0x205   :  { %1221 = vmatmul.mubr.f32.gmra.mrb[114].mxu1 %v852_v49  ;;  %v727_v49 = vld [vmem:[#allocation2 + $0x138] sm:$0xff] }
 0x206   :  { %1225 = vmatprep.mubr.f32.mxu1 %v857_v2  ;;  %v726_v2 = vld [vmem:[#allocation2 + $0x130] sm:$0xff] }
 0x209   :  { %1226 = vmatmul.mubr.f32.gmra.mrb[116].mxu1 %v856_v3  ;;  %v731_v3 = vld [vmem:[#allocation2 + $0x158] sm:$0xff] }
 0x20a   :  { %1230 = vmatprep.mubr.f32.mxu1 %v861_v4  ;;  %v730_v4 = vld [vmem:[#allocation2 + $0x150] sm:$0xff] }
 0x20d   :  { %1231 = vmatmul.mubr.f32.gmra.mrb[118].mxu1 %v860_v5  ;;  %v735_v5 = vld [vmem:[#allocation2 + $0x178] sm:$0xff] }
 0x20e   :  { %1235 = vmatprep.mubr.f32.mxu1 %v865_v6  ;;  %v734_v6 = vld [vmem:[#allocation2 + $0x170] sm:$0xff] }
 0x211   :  { %1236 = vmatmul.mubr.f32.gmra.mrb[120].mxu1 %v864_v8  ;;  %v739_v8 = vld [vmem:[#allocation2 + $0x198] sm:$0xff] }
 0x212   :  { %1240 = vmatprep.mubr.f32.mxu1 %v869_v10  ;;  %v738_v10 = vld [vmem:[#allocation2 + $0x190] sm:$0xff] }
 0x215   :  { %1241 = vmatmul.mubr.f32.gmra.mrb[122].mxu1 %v868_v51  ;;  %v743_v51 = vld [vmem:[#allocation2 + $0x1b8] sm:$0xff] }
 0x216   :  { %1245 = vmatprep.mubr.f32.mxu1 %v873_v53  ;;  %v742_v53 = vld [vmem:[#allocation2 + $0x1b0] sm:$0xff] }
 0x219   :  { %1246 = vmatmul.mubr.f32.gmra.mrb[124].mxu1 %v872_v12  ;;  %v747_v12 = vld [vmem:[#allocation2 + $0x1d8] sm:$0xff] }
 0x21a   :  { %1250 = vmatprep.mubr.f32.mxu1 %v877_v14  ;;  %v746_v14 = vld [vmem:[#allocation2 + $0x1d0] sm:$0xff] }
 0x21d   :  { %1251 = vmatmul.mubr.f32.gmra.mrb[126].mxu1 %v876_v16  ;;  %v751_v16 = vld [vmem:[#allocation2 + $0x1f8] sm:$0xff] }
 0x21e   :  { %1255 = vmatprep.mubr.f32.mxu1 %v881_v18  ;;  %v750_v18 = vld [vmem:[#allocation2 + $0x1f0] sm:$0xff] }
 0x221   :  { %1256 = vmatmul.mubr.f32.gmra.mrb[128].mxu1 %v880_v20  ;;  %v755_v20 = vld [vmem:[#allocation2 + $0x218] sm:$0xff] }
 0x222   :  { %1260 = vmatprep.mubr.f32.mxu1 %v885_v22  ;;  %v754_v22 = vld [vmem:[#allocation2 + $0x210] sm:$0xff] }
 0x225   :  { %1261 = vmatmul.mubr.f32.gmra.mrb[130].mxu1 %v884_v24  ;;  %v759_v24 = vld [vmem:[#allocation2 + $0x238] sm:$0xff] }
 0x226   :  { %1265 = vmatprep.mubr.f32.mxu1 %v889_v26  ;;  %v758_v26 = vld [vmem:[#allocation2 + $0x230] sm:$0xff] }
 0x229   :  { %1266 = vmatmul.mubr.f32.gmra.mrb[132].mxu1 %v888_v57  ;;  %v763_v57 = vld [vmem:[#allocation2 + $0x258] sm:$0xff] }
 0x22a   :  { %1270 = vmatprep.mubr.f32.mxu1 %v893_v28  ;;  %v762_v28 = vld [vmem:[#allocation2 + $0x250] sm:$0xff] }
 0x22d   :  { %1271 = vmatmul.mubr.f32.gmra.mrb[134].mxu1 %v892_v30  ;;  %v767_v30 = vld [vmem:[#allocation2 + $0x278] sm:$0xff] }
 0x22e   :  { %1275 = vmatprep.mubr.f32.mxu1 %v897_v32  ;;  %v766_v32 = vld [vmem:[#allocation2 + $0x270] sm:$0xff] }
 0x231   :  { %1276 = vmatmul.mubr.f32.gmra.mrb[136].mxu1 %v896_v34  ;;  %v771_v34 = vld [vmem:[#allocation2 + $0x298] sm:$0xff] }
 0x232   :  { %1280 = vmatprep.mubr.f32.mxu1 %v901_v36  ;;  %v770_v36 = vld [vmem:[#allocation2 + $0x290] sm:$0xff] }
 0x235   :  { %1281 = vmatmul.mubr.f32.gmra.mrb[138].mxu1 %v900_v38  ;;  %v775_v38 = vld [vmem:[#allocation2 + $0x2b8] sm:$0xff] }
 0x236   :  { %1285 = vmatprep.mubr.f32.mxu1 %v905_v40  ;;  %v774_v40 = vld [vmem:[#allocation2 + $0x2b0] sm:$0xff] }
 0x239   :  { %1286 = vmatmul.mubr.f32.gmra.mrb[140].mxu1 %v904_v42  ;;  %v779_v42 = vld [vmem:[#allocation2 + $0x2d8] sm:$0xff] }
 0x23a   :  { %1290 = vmatprep.mubr.f32.mxu1 %v909_v44  ;;  %v778_v44 = vld [vmem:[#allocation2 + $0x2d0] sm:$0xff] }
 0x23d   :  { %1291 = vmatmul.mubr.f32.gmra.mrb[142].mxu1 %v908_v61  ;;  %v783_v61 = vld [vmem:[#allocation2 + $0x2f8] sm:$0xff] }
 0x23e   :  { %1295 = vmatprep.mubr.f32.mxu1 %v913_v7  ;;  %v782_v7 = vld [vmem:[#allocation2 + $0x2f0] sm:$0xff] }
 0x241   :  { %1296 = vmatmul.mubr.f32.gmra.mrb[144].mxu1 %v912_v9  ;;  %v787_v9 = vld [vmem:[#allocation2 + $0x318] sm:$0xff] }
 0x242   :  { %1300 = vmatprep.mubr.f32.mxu1 %v917_v46  ;;  %v1785_v46 = vld [vmem:[%s6878_s4] sm:$0xff] }
 0x245   :  { %1301 = vmatmul.mubr.f32.gmra.mrb[146].mxu1 %v916_v11  ;;  %v1786_v11 = vld [vmem:[%s6878_s4 + $0x8] sm:$0xff] }
 0x246   :  { %1305 = vmatprep.mubr.f32.mxu1 %v921_v13  ;;  %v4686_v13 = vpack.c.bf16 %v1786_v11, %v1785_v46  ;;  %v903_v46 = vld [vmem:[#allocation2 + $0x6b8] sm:$0xff]  ;;  %v6243_v11 = vld [vmem:[%s6877_s3] ss:$0 sm:$0xff] }
 0x248   :  { %4687 = vmatprep.subr.bf16.mxu0 %v4686_v13 }
 0x249   :  { %1306 = vmatmul.mubr.f32.gmra.mrb[148].mxu1 %v920_v48  ;;  %v786_v48 = vld [vmem:[#allocation2 + $0x310] sm:$0xff]  ;;  %4689 = vmatpush3.bf16.msra.mxu0 %v4686_v13 }
 0x24a   :  { %1310 = vmatprep.mubr.f32.mxu1 %v925_v15  ;;  %v791_v15 = vld [vmem:[#allocation2 + $0x338] sm:$0xff]  ;;  %v902_v13 = vld [vmem:[#allocation2 + $0x6b0] sm:$0xff] }
 0x24d   :  { %1311 = vmatmul.mubr.f32.gmra.mrb[150].mxu1 %v924_v17  ;;  %v1787_v17 = vld [vmem:[%s6878_s4 + $0x10] sm:$0xff] }
 0x24e   :  { %1315 = vmatprep.mubr.f32.mxu1 %v929_v50  ;;  %v1788_v50 = vld [vmem:[%s6878_s4 + $0x18] sm:$0xff] }
 0x251   :  { %1316 = vmatmul.mubr.f32.gmra.mrb[152].mxu1 %v928_v1  ;;  %v4690_v1 = vpack.c.bf16 %v1788_v50, %v1787_v17 }
 0x252   :  { %1320 = vmatprep.mubr.f32.mxu1 %v933_v19  ;;  %v790_v19 = vld [vmem:[#allocation2 + $0x330] sm:$0xff] }
 0x253   :  { %4691 = vmatprep.subr.bf16.mxu0 %v4690_v1 }
 0x254   :  { %4693 = vmatpush3.bf16.msra.mxu0 %v4690_v1  ;;  %v906_v1 = vld [vmem:[#allocation2 + $0x6d0] sm:$0xff] }
 0x255   :  { %1321 = vmatmul.mubr.f32.gmra.mrb[154].mxu1 %v932_v21  ;;  %v795_v21 = vld [vmem:[#allocation2 + $0x358] sm:$0xff]  ;;  %4694 = vmatprep.subr.bf16.mxu0 %v5725_v59 }
 0x256   :  { %1325 = vmatprep.mubr.f32.mxu1 %v937_v52  ;;  %v794_v52 = vld [vmem:[#allocation2 + $0x350] sm:$0xff] }
 0x259   :  { %1326 = vmatmul.mubr.f32.gmra.mrb[156].mxu1 %v936_v23  ;;  %v799_v23 = vld [vmem:[#allocation2 + $0x378] sm:$0xff] }
 0x25a   :  { %1330 = vmatprep.mubr.f32.mxu1 %v941_v25  ;;  %v798_v25 = vld [vmem:[#allocation2 + $0x370] sm:$0xff] }
 0x25d   :  { %1331 = vmatmul.mubr.f32.gmra.mrb[158].mxu1 %v940_v54  ;;  %v803_v54 = vld [vmem:[#allocation2 + $0x398] sm:$0xff] }
 0x25e   :  { %1400 = vmatprep.mubr.f32.mxu1 %v691_v27  ;;  %v802_v27 = vld [vmem:[#allocation2 + $0x390] sm:$0xff] }
 0x261   :  { %1401 = vmatmul.mubr.f32.vlgmr.msra.gmra.mrb[32].mxu1 %v690_v29  ;;  %v807_v29 = vld [vmem:[#allocation2 + $0x3b8] sm:$0xff] }
 0x262   :  { %1405 = vmatprep.mubr.f32.mxu1 %v695_v55  ;;  %v806_v55 = vld [vmem:[#allocation2 + $0x3b0] sm:$0xff] }
 0x265   :  { %1406 = vmatmul.mubr.f32.gmra.mrb[34].mxu1 %v694_v31  ;;  %v811_v31 = vld [vmem:[#allocation2 + $0x3d8] sm:$0xff] }
 0x266   :  { %1410 = vmatprep.mubr.f32.mxu1 %v699_v33  ;;  %v810_v33 = vld [vmem:[#allocation2 + $0x3d0] sm:$0xff] }
 0x269   :  { %1411 = vmatmul.mubr.f32.gmra.mrb[36].mxu1 %v698_v56  ;;  %v815_v56 = vld [vmem:[#allocation2 + $0x3f8] sm:$0xff] }
 0x26a   :  { %1415 = vmatprep.mubr.f32.mxu1 %v703_v35  ;;  %v814_v35 = vld [vmem:[#allocation2 + $0x3f0] sm:$0xff] }
 0x26d   :  { %1416 = vmatmul.mubr.f32.gmra.mrb[38].mxu1 %v702_v37  ;;  %v819_v37 = vld [vmem:[#allocation2 + $0x418] sm:$0xff] }
 0x26e   :  { %1420 = vmatprep.mubr.f32.mxu1 %v707_v58  ;;  %v818_v58 = vld [vmem:[#allocation2 + $0x410] sm:$0xff] }
 0x271   :  { %1421 = vmatmul.mubr.f32.gmra.mrb[40].mxu1 %v706_v39  ;;  %v823_v39 = vld [vmem:[#allocation2 + $0x438] sm:$0xff] }
 0x272   :  { %1425 = vmatprep.mubr.f32.mxu1 %v711_v41  ;;  %v822_v41 = vld [vmem:[#allocation2 + $0x430] sm:$0xff] }
 0x275   :  { %1426 = vmatmul.mubr.f32.gmra.mrb[42].mxu1 %v710_v60  ;;  %v827_v60 = vld [vmem:[#allocation2 + $0x458] sm:$0xff] }
 0x276   :  { %1430 = vmatprep.mubr.f32.mxu1 %v715_v62  ;;  %v826_v62 = vld [vmem:[#allocation2 + $0x450] sm:$0xff] }
 0x279   :  { %1431 = vmatmul.mubr.f32.gmra.mrb[44].mxu1 %v714_v43  ;;  %v831_v43 = vld [vmem:[#allocation2 + $0x478] sm:$0xff] }
 0x27a   :  { %1435 = vmatprep.mubr.f32.mxu1 %v719_v45  ;;  %v830_v45 = vld [vmem:[#allocation2 + $0x470] sm:$0xff] }
 0x27d   :  { %1436 = vmatmul.mubr.f32.gmra.mrb[46].mxu1 %v718_v63  ;;  %v835_v63 = vld [vmem:[#allocation2 + $0x498] sm:$0xff] }
 0x27e   :  { %1440 = vmatprep.mubr.f32.mxu1 %v723_v0  ;;  %v834_v0 = vld [vmem:[#allocation2 + $0x490] sm:$0xff] }
 0x281   :  { %1441 = vmatmul.mubr.f32.gmra.mrb[48].mxu1 %v722_v47  ;;  %v839_v47 = vld [vmem:[#allocation2 + $0x4b8] sm:$0xff] }
 0x282   :  { %1445 = vmatprep.mubr.f32.mxu1 %v727_v49  ;;  %v838_v49 = vld [vmem:[#allocation2 + $0x4b0] sm:$0xff] }
 0x285   :  { %1446 = vmatmul.mubr.f32.gmra.mrb[50].mxu1 %v726_v2  ;;  %v843_v2 = vld [vmem:[#allocation2 + $0x4d8] sm:$0xff] }
 0x286   :  { %1450 = vmatprep.mubr.f32.mxu1 %v731_v3  ;;  %v842_v3 = vld [vmem:[#allocation2 + $0x4d0] sm:$0xff] }
 0x289   :  { %1451 = vmatmul.mubr.f32.gmra.mrb[52].mxu1 %v730_v4  ;;  %v847_v4 = vld [vmem:[#allocation2 + $0x4f8] sm:$0xff] }
 0x28a   :  { %1455 = vmatprep.mubr.f32.mxu1 %v735_v5  ;;  %v846_v5 = vld [vmem:[#allocation2 + $0x4f0] sm:$0xff] }
 0x28d   :  { %1456 = vmatmul.mubr.f32.gmra.mrb[54].mxu1 %v734_v6  ;;  %v851_v6 = vld [vmem:[#allocation2 + $0x518] sm:$0xff] }
 0x28e   :  { %1460 = vmatprep.mubr.f32.mxu1 %v739_v8  ;;  %v850_v8 = vld [vmem:[#allocation2 + $0x510] sm:$0xff] }
 0x291   :  { %1461 = vmatmul.mubr.f32.gmra.mrb[56].mxu1 %v738_v10  ;;  %v855_v10 = vld [vmem:[#allocation2 + $0x538] sm:$0xff] }
 0x292   :  { %1465 = vmatprep.mubr.f32.mxu1 %v743_v51  ;;  %v854_v51 = vld [vmem:[#allocation2 + $0x530] sm:$0xff] }
 0x295   :  { %1466 = vmatmul.mubr.f32.gmra.mrb[58].mxu1 %v742_v53  ;;  %v859_v53 = vld [vmem:[#allocation2 + $0x558] sm:$0xff] }
 0x296   :  { %1470 = vmatprep.mubr.f32.mxu1 %v747_v12  ;;  %v858_v12 = vld [vmem:[#allocation2 + $0x550] sm:$0xff] }
 0x299   :  { %1471 = vmatmul.mubr.f32.gmra.mrb[60].mxu1 %v746_v14  ;;  %v863_v14 = vld [vmem:[#allocation2 + $0x578] sm:$0xff] }
 0x29a   :  { %1475 = vmatprep.mubr.f32.mxu1 %v751_v16  ;;  %v862_v16 = vld [vmem:[#allocation2 + $0x570] sm:$0xff] }
 0x29d   :  { %1476 = vmatmul.mubr.f32.gmra.mrb[62].mxu1 %v750_v18  ;;  %v867_v18 = vld [vmem:[#allocation2 + $0x598] sm:$0xff] }
 0x29e   :  { %1480 = vmatprep.mubr.f32.mxu1 %v755_v20  ;;  %v866_v20 = vld [vmem:[#allocation2 + $0x590] sm:$0xff] }
 0x2a1   :  { %1481 = vmatmul.mubr.f32.gmra.mrb[64].mxu1 %v754_v22  ;;  %v871_v22 = vld [vmem:[#allocation2 + $0x5b8] sm:$0xff] }
 0x2a2   :  { %1485 = vmatprep.mubr.f32.mxu1 %v759_v24  ;;  %v870_v24 = vld [vmem:[#allocation2 + $0x5b0] sm:$0xff] }
 0x2a5   :  { %1486 = vmatmul.mubr.f32.gmra.mrb[66].mxu1 %v758_v26  ;;  %v875_v26 = vld [vmem:[#allocation2 + $0x5d8] sm:$0xff] }
 0x2a6   :  { %1490 = vmatprep.mubr.f32.mxu1 %v763_v57  ;;  %v874_v57 = vld [vmem:[#allocation2 + $0x5d0] sm:$0xff] }
 0x2a9   :  { %1491 = vmatmul.mubr.f32.gmra.mrb[68].mxu1 %v762_v28  ;;  %v879_v28 = vld [vmem:[#allocation2 + $0x5f8] sm:$0xff] }
 0x2aa   :  { %1495 = vmatprep.mubr.f32.mxu1 %v767_v30  ;;  %v878_v30 = vld [vmem:[#allocation2 + $0x5f0] sm:$0xff] }
 0x2ad   :  { %1496 = vmatmul.mubr.f32.gmra.mrb[70].mxu1 %v766_v32  ;;  %v883_v32 = vld [vmem:[#allocation2 + $0x618] sm:$0xff] }
 0x2ae   :  { %1500 = vmatprep.mubr.f32.mxu1 %v771_v34  ;;  %v882_v34 = vld [vmem:[#allocation2 + $0x610] sm:$0xff] }
 0x2b1   :  { %1501 = vmatmul.mubr.f32.gmra.mrb[72].mxu1 %v770_v36  ;;  %v887_v36 = vld [vmem:[#allocation2 + $0x638] sm:$0xff] }
 0x2b2   :  { %1505 = vmatprep.mubr.f32.mxu1 %v775_v38  ;;  %v886_v38 = vld [vmem:[#allocation2 + $0x630] sm:$0xff] }
 0x2b5   :  { %1506 = vmatmul.mubr.f32.gmra.mrb[74].mxu1 %v774_v40  ;;  %v891_v40 = vld [vmem:[#allocation2 + $0x658] sm:$0xff] }
 0x2b6   :  { %1510 = vmatprep.mubr.f32.mxu1 %v779_v42  ;;  %v890_v42 = vld [vmem:[#allocation2 + $0x650] sm:$0xff] }
 0x2b9   :  { %1511 = vmatmul.mubr.f32.gmra.mrb[76].mxu1 %v778_v44  ;;  %v895_v44 = vld [vmem:[#allocation2 + $0x678] sm:$0xff] }
 0x2ba   :  { %1515 = vmatprep.mubr.f32.mxu1 %v783_v61  ;;  %v894_v61 = vld [vmem:[#allocation2 + $0x670] sm:$0xff] }
 0x2bd   :  { %1516 = vmatmul.mubr.f32.gmra.mrb[78].mxu1 %v782_v7  ;;  %v899_v7 = vld [vmem:[#allocation2 + $0x698] sm:$0xff] }
 0x2be   :  { %1520 = vmatprep.mubr.f32.mxu1 %v787_v9  ;;  %v898_v9 = vld [vmem:[#allocation2 + $0x690] sm:$0xff] }
 0x2c1   :  { %1521 = vmatmul.mubr.f32.gmra.mrb[80].mxu1 %v786_v48  ;;  %v907_v48 = vld [vmem:[#allocation2 + $0x6d8] sm:$0xff] }
 0x2c2   :  { %1525 = vmatprep.mubr.f32.mxu1 %v791_v15 }
 0x2c5   :  { %1526 = vmatmul.mubr.f32.gmra.mrb[82].mxu1 %v790_v19  ;;  %v911_v19 = vld [vmem:[#allocation2 + $0x6f8] sm:$0xff] }
 0x2c6   :  { %1530 = vmatprep.mubr.f32.mxu1 %v795_v21 }
 0x2c9   :  { %1531 = vmatmul.mubr.f32.gmra.mrb[84].mxu1 %v794_v52 }
 0x2ca   :  { %1535 = vmatprep.mubr.f32.mxu1 %v799_v23 }
 0x2cd   :  { %1536 = vmatmul.mubr.f32.gmra.mrb[86].mxu1 %v798_v25  ;;  %v910_v25 = vld [vmem:[#allocation2 + $0x6f0] sm:$0xff] }
 0x2ce   :  { %1540 = vmatprep.mubr.f32.mxu1 %v803_v54  ;;  %v915_v54 = vld [vmem:[#allocation2 + $0x718] sm:$0xff] }
 0x2d1   :  { %1541 = vmatmul.mubr.f32.gmra.mrb[88].mxu1 %v802_v27 }
 0x2d2   :  { %1545 = vmatprep.mubr.f32.mxu1 %v807_v29 }
 0x2d5   :  { %1546 = vmatmul.mubr.f32.gmra.mrb[90].mxu1 %v806_v55 }
 0x2d6   :  { %1550 = vmatprep.mubr.f32.mxu1 %v811_v31  ;;  %v914_v31 = vld [vmem:[#allocation2 + $0x710] sm:$0xff] }
 0x2d9   :  { %1551 = vmatmul.mubr.f32.gmra.mrb[92].mxu1 %v810_v33  ;;  %v919_v33 = vld [vmem:[#allocation2 + $0x738] sm:$0xff] }
 0x2da   :  { %1555 = vmatprep.mubr.f32.mxu1 %v815_v56 }
 0x2dd   :  { %1556 = vmatmul.mubr.f32.gmra.mrb[94].mxu1 %v814_v35 }
 0x2de   :  { %1560 = vmatprep.mubr.f32.mxu1 %v819_v37 }
 0x2e1   :  { %1561 = vmatmul.mubr.f32.gmra.mrb[96].mxu1 %v818_v58 }
 0x2e2   :  { %1565 = vmatprep.mubr.f32.mxu1 %v823_v39  ;;  %v918_v39 = vld [vmem:[#allocation2 + $0x730] sm:$0xff] }
 0x2e5   :  { %1566 = vmatmul.mubr.f32.gmra.mrb[98].mxu1 %v822_v41  ;;  %v923_v41 = vld [vmem:[#allocation2 + $0x758] sm:$0xff] }
 0x2e6   :  { %1570 = vmatprep.mubr.f32.mxu1 %v827_v60 }
 0x2e9   :  { %1571 = vmatmul.mubr.f32.gmra.mrb[100].mxu1 %v826_v62 }
 0x2ea   :  { %1575 = vmatprep.mubr.f32.mxu1 %v831_v43 }
 0x2ed   :  { %1576 = vmatmul.mubr.f32.gmra.mrb[102].mxu1 %v830_v45 }
 0x2ee   :  { %1580 = vmatprep.mubr.f32.mxu1 %v835_v63  ;;  %v922_v63 = vld [vmem:[#allocation2 + $0x750] sm:$0xff] }
 0x2f1   :  { %1581 = vmatmul.mubr.f32.gmra.mrb[104].mxu1 %v834_v0  ;;  %v927_v0 = vld [vmem:[#allocation2 + $0x778] sm:$0xff] }
 0x2f2   :  { %1585 = vmatprep.mubr.f32.mxu1 %v839_v47 }
 0x2f5   :  { %1586 = vmatmul.mubr.f32.gmra.mrb[106].mxu1 %v838_v49 }
 0x2f6   :  { %1590 = vmatprep.mubr.f32.mxu1 %v843_v2 }
 0x2f9   :  { %1591 = vmatmul.mubr.f32.gmra.mrb[108].mxu1 %v842_v3 }
 0x2fa   :  { %1595 = vmatprep.mubr.f32.mxu1 %v847_v4  ;;  %v926_v4 = vld [vmem:[#allocation2 + $0x770] sm:$0xff] }
 0x2fd   :  { %1596 = vmatmul.mubr.f32.gmra.mrb[110].mxu1 %v846_v5  ;;  %v931_v5 = vld [vmem:[#allocation2 + $0x798] sm:$0xff] }
 0x2fe   :  { %1600 = vmatprep.mubr.f32.mxu1 %v851_v6 }
 0x301   :  { %1601 = vmatmul.mubr.f32.gmra.mrb[112].mxu1 %v850_v8 }
 0x302   :  { %1605 = vmatprep.mubr.f32.mxu1 %v855_v10 }
 0x305   :  { %1606 = vmatmul.mubr.f32.gmra.mrb[114].mxu1 %v854_v51 }
 0x306   :  { %1610 = vmatprep.mubr.f32.mxu1 %v859_v53  ;;  %v930_v53 = vld [vmem:[#allocation2 + $0x790] sm:$0xff] }
 0x309   :  { %1611 = vmatmul.mubr.f32.gmra.mrb[116].mxu1 %v858_v12  ;;  %v935_v12 = vld [vmem:[#allocation2 + $0x7b8] sm:$0xff] }
 0x30a   :  { %1615 = vmatprep.mubr.f32.mxu1 %v863_v14 }
 0x30d   :  { %1616 = vmatmul.mubr.f32.gmra.mrb[118].mxu1 %v862_v16 }
 0x30e   :  { %1620 = vmatprep.mubr.f32.mxu1 %v867_v18 }
 0x311   :  { %1621 = vmatmul.mubr.f32.gmra.mrb[120].mxu1 %v866_v20 }
 0x312   :  { %1625 = vmatprep.mubr.f32.mxu1 %v871_v22  ;;  %v934_v22 = vld [vmem:[#allocation2 + $0x7b0] sm:$0xff] }
 0x315   :  { %1626 = vmatmul.mubr.f32.gmra.mrb[122].mxu1 %v870_v24  ;;  %v939_v24 = vld [vmem:[#allocation2 + $0x7d8] sm:$0xff] }
 0x316   :  { %1630 = vmatprep.mubr.f32.mxu1 %v875_v26 }
 0x319   :  { %1631 = vmatmul.mubr.f32.gmra.mrb[124].mxu1 %v874_v57 }
 0x31a   :  { %1635 = vmatprep.mubr.f32.mxu1 %v879_v28 }
 0x31d   :  { %1636 = vmatmul.mubr.f32.gmra.mrb[126].mxu1 %v878_v30 }
 0x31e   :  { %1640 = vmatprep.mubr.f32.mxu1 %v883_v32  ;;  %v938_v32 = vld [vmem:[#allocation2 + $0x7d0] sm:$0xff] }
 0x321   :  { %1641 = vmatmul.mubr.f32.gmra.mrb[128].mxu1 %v882_v34  ;;  %v943_v34 = vld [vmem:[#allocation2 + $0x7f8] sm:$0xff] }
 0x322   :  { %1645 = vmatprep.mubr.f32.mxu1 %v887_v36 }
 0x325   :  { %1646 = vmatmul.mubr.f32.gmra.mrb[130].mxu1 %v886_v38 }
 0x326   :  { %1650 = vmatprep.mubr.f32.mxu1 %v891_v40 }
 0x329   :  { %1651 = vmatmul.mubr.f32.gmra.mrb[132].mxu1 %v890_v42 }
 0x32a   :  { %1655 = vmatprep.mubr.f32.mxu1 %v895_v44  ;;  %v942_v44 = vld [vmem:[#allocation2 + $0x7f0] sm:$0xff] }
 0x32d   :  { %1656 = vmatmul.mubr.f32.gmra.mrb[134].mxu1 %v894_v61 }
 0x32e   :  { %1660 = vmatprep.mubr.f32.mxu1 %v899_v7 }
 0x331   :  { %1661 = vmatmul.mubr.f32.gmra.mrb[136].mxu1 %v898_v9 }
 0x332   :  { %1665 = vmatprep.mubr.f32.mxu1 %v903_v46 }
 0x334   :  { %v1402_v15 = vpop.f32.mrb[32].mxu1 }
 0x335   :  { %v4802_v17 = vadd.f32 %v6243_v11, %v1402_v15  ;;  %v1404_v50 = vpop.f32.mrb[33].mxu1  ;;  %1666 = vmatmul.mubr.f32.gmra.mrb[138].mxu1 %v902_v13 }
 0x336   :  { %1670 = vmatprep.mubr.f32.mxu1 %v907_v48 }
 0x337   :  { %5188 = vtanh.f32 %v4802_v17 }
 0x338   :  { %v1407_v21 = vpop.f32.mrb[34].mxu1 }
 0x339   :  { %v4803_v52 = vadd.f32 %v6243_v11, %v1407_v21  ;;  %v1409_v23 = vpop.f32.mrb[35].mxu1  ;;  %1671 = vmatmul.mubr.f32.gmra.mrb[140].mxu1 %v906_v1 }
 0x33a   :  { %1675 = vmatprep.mubr.f32.mxu1 %v911_v19 }
 0x33b   :  { %5190 = vtanh.f32 %v4803_v52 }
 0x33c   :  { %v1412_v27 = vpop.f32.mrb[36].mxu1 }
 0x33d   :  { %v4804_v29 = vadd.f32 %v6243_v11, %v1412_v27  ;;  %v1414_v55 = vpop.f32.mrb[37].mxu1  ;;  %1676 = vmatmul.mubr.f32.gmra.mrb[142].mxu1 %v910_v25 }
 0x33e   :  { %1680 = vmatprep.mubr.f32.mxu1 %v915_v54 }
 0x33f   :  { %5192 = vtanh.f32 %v4804_v29 }
 0x340   :  { %v1417_v56 = vpop.f32.mrb[38].mxu1 }
 0x341   :  { %v5189_v35 = vpop.eup %5188  ;;  %v4805_v37 = vadd.f32 %v6243_v11, %v1417_v56  ;;  %v1419_v58 = vpop.f32.mrb[39].mxu1  ;;  %1681 = vmatmul.mubr.f32.gmra.mrb[144].mxu1 %v914_v31 }
 0x342   :  { %4382 = vmatprep.mubr.msk.f32.mxu0 %vm106_vm0, %v5189_v35  ;;  %1685 = vmatprep.mubr.f32.mxu1 %v919_v33 }
 0x343   :  { %5194 = vtanh.f32 %v4805_v37 }
 0x344   :  { %v1422_v60 = vpop.f32.mrb[40].mxu1 }
 0x345   :  { %v5191_v62 = vpop.eup %5190  ;;  %v4806_v43 = vadd.f32 %v6243_v11, %v1422_v60  ;;  %v1424_v45 = vpop.f32.mrb[41].mxu1  ;;  %1686 = vmatmul.mubr.f32.gmra.mrb[146].mxu1 %v918_v39 }
 0x346   :  { %4383 = vmatmul.mubr.msk.f32.vlgmr.msra.gmra.mrb[32].mxu0 %vm106_vm0, %v5191_v62  ;;  %1690 = vmatprep.mubr.f32.mxu1 %v923_v41 }
 0x347   :  { %5196 = vtanh.f32 %v4806_v43 }
 0x348   :  { %v1427_v47 = vpop.f32.mrb[42].mxu1 }
 0x349   :  { %v5193_v49 = vpop.eup %5192  ;;  %v4807_v2 = vadd.f32 %v6243_v11, %v1427_v47  ;;  %v1429_v3 = vpop.f32.mrb[43].mxu1  ;;  %1691 = vmatmul.mubr.f32.gmra.mrb[148].mxu1 %v922_v63 }
 0x34a   :  { %4385 = vmatprep.mubr.msk.f32.mxu0 %vm106_vm0, %v5193_v49  ;;  %1695 = vmatprep.mubr.f32.mxu1 %v927_v0 }
 0x34b   :  { %5198 = vtanh.f32 %v4807_v2 }
 0x34c   :  { %v1432_v6 = vpop.f32.mrb[44].mxu1 }
 0x34d   :  { %v5195_v8 = vpop.eup %5194  ;;  %v4808_v10 = vadd.f32 %v6243_v11, %v1432_v6  ;;  %v1434_v51 = vpop.f32.mrb[45].mxu1  ;;  %1696 = vmatmul.mubr.f32.gmra.mrb[150].mxu1 %v926_v4 }
 0x34e   :  { %4386 = vmatmul.mubr.msk.f32.gmra.mrb[34].mxu0 %vm106_vm0, %v5195_v8  ;;  %1700 = vmatprep.mubr.f32.mxu1 %v931_v5 }
 0x34f   :  { %5200 = vtanh.f32 %v4808_v10 }
 0x350   :  { %v1437_v14 = vpop.f32.mrb[46].mxu1 }
 0x351   :  { %v5197_v16 = vpop.eup %5196  ;;  %v4809_v18 = vadd.f32 %v6243_v11, %v1437_v14  ;;  %v1439_v20 = vpop.f32.mrb[47].mxu1  ;;  %1701 = vmatmul.mubr.f32.gmra.mrb[152].mxu1 %v930_v53 }
 0x352   :  { %4388 = vmatprep.mubr.msk.f32.mxu0 %vm106_vm0, %v5197_v16  ;;  %1705 = vmatprep.mubr.f32.mxu1 %v935_v12 }
 0x353   :  { %5202 = vtanh.f32 %v4809_v18 }
 0x354   :  { %v1442_v26 = vpop.f32.mrb[48].mxu1 }
 0x355   :  { %v5199_v57 = vpop.eup %5198  ;;  %v4810_v28 = vadd.f32 %v6243_v11, %v1442_v26  ;;  %v1444_v30 = vpop.f32.mrb[49].mxu1  ;;  %1706 = vmatmul.mubr.f32.gmra.mrb[154].mxu1 %v934_v22 }
 0x356   :  { %4389 = vmatmul.mubr.msk.f32.gmra.mrb[36].mxu0 %vm106_vm0, %v5199_v57  ;;  %1710 = vmatprep.mubr.f32.mxu1 %v939_v24 }
 0x357   :  { %5204 = vtanh.f32 %v4810_v28 }
 0x358   :  { %v1447_v36 = vpop.f32.mrb[50].mxu1 }
 0x359   :  { %v5201_v38 = vpop.eup %5200  ;;  %v4811_v40 = vadd.f32 %v6243_v11, %v1447_v36  ;;  %v1449_v42 = vpop.f32.mrb[51].mxu1  ;;  %1711 = vmatmul.mubr.f32.gmra.mrb[156].mxu1 %v938_v32 }
 0x35a   :  { %4391 = vmatprep.mubr.msk.f32.mxu0 %vm106_vm0, %v5201_v38  ;;  %1715 = vmatprep.mubr.f32.mxu1 %v943_v34 }
 0x35b   :  { %5206 = vtanh.f32 %v4811_v40 }
 0x35c   :  { %v1452_v61 = vpop.f32.mrb[52].mxu1 }
 0x35d   :  { %v5203_v7 = vpop.eup %5202  ;;  %v4812_v9 = vadd.f32 %v6243_v11, %v1452_v61  ;;  %v1454_v46 = vpop.f32.mrb[53].mxu1  ;;  %1716 = vmatmul.mubr.f32.gmra.mrb[158].mxu1 %v942_v44 }
 0x35e   :  { %4392 = vmatmul.mubr.msk.f32.gmra.mrb[38].mxu0 %vm106_vm0, %v5203_v7 }
 0x35f   :  { %5208 = vtanh.f32 %v4812_v9 }
 0x360   :  { %v1457_v13 = vpop.f32.mrb[54].mxu1 }
 0x361   :  { %v5205_v48 = vpop.eup %5204  ;;  %v4813_v15 = vadd.f32 %v6243_v11, %v1457_v13  ;;  %v1459_v17 = vpop.f32.mrb[55].mxu1 }
 0x362   :  { %4394 = vmatprep.mubr.msk.f32.mxu0 %vm106_vm0, %v5205_v48 }
 0x363   :  { %5210 = vtanh.f32 %v4813_v15 }
 0x364   :  { %v1462_v50 = vpop.f32.mrb[56].mxu1 }
 0x365   :  { %v5207_v1 = vpop.eup %5206  ;;  %v4814_v19 = vadd.f32 %v6243_v11, %v1462_v50  ;;  %v1464_v21 = vpop.f32.mrb[57].mxu1 }
 0x366   :  { %4395 = vmatmul.mubr.msk.f32.gmra.mrb[40].mxu0 %vm106_vm0, %v5207_v1 }
 0x367   :  { %5212 = vtanh.f32 %v4814_v19 }
 0x368   :  { %v1467_v52 = vpop.f32.mrb[58].mxu1 }
 0x369   :  { %v5209_v23 = vpop.eup %5208  ;;  %v4815_v25 = vadd.f32 %v6243_v11, %v1467_v52  ;;  %v1469_v54 = vpop.f32.mrb[59].mxu1 }
 0x36a   :  { %4397 = vmatprep.mubr.msk.f32.mxu0 %vm106_vm0, %v5209_v23 }
 0x36b   :  { %5214 = vtanh.f32 %v4815_v25 }
 0x36c   :  { %v1472_v27 = vpop.f32.mrb[60].mxu1 }
 0x36d   :  { %v5211_v29 = vpop.eup %5210  ;;  %v4816_v55 = vadd.f32 %v6243_v11, %v1472_v27  ;;  %v1474_v31 = vpop.f32.mrb[61].mxu1 }
 0x36e   :  { %4398 = vmatmul.mubr.msk.f32.gmra.mrb[42].mxu0 %vm106_vm0, %v5211_v29 }
 0x36f   :  { %5216 = vtanh.f32 %v4816_v55 }
 0x370   :  { %v1477_v33 = vpop.f32.mrb[62].mxu1 }
 0x371   :  { %v5213_v56 = vpop.eup %5212  ;;  %v4817_v35 = vadd.f32 %v6243_v11, %v1477_v33  ;;  %v1479_v37 = vpop.f32.mrb[63].mxu1 }
 0x372   :  { %4400 = vmatprep.mubr.msk.f32.mxu0 %vm106_vm0, %v5213_v56 }
 0x373   :  { %5218 = vtanh.f32 %v4817_v35 }
 0x374   :  { %v1482_v58 = vpop.f32.mrb[64].mxu1 }
 0x375   :  { %v5215_v39 = vpop.eup %5214  ;;  %v4818_v41 = vadd.f32 %v6243_v11, %v1482_v58  ;;  %v1484_v60 = vpop.f32.mrb[65].mxu1 }
 0x376   :  { %4401 = vmatmul.mubr.msk.f32.gmra.mrb[44].mxu0 %vm106_vm0, %v5215_v39 }
 0x377   :  { %5220 = vtanh.f32 %v4818_v41 }
 0x378   :  { %v1487_v62 = vpop.f32.mrb[66].mxu1 }
 0x379   :  { %v5217_v43 = vpop.eup %5216  ;;  %v4819_v45 = vadd.f32 %v6243_v11, %v1487_v62  ;;  %v1489_v63 = vpop.f32.mrb[67].mxu1 }
 0x37a   :  { %4403 = vmatprep.mubr.msk.f32.mxu0 %vm106_vm0, %v5217_v43 }
 0x37b   :  { %5222 = vtanh.f32 %v4819_v45 }
 0x37c   :  { %v1492_v0 = vpop.f32.mrb[68].mxu1 }
 0x37d   :  { %v5219_v47 = vpop.eup %5218  ;;  %v4820_v49 = vadd.f32 %v6243_v11, %v1492_v0  ;;  %v1494_v2 = vpop.f32.mrb[69].mxu1 }
 0x37e   :  { %4404 = vmatmul.mubr.msk.f32.gmra.mrb[46].mxu0 %vm106_vm0, %v5219_v47 }
 0x37f   :  { %5224 = vtanh.f32 %v4820_v49 }
 0x380   :  { %v1497_v3 = vpop.f32.mrb[70].mxu1 }
 0x381   :  { %v5221_v4 = vpop.eup %5220  ;;  %v4821_v5 = vadd.f32 %v6243_v11, %v1497_v3  ;;  %v1499_v6 = vpop.f32.mrb[71].mxu1 }
 0x382   :  { %4406 = vmatprep.mubr.msk.f32.mxu0 %vm106_vm0, %v5221_v4 }
 0x383   :  { %5226 = vtanh.f32 %v4821_v5 }
 0x384   :  { %v1502_v8 = vpop.f32.mrb[72].mxu1 }
 0x385   :  { %v5223_v10 = vpop.eup %5222  ;;  %v4822_v51 = vadd.f32 %v6243_v11, %v1502_v8  ;;  %v1504_v53 = vpop.f32.mrb[73].mxu1 }
 0x386   :  { %4407 = vmatmul.mubr.msk.f32.gmra.mrb[48].mxu0 %vm106_vm0, %v5223_v10 }
 0x387   :  { %5228 = vtanh.f32 %v4822_v51 }
 0x388   :  { %v1507_v12 = vpop.f32.mrb[74].mxu1 }
 0x389   :  { %v5225_v14 = vpop.eup %5224  ;;  %v4823_v16 = vadd.f32 %v6243_v11, %v1507_v12  ;;  %v1509_v18 = vpop.f32.mrb[75].mxu1 }
 0x38a   :  { %4409 = vmatprep.mubr.msk.f32.mxu0 %vm106_vm0, %v5225_v14 }
 0x38b   :  { %5230 = vtanh.f32 %v4823_v16 }
 0x38c   :  { %v1512_v20 = vpop.f32.mrb[76].mxu1 }
 0x38d   :  { %v5227_v22 = vpop.eup %5226  ;;  %v4824_v24 = vadd.f32 %v6243_v11, %v1512_v20  ;;  %v1514_v26 = vpop.f32.mrb[77].mxu1 }
 0x38e   :  { %4410 = vmatmul.mubr.msk.f32.gmra.mrb[50].mxu0 %vm106_vm0, %v5227_v22 }
 0x38f   :  { %5232 = vtanh.f32 %v4824_v24 }
 0x390   :  { %v1517_v57 = vpop.f32.mrb[78].mxu1 }
 0x391   :  { %v5229_v28 = vpop.eup %5228  ;;  %v4825_v30 = vadd.f32 %v6243_v11, %v1517_v57  ;;  %v1519_v32 = vpop.f32.mrb[79].mxu1 }
 0x392   :  { %4412 = vmatprep.mubr.msk.f32.mxu0 %vm106_vm0, %v5229_v28 }
 0x393   :  { %5234 = vtanh.f32 %v4825_v30 }
 0x394   :  { %v1522_v34 = vpop.f32.mrb[80].mxu1 }
 0x395   :  { %v5231_v36 = vpop.eup %5230  ;;  %v4826_v38 = vadd.f32 %v6243_v11, %v1522_v34  ;;  %v1524_v40 = vpop.f32.mrb[81].mxu1 }
 0x396   :  { %4413 = vmatmul.mubr.msk.f32.gmra.mrb[52].mxu0 %vm106_vm0, %v5231_v36 }
 0x397   :  { %5236 = vtanh.f32 %v4826_v38 }
 0x398   :  { %v1527_v42 = vpop.f32.mrb[82].mxu1 }
 0x399   :  { %v5233_v44 = vpop.eup %5232  ;;  %v4827_v61 = vadd.f32 %v6243_v11, %v1527_v42  ;;  %v1529_v7 = vpop.f32.mrb[83].mxu1 }
 0x39a   :  { %4415 = vmatprep.mubr.msk.f32.mxu0 %vm106_vm0, %v5233_v44 }
 0x39b   :  { %5238 = vtanh.f32 %v4827_v61 }
 0x39c   :  { %v1532_v9 = vpop.f32.mrb[84].mxu1 }
 0x39d   :  { %v5235_v46 = vpop.eup %5234  ;;  %v4828_v13 = vadd.f32 %v6243_v11, %v1532_v9  ;;  %v1534_v48 = vpop.f32.mrb[85].mxu1 }
 0x39e   :  { %4416 = vmatmul.mubr.msk.f32.gmra.mrb[54].mxu0 %vm106_vm0, %v5235_v46 }
 0x39f   :  { %5240 = vtanh.f32 %v4828_v13 }
 0x3a0   :  { %v1537_v15 = vpop.f32.mrb[86].mxu1 }
 0x3a1   :  { %v5237_v17 = vpop.eup %5236  ;;  %v4829_v50 = vadd.f32 %v6243_v11, %v1537_v15  ;;  %v1539_v1 = vpop.f32.mrb[87].mxu1 }
 0x3a2   :  { %4418 = vmatprep.mubr.msk.f32.mxu0 %vm106_vm0, %v5237_v17 }
 0x3a3   :  { %5242 = vtanh.f32 %v4829_v50 }
 0x3a4   :  { %v1542_v19 = vpop.f32.mrb[88].mxu1 }
 0x3a5   :  { %v5239_v21 = vpop.eup %5238  ;;  %v4830_v52 = vadd.f32 %v6243_v11, %v1542_v19  ;;  %v1544_v23 = vpop.f32.mrb[89].mxu1 }
 0x3a6   :  { %4419 = vmatmul.mubr.msk.f32.gmra.mrb[56].mxu0 %vm106_vm0, %v5239_v21 }
 0x3a7   :  { %5244 = vtanh.f32 %v4830_v52 }
 0x3a8   :  { %v1547_v25 = vpop.f32.mrb[90].mxu1 }
 0x3a9   :  { %v5241_v54 = vpop.eup %5240  ;;  %v4831_v27 = vadd.f32 %v6243_v11, %v1547_v25  ;;  %v1549_v29 = vpop.f32.mrb[91].mxu1 }
 0x3aa   :  { %4421 = vmatprep.mubr.msk.f32.mxu0 %vm106_vm0, %v5241_v54 }
 0x3ab   :  { %5246 = vtanh.f32 %v4831_v27 }
 0x3ac   :  { %v1552_v55 = vpop.f32.mrb[92].mxu1 }
 0x3ad   :  { %v5243_v31 = vpop.eup %5242  ;;  %v4832_v33 = vadd.f32 %v6243_v11, %v1552_v55  ;;  %v1554_v56 = vpop.f32.mrb[93].mxu1 }
 0x3ae   :  { %4422 = vmatmul.mubr.msk.f32.gmra.mrb[58].mxu0 %vm106_vm0, %v5243_v31 }
 0x3af   :  { %5248 = vtanh.f32 %v4832_v33 }
 0x3b0   :  { %v1557_v35 = vpop.f32.mrb[94].mxu1 }
 0x3b1   :  { %v5245_v37 = vpop.eup %5244  ;;  %v4833_v58 = vadd.f32 %v6243_v11, %v1557_v35  ;;  %v1559_v39 = vpop.f32.mrb[95].mxu1 }
 0x3b2   :  { %4424 = vmatprep.mubr.msk.f32.mxu0 %vm106_vm0, %v5245_v37 }
 0x3b3   :  { %5250 = vtanh.f32 %v4833_v58 }
 0x3b4   :  { %v1562_v41 = vpop.f32.mrb[96].mxu1 }
 0x3b5   :  { %v5247_v60 = vpop.eup %5246  ;;  %v4834_v62 = vadd.f32 %v6243_v11, %v1562_v41  ;;  %v1564_v43 = vpop.f32.mrb[97].mxu1 }
 0x3b6   :  { %4425 = vmatmul.mubr.msk.f32.gmra.mrb[60].mxu0 %vm106_vm0, %v5247_v60 }
 0x3b7   :  { %5252 = vtanh.f32 %v4834_v62 }
 0x3b8   :  { %v1567_v45 = vpop.f32.mrb[98].mxu1 }
 0x3b9   :  { %v5249_v63 = vpop.eup %5248  ;;  %v4835_v0 = vadd.f32 %v6243_v11, %v1567_v45  ;;  %v1569_v47 = vpop.f32.mrb[99].mxu1 }
 0x3ba   :  { %4427 = vmatprep.mubr.msk.f32.mxu0 %vm106_vm0, %v5249_v63 }
 0x3bb   :  { %5254 = vtanh.f32 %v4835_v0 }
 0x3bc   :  { %v1572_v49 = vpop.f32.mrb[100].mxu1 }
 0x3bd   :  { %v5251_v2 = vpop.eup %5250  ;;  %v4836_v3 = vadd.f32 %v6243_v11, %v1572_v49  ;;  %v1574_v4 = vpop.f32.mrb[101].mxu1 }
 0x3be   :  { %4428 = vmatmul.mubr.msk.f32.gmra.mrb[62].mxu0 %vm106_vm0, %v5251_v2 }
 0x3bf   :  { %5256 = vtanh.f32 %v4836_v3 }
 0x3c0   :  { %v1577_v5 = vpop.f32.mrb[102].mxu1 }
 0x3c1   :  { %v5253_v6 = vpop.eup %5252  ;;  %v4837_v8 = vadd.f32 %v6243_v11, %v1577_v5  ;;  %v1579_v10 = vpop.f32.mrb[103].mxu1 }
 0x3c2   :  { %4430 = vmatprep.mubr.msk.f32.mxu0 %vm106_vm0, %v5253_v6 }
 0x3c3   :  { %5258 = vtanh.f32 %v4837_v8 }
 0x3c4   :  { %v1582_v51 = vpop.f32.mrb[104].mxu1 }
 0x3c5   :  { %v5255_v53 = vpop.eup %5254  ;;  %v4838_v12 = vadd.f32 %v6243_v11, %v1582_v51  ;;  %v1584_v14 = vpop.f32.mrb[105].mxu1 }
 0x3c6   :  { %4431 = vmatmul.mubr.msk.f32.gmra.mrb[64].mxu0 %vm106_vm0, %v5255_v53 }
 0x3c7   :  { %5260 = vtanh.f32 %v4838_v12 }
 0x3c8   :  { %v1587_v16 = vpop.f32.mrb[106].mxu1 }
 0x3c9   :  { %v5257_v18 = vpop.eup %5256  ;;  %v4839_v20 = vadd.f32 %v6243_v11, %v1587_v16  ;;  %v1589_v22 = vpop.f32.mrb[107].mxu1 }
 0x3ca   :  { %4433 = vmatprep.mubr.msk.f32.mxu0 %vm106_vm0, %v5257_v18 }
 0x3cb   :  { %5262 = vtanh.f32 %v4839_v20 }
 0x3cc   :  { %v1592_v24 = vpop.f32.mrb[108].mxu1 }
 0x3cd   :  { %v5259_v26 = vpop.eup %5258  ;;  %v4840_v57 = vadd.f32 %v6243_v11, %v1592_v24  ;;  %v1594_v28 = vpop.f32.mrb[109].mxu1 }
 0x3ce   :  { %4434 = vmatmul.mubr.msk.f32.gmra.mrb[66].mxu0 %vm106_vm0, %v5259_v26 }
 0x3cf   :  { %5264 = vtanh.f32 %v4840_v57 }
 0x3d0   :  { %v1597_v30 = vpop.f32.mrb[110].mxu1 }
 0x3d1   :  { %v5261_v32 = vpop.eup %5260  ;;  %v4841_v34 = vadd.f32 %v6243_v11, %v1597_v30  ;;  %v1599_v36 = vpop.f32.mrb[111].mxu1 }
 0x3d2   :  { %4436 = vmatprep.mubr.msk.f32.mxu0 %vm106_vm0, %v5261_v32 }
 0x3d3   :  { %5266 = vtanh.f32 %v4841_v34 }
 0x3d4   :  { %v1602_v38 = vpop.f32.mrb[112].mxu1 }
 0x3d5   :  { %v5263_v40 = vpop.eup %5262  ;;  %v4842_v42 = vadd.f32 %v6243_v11, %v1602_v38  ;;  %v1604_v44 = vpop.f32.mrb[113].mxu1 }
 0x3d6   :  { %4437 = vmatmul.mubr.msk.f32.gmra.mrb[68].mxu0 %vm106_vm0, %v5263_v40 }
 0x3d7   :  { %5268 = vtanh.f32 %v4842_v42 }
 0x3d8   :  { %v1607_v61 = vpop.f32.mrb[114].mxu1 }
 0x3d9   :  { %v5265_v7 = vpop.eup %5264  ;;  %v4843_v9 = vadd.f32 %v6243_v11, %v1607_v61  ;;  %v1609_v46 = vpop.f32.mrb[115].mxu1 }
 0x3da   :  { %4439 = vmatprep.mubr.msk.f32.mxu0 %vm106_vm0, %v5265_v7 }
 0x3db   :  { %5270 = vtanh.f32 %v4843_v9 }
 0x3dc   :  { %v1612_v13 = vpop.f32.mrb[116].mxu1 }
 0x3dd   :  { %v5267_v48 = vpop.eup %5266  ;;  %v4844_v15 = vadd.f32 %v6243_v11, %v1612_v13  ;;  %v1614_v17 = vpop.f32.mrb[117].mxu1 }
 0x3de   :  { %4440 = vmatmul.mubr.msk.f32.gmra.mrb[70].mxu0 %vm106_vm0, %v5267_v48 }
 0x3df   :  { %5272 = vtanh.f32 %v4844_v15 }
 0x3e0   :  { %v1617_v50 = vpop.f32.mrb[118].mxu1 }
 0x3e1   :  { %v5269_v1 = vpop.eup %5268  ;;  %v4845_v19 = vadd.f32 %v6243_v11, %v1617_v50  ;;  %v1619_v21 = vpop.f32.mrb[119].mxu1 }
 0x3e2   :  { %4442 = vmatprep.mubr.msk.f32.mxu0 %vm106_vm0, %v5269_v1 }
 0x3e3   :  { %5274 = vtanh.f32 %v4845_v19 }
 0x3e4   :  { %v1622_v52 = vpop.f32.mrb[120].mxu1 }
 0x3e5   :  { %v5271_v23 = vpop.eup %5270  ;;  %v4846_v25 = vadd.f32 %v6243_v11, %v1622_v52  ;;  %v1624_v54 = vpop.f32.mrb[121].mxu1 }
 0x3e6   :  { %4443 = vmatmul.mubr.msk.f32.gmra.mrb[72].mxu0 %vm106_vm0, %v5271_v23 }
 0x3e7   :  { %5276 = vtanh.f32 %v4846_v25 }
 0x3e8   :  { %v1627_v27 = vpop.f32.mrb[122].mxu1 }
 0x3e9   :  { %v5273_v29 = vpop.eup %5272  ;;  %v4847_v55 = vadd.f32 %v6243_v11, %v1627_v27  ;;  %v1629_v31 = vpop.f32.mrb[123].mxu1 }
 0x3ea   :  { %4445 = vmatprep.mubr.msk.f32.mxu0 %vm106_vm0, %v5273_v29 }
 0x3eb   :  { %5278 = vtanh.f32 %v4847_v55 }
 0x3ec   :  { %v1632_v33 = vpop.f32.mrb[124].mxu1 }
 0x3ed   :  { %v5275_v56 = vpop.eup %5274  ;;  %v4848_v35 = vadd.f32 %v6243_v11, %v1632_v33  ;;  %v1634_v37 = vpop.f32.mrb[125].mxu1 }
 0x3ee   :  { %4446 = vmatmul.mubr.msk.f32.gmra.mrb[74].mxu0 %vm106_vm0, %v5275_v56 }
 0x3ef   :  { %5280 = vtanh.f32 %v4848_v35 }
 0x3f0   :  { %v1637_v58 = vpop.f32.mrb[126].mxu1 }
 0x3f1   :  { %v5277_v39 = vpop.eup %5276  ;;  %v4849_v41 = vadd.f32 %v6243_v11, %v1637_v58  ;;  %v1639_v60 = vpop.f32.mrb[127].mxu1 }
 0x3f2   :  { %4448 = vmatprep.mubr.msk.f32.mxu0 %vm106_vm0, %v5277_v39 }
 0x3f3   :  { %5282 = vtanh.f32 %v4849_v41 }
 0x3f4   :  { %v1642_v62 = vpop.f32.mrb[128].mxu1 }
 0x3f5   :  { %v5279_v43 = vpop.eup %5278  ;;  %v4850_v45 = vadd.f32 %v6243_v11, %v1642_v62  ;;  %v1644_v63 = vpop.f32.mrb[129].mxu1 }
 0x3f6   :  { %4449 = vmatmul.mubr.msk.f32.gmra.mrb[76].mxu0 %vm106_vm0, %v5279_v43 }
 0x3f7   :  { %5284 = vtanh.f32 %v4850_v45 }
 0x3f8   :  { %v1647_v0 = vpop.f32.mrb[130].mxu1 }
 0x3f9   :  { %v5281_v47 = vpop.eup %5280  ;;  %v4851_v49 = vadd.f32 %v6243_v11, %v1647_v0  ;;  %v1649_v2 = vpop.f32.mrb[131].mxu1 }
 0x3fa   :  { %4451 = vmatprep.mubr.msk.f32.mxu0 %vm106_vm0, %v5281_v47 }
 0x3fb   :  { %5286 = vtanh.f32 %v4851_v49 }
 0x3fc   :  { %v1652_v3 = vpop.f32.mrb[132].mxu1 }
 0x3fd   :  { %v5283_v4 = vpop.eup %5282  ;;  %v4852_v5 = vadd.f32 %v6243_v11, %v1652_v3  ;;  %v1654_v6 = vpop.f32.mrb[133].mxu1 }
 0x3fe   :  { %4452 = vmatmul.mubr.msk.f32.gmra.mrb[78].mxu0 %vm106_vm0, %v5283_v4 }
 0x3ff   :  { %5288 = vtanh.f32 %v4852_v5 }
 0x400   :  { %v1657_v8 = vpop.f32.mrb[134].mxu1 }
 0x401   :  { %v5285_v10 = vpop.eup %5284  ;;  %v4853_v51 = vadd.f32 %v6243_v11, %v1657_v8  ;;  %v1659_v53 = vpop.f32.mrb[135].mxu1 }
 0x402   :  { %4454 = vmatprep.mubr.msk.f32.mxu0 %vm106_vm0, %v5285_v10 }
 0x403   :  { %5290 = vtanh.f32 %v4853_v51 }
 0x404   :  { %v1662_v12 = vpop.f32.mrb[136].mxu1 }
 0x405   :  { %v5287_v14 = vpop.eup %5286  ;;  %v4854_v16 = vadd.f32 %v6243_v11, %v1662_v12  ;;  %v1664_v18 = vpop.f32.mrb[137].mxu1 }
 0x406   :  { %4455 = vmatmul.mubr.msk.f32.gmra.mrb[80].mxu0 %vm106_vm0, %v5287_v14  ;;  %v5444_v18 = vld [vmem:[#allocation2 + $0x8] sm:$0xff] }
 0x407   :  { %5292 = vtanh.f32 %v4854_v16 }
 0x408   :  { %v1667_v20 = vpop.f32.mrb[138].mxu1 }
 0x409   :  { %v5289_v22 = vpop.eup %5288  ;;  %v4855_v24 = vadd.f32 %v6243_v11, %v1667_v20  ;;  %v1669_v26 = vpop.f32.mrb[139].mxu1 }
 0x40a   :  { %4457 = vmatprep.mubr.msk.f32.mxu0 %vm106_vm0, %v5289_v22 }
 0x40b   :  { %5294 = vtanh.f32 %v4855_v24 }
 0x40c   :  { %v1672_v57 = vpop.f32.mrb[140].mxu1 }
 0x40d   :  { %v5291_v28 = vpop.eup %5290  ;;  %v4856_v30 = vadd.f32 %v6243_v11, %v1672_v57  ;;  %v1674_v32 = vpop.f32.mrb[141].mxu1 }
 0x40e   :  { %4458 = vmatmul.mubr.msk.f32.gmra.mrb[82].mxu0 %vm106_vm0, %v5291_v28 }
 0x40f   :  { %5296 = vtanh.f32 %v4856_v30 }
 0x410   :  { %v1677_v34 = vpop.f32.mrb[142].mxu1 }
 0x411   :  { %v5293_v36 = vpop.eup %5292  ;;  %v4857_v38 = vadd.f32 %v6243_v11, %v1677_v34  ;;  %v1679_v40 = vpop.f32.mrb[143].mxu1 }
 0x412   :  { %4460 = vmatprep.mubr.msk.f32.mxu0 %vm106_vm0, %v5293_v36 }
 0x413   :  { %5298 = vtanh.f32 %v4857_v38 }
 0x414   :  { %v1682_v42 = vpop.f32.mrb[144].mxu1 }
 0x415   :  { %v5295_v44 = vpop.eup %5294  ;;  %v4858_v61 = vadd.f32 %v6243_v11, %v1682_v42  ;;  %v1684_v7 = vpop.f32.mrb[145].mxu1 }
 0x416   :  { %4461 = vmatmul.mubr.msk.f32.gmra.mrb[84].mxu0 %vm106_vm0, %v5295_v44 }
 0x417   :  { %5300 = vtanh.f32 %v4858_v61 }
 0x418   :  { %v1687_v9 = vpop.f32.mrb[146].mxu1 }
 0x419   :  { %v5297_v46 = vpop.eup %5296  ;;  %v4859_v13 = vadd.f32 %v6243_v11, %v1687_v9  ;;  %v1689_v48 = vpop.f32.mrb[147].mxu1 }
 0x41a   :  { %v4384_v15 = vpop.f32.mrb[32].mxu0  ;;  %4463 = vmatprep.mubr.msk.f32.mxu0 %vm106_vm0, %v5297_v46 }
 0x41b   :  { %v2047_v17 = vpop.f32.mrb[33].mxu0  ;;  %5302 = vtanh.f32 %v4859_v13 }
 0x41c   :  { %v4695_v50 = vpack.c.bf16 %v4384_v15, %v2047_v17  ;;  %v1692_v1 = vpop.f32.mrb[148].mxu1 }
 0x41d   :  { %v5299_v19 = vpop.eup %5298  ;;  %v4860_v21 = vadd.f32 %v6243_v11, %v1692_v1  ;;  %v1694_v52 = vpop.f32.mrb[149].mxu1 }
 0x41e   :  { %4696 = vmatpush1.bf16.msra.mxu0 %v4695_v50 }
 0x41f   :  { %4464 = vmatmul.mubr.msk.f32.gmra.mrb[86].mxu0 %vm106_vm0, %v5299_v19  ;;  %4697 = vmatprep.subr.bf16.mxu0 %v5725_v59  ;;  %5304 = vtanh.f32 %v4860_v21 }
 0x420   :  { %v1697_v23 = vpop.f32.mrb[150].mxu1 }
 0x421   :  { %v5301_v25 = vpop.eup %5300  ;;  %v4861_v54 = vadd.f32 %v6243_v11, %v1697_v23  ;;  %v1699_v27 = vpop.f32.mrb[151].mxu1 }
 0x422   :  { %v4387_v29 = vpop.f32.mrb[34].mxu0  ;;  %4466 = vmatprep.mubr.msk.f32.mxu0 %vm106_vm0, %v5301_v25 }
 0x423   :  { %v2057_v55 = vpop.f32.mrb[35].mxu0  ;;  %5306 = vtanh.f32 %v4861_v54 }
 0x424   :  { %v4698_v31 = vpack.c.bf16 %v4387_v29, %v2057_v55  ;;  %v1702_v33 = vpop.f32.mrb[152].mxu1 }
 0x425   :  { %v5303_v56 = vpop.eup %5302  ;;  %v4862_v35 = vadd.f32 %v6243_v11, %v1702_v33  ;;  %v1704_v37 = vpop.f32.mrb[153].mxu1 }
 0x426   :  { %4699 = vmatpush1.bf16.msra.mxu0 %v4698_v31  ;;  %v5445_v31 = vld [vmem:[#allocation2] sm:$0xff] }
 0x427   :  { %4467 = vmatmul.mubr.msk.f32.gmra.mrb[88].mxu0 %vm106_vm0, %v5303_v56  ;;  %4700 = vmatprep.subr.bf16.mxu0 %v5725_v59  ;;  %5308 = vtanh.f32 %v4862_v35  ;;  %v5446_v56 = vld [vmem:[#allocation2 + $0x28] sm:$0xff] }
 0x428   :  { %v1707_v58 = vpop.f32.mrb[154].mxu1 }
 0x429   :  { %v5305_v39 = vpop.eup %5304  ;;  %v4863_v41 = vadd.f32 %v6243_v11, %v1707_v58  ;;  %v1709_v60 = vpop.f32.mrb[155].mxu1  ;;  %v5447_v58 = vld [vmem:[#allocation2 + $0x20] sm:$0xff] }
 0x42a   :  { %v4390_v62 = vpop.f32.mrb[36].mxu0  ;;  %4469 = vmatprep.mubr.msk.f32.mxu0 %vm106_vm0, %v5305_v39  ;;  %v5448_v39 = vld [vmem:[#allocation2 + $0x48] sm:$0xff] }
 0x42b   :  { %v2067_v43 = vpop.f32.mrb[37].mxu0  ;;  %5310 = vtanh.f32 %v4863_v41  ;;  %v5449_v41 = vld [vmem:[#allocation2 + $0x40] sm:$0xff] }
 0x42c   :  { %v4701_v45 = vpack.c.bf16 %v4390_v62, %v2067_v43  ;;  %v1712_v63 = vpop.f32.mrb[156].mxu1  ;;  %v5450_v62 = vld [vmem:[#allocation2 + $0x68] sm:$0xff] }
 0x42d   :  { %v5307_v0 = vpop.eup %5306  ;;  %v4864_v47 = vadd.f32 %v6243_v11, %v1712_v63  ;;  %v1714_v49 = vpop.f32.mrb[157].mxu1  ;;  %v5451_v63 = vld [vmem:[#allocation2 + $0x60] sm:$0xff] }
 0x42e   :  { %4702 = vmatpush1.bf16.msra.mxu0 %v4701_v45 }
 0x42f   :  { %4470 = vmatmul.mubr.msk.f32.gmra.mrb[90].mxu0 %vm106_vm0, %v5307_v0  ;;  %4703 = vmatprep.subr.bf16.mxu0 %v5725_v59  ;;  %5312 = vtanh.f32 %v4864_v47  ;;  %v5452_v0 = vld [vmem:[#allocation2 + $0x88] sm:$0xff]  ;;  %v5453_v47 = vld [vmem:[#allocation2 + $0x80] sm:$0xff] }
 0x430   :  { %v1717_v2 = vpop.f32.mrb[158].mxu1 }
 0x431   :  { %v5309_v3 = vpop.eup %5308  ;;  %v4865_v4 = vadd.f32 %v6243_v11, %v1717_v2  ;;  %v1719_v5 = vpop.f32.mrb[159].mxu1  ;;  %v5454_v2 = vld [vmem:[#allocation2 + $0xa8] sm:$0xff] }
 0x432   :  { %v4393_v6 = vpop.f32.mrb[38].mxu0  ;;  %4472 = vmatprep.mubr.msk.f32.mxu0 %vm106_vm0, %v5309_v3  ;;  %v5455_v5 = vld [vmem:[#allocation2 + $0xa0] sm:$0xff] }
 0x433   :  { %v2077_v8 = vpop.f32.mrb[39].mxu0  ;;  %5314 = vtanh.f32 %v4865_v4 }
 0x434   :  { %v4704_v10 = vpack.c.bf16 %v4393_v6, %v2077_v8  ;;  %v5456_v6 = vld [vmem:[#allocation2 + $0xc8] sm:$0xff]  ;;  %v5457_v8 = vld [vmem:[#allocation2 + $0xc0] sm:$0xff] }
 0x435   :  { %v5311_v51 = vpop.eup %5310 }
 0x436   :  { %4705 = vmatpush1.bf16.msra.mxu0 %v4704_v10 }
 0x437   :  { %4473 = vmatmul.mubr.msk.f32.gmra.mrb[92].mxu0 %vm106_vm0, %v5311_v51  ;;  %4706 = vmatprep.subr.bf16.mxu0 %v5725_v59  ;;  %v5458_v51 = vld [vmem:[#allocation2 + $0xe8] sm:$0xff] }
 0x439   :  { %v5313_v53 = vpop.eup %5312  ;;  %v4396_v12 = vpop.f32.mrb[40].mxu0 }
 0x43a   :  { %v2087_v14 = vpop.f32.mrb[41].mxu0  ;;  %4475 = vmatprep.mubr.msk.f32.mxu0 %vm106_vm0, %v5313_v53 }
 0x43b   :  { %v4707_v16 = vpack.c.bf16 %v4396_v12, %v2087_v14  ;;  %v5459_v14 = vld [vmem:[#allocation2 + $0xe0] sm:$0xff] }
 0x43d   :  { %v5315_v11 = vpop.eup %5314  ;;  %4708 = vmatpush1.bf16.msra.mxu0 %v4707_v16  ;;  %v5460_v16 = vld [vmem:[#allocation2 + $0x108] sm:$0xff] }
 0x43e   :  { %4476 = vmatmul.mubr.msk.f32.gmra.mrb[94].mxu0 %vm106_vm0, %v5315_v11  ;;  %4709 = vmatprep.subr.bf16.mxu0 %v5725_v59  ;;  %v5461_v11 = vld [vmem:[#allocation2 + $0x100] sm:$0xff] }
 0x43f   :  { %2437 = vmatprep.mubr.f32.mxu0 %v5444_v18 }
 0x441   :  { %v4399_v20 = vpop.f32.mrb[42].mxu0 }
 0x442   :  { %v2097_v22 = vpop.f32.mrb[43].mxu0 }
 0x443   :  { %v4710_v24 = vpack.c.bf16 %v4399_v20, %v2097_v22  ;;  %v5462_v20 = vld [vmem:[#allocation2 + $0x128] sm:$0xff] }
 0x445   :  { %4711 = vmatpush1.bf16.msra.mxu0 %v4710_v24 }
 0x446   :  { %4712 = vmatprep.subr.bf16.mxu0 %v5725_v59 }
 0x449   :  { %v4402_v26 = vpop.f32.mrb[44].mxu0 }
 0x44a   :  { %v2107_v57 = vpop.f32.mrb[45].mxu0 }
 0x44b   :  { %v4713_v28 = vpack.c.bf16 %v4402_v26, %v2107_v57  ;;  %v5463_v26 = vld [vmem:[#allocation2 + $0x120] sm:$0xff]  ;;  %v5464_v57 = vld [vmem:[#allocation2 + $0x148] sm:$0xff] }
 0x44d   :  { %4714 = vmatpush1.bf16.msra.mxu0 %v4713_v28  ;;  %v5465_v28 = vld [vmem:[#allocation2 + $0x140] sm:$0xff] }
 0x44e   :  { %4715 = vmatprep.subr.bf16.mxu0 %v5725_v59 }
 0x451   :  { %v4405_v30 = vpop.f32.mrb[46].mxu0 }
 0x452   :  { %v2117_v32 = vpop.f32.mrb[47].mxu0 }
 0x453   :  { %v4716_v34 = vpack.c.bf16 %v4405_v30, %v2117_v32  ;;  %v5466_v32 = vld [vmem:[#allocation2 + $0x168] sm:$0xff] }
 0x455   :  { %4717 = vmatpush1.bf16.msra.mxu0 %v4716_v34 }
 0x456   :  { %4718 = vmatprep.subr.bf16.mxu0 %v5725_v59 }
 0x459   :  { %v4408_v36 = vpop.f32.mrb[48].mxu0 }
 0x45a   :  { %v2127_v38 = vpop.f32.mrb[49].mxu0 }
 0x45b   :  { %v4719_v40 = vpack.c.bf16 %v4408_v36, %v2127_v38  ;;  %v5467_v38 = vld [vmem:[#allocation2 + $0x160] sm:$0xff] }
 0x45d   :  { %4720 = vmatpush1.bf16.msra.mxu0 %v4719_v40  ;;  %v5468_v40 = vld [vmem:[#allocation2 + $0x188] sm:$0xff] }
 0x45e   :  { %4721 = vmatprep.subr.bf16.mxu0 %v5725_v59 }
 0x461   :  { %v4411_v42 = vpop.f32.mrb[50].mxu0 }
 0x462   :  { %v2137_v44 = vpop.f32.mrb[51].mxu0 }
 0x463   :  { %v4722_v61 = vpack.c.bf16 %v4411_v42, %v2137_v44  ;;  %v5469_v42 = vld [vmem:[#allocation2 + $0x180] sm:$0xff] }
 0x465   :  { %4723 = vmatpush1.bf16.msra.mxu0 %v4722_v61  ;;  %v5470_v61 = vld [vmem:[#allocation2 + $0x1a8] sm:$0xff] }
 0x466   :  { %4724 = vmatprep.subr.bf16.mxu0 %v5725_v59 }
 0x469   :  { %v4414_v7 = vpop.f32.mrb[52].mxu0 }
 0x46a   :  { %v2147_v9 = vpop.f32.mrb[53].mxu0 }
 0x46b   :  { %v4725_v46 = vpack.c.bf16 %v4414_v7, %v2147_v9 }
 0x46d   :  { %4726 = vmatpush1.bf16.msra.mxu0 %v4725_v46  ;;  %v5471_v46 = vld [vmem:[#allocation2 + $0x1a0] sm:$0xff] }
 0x46e   :  { %4727 = vmatprep.subr.bf16.mxu0 %v5725_v59 }
 0x471   :  { %v4417_v13 = vpop.f32.mrb[54].mxu0 }
 0x472   :  { %v2157_v48 = vpop.f32.mrb[55].mxu0 }
 0x473   :  { %v4728_v15 = vpack.c.bf16 %v4417_v13, %v2157_v48  ;;  %v5472_v13 = vld [vmem:[#allocation2 + $0x1c8] sm:$0xff]  ;;  %v5473_v48 = vld [vmem:[#allocation2 + $0x1c0] sm:$0xff] }
 0x475   :  { %4729 = vmatpush1.bf16.msra.mxu0 %v4728_v15 }
 0x476   :  { %4730 = vmatprep.subr.bf16.mxu0 %v5725_v59 }
 0x479   :  { %v4420_v17 = vpop.f32.mrb[56].mxu0 }
 0x47a   :  { %v2167_v50 = vpop.f32.mrb[57].mxu0 }
 0x47b   :  { %v4731_v1 = vpack.c.bf16 %v4420_v17, %v2167_v50  ;;  %v5474_v17 = vld [vmem:[#allocation2 + $0x1e8] sm:$0xff] }
 0x47d   :  { %4732 = vmatpush1.bf16.msra.mxu0 %v4731_v1 }
 0x47e   :  { %4733 = vmatprep.subr.bf16.mxu0 %v5725_v59 }
 0x481   :  { %v4423_v19 = vpop.f32.mrb[58].mxu0 }
 0x482   :  { %v2177_v21 = vpop.f32.mrb[59].mxu0 }
 0x483   :  { %v4734_v52 = vpack.c.bf16 %v4423_v19, %v2177_v21  ;;  %v5475_v19 = vld [vmem:[#allocation2 + $0x1e0] sm:$0xff]  ;;  %v5476_v21 = vld [vmem:[#allocation2 + $0x208] sm:$0xff] }
 0x485   :  { %4735 = vmatpush1.bf16.msra.mxu0 %v4734_v52  ;;  %v5477_v52 = vld [vmem:[#allocation2 + $0x200] sm:$0xff] }
 0x486   :  { %4736 = vmatprep.subr.bf16.mxu0 %v5725_v59 }
 0x489   :  { %v4426_v23 = vpop.f32.mrb[60].mxu0 }
 0x48a   :  { %v2187_v25 = vpop.f32.mrb[61].mxu0 }
 0x48b   :  { %v4737_v54 = vpack.c.bf16 %v4426_v23, %v2187_v25  ;;  %v5478_v25 = vld [vmem:[#allocation2 + $0x228] sm:$0xff] }
 0x48d   :  { %4738 = vmatpush1.bf16.msra.mxu0 %v4737_v54 }
 0x48e   :  { %4739 = vmatprep.subr.bf16.mxu0 %v5725_v59 }
 0x491   :  { %v4429_v27 = vpop.f32.mrb[62].mxu0 }
 0x492   :  { %v2197_v29 = vpop.f32.mrb[63].mxu0 }
 0x493   :  { %v4740_v55 = vpack.c.bf16 %v4429_v27, %v2197_v29  ;;  %v5479_v29 = vld [vmem:[#allocation2 + $0x220] sm:$0xff] }
 0x495   :  { %4741 = vmatpush1.bf16.msra.mxu0 %v4740_v55  ;;  %v5480_v55 = vld [vmem:[#allocation2 + $0x248] sm:$0xff] }
 0x496   :  { %4742 = vmatprep.subr.bf16.mxu0 %v5725_v59 }
 0x498   :  { %2438 = vmatmul.mubr.f32.vlgmr.msra.gmra.mrb[96].mxu0 %v5445_v31  ;;  %v5481_v31 = vld [vmem:[#allocation2 + $0x240] sm:$0xff] }
 0x499   :  { %v4432_v33 = vpop.f32.mrb[64].mxu0  ;;  %2442 = vmatprep.mubr.f32.mxu0 %v5446_v56  ;;  %v5482_v56 = vld [vmem:[#allocation2 + $0x268] sm:$0xff] }
 0x49a   :  { %v2207_v35 = vpop.f32.mrb[65].mxu0 }
 0x49b   :  { %v4743_v37 = vpack.c.bf16 %v4432_v33, %v2207_v35 }
 0x49c   :  { %2443 = vmatmul.mubr.f32.gmra.mrb[98].mxu0 %v5447_v58  ;;  %v5483_v58 = vld [vmem:[#allocation2 + $0x260] sm:$0xff] }
 0x49d   :  { %4744 = vmatpush1.bf16.msra.mxu0 %v4743_v37  ;;  %2447 = vmatprep.mubr.f32.mxu0 %v5448_v39  ;;  %v5484_v39 = vld [vmem:[#allocation2 + $0x288] sm:$0xff] }
 0x49e   :  { %4745 = vmatprep.subr.bf16.mxu0 %v5725_v59 }
 0x4a0   :  { %2448 = vmatmul.mubr.f32.gmra.mrb[100].mxu0 %v5449_v41  ;;  %v5485_v41 = vld [vmem:[#allocation2 + $0x280] sm:$0xff] }
 0x4a1   :  { %v4435_v60 = vpop.f32.mrb[66].mxu0  ;;  %2452 = vmatprep.mubr.f32.mxu0 %v5450_v62  ;;  %v5486_v62 = vld [vmem:[#allocation2 + $0x2a8] sm:$0xff] }
 0x4a2   :  { %v2217_v43 = vpop.f32.mrb[67].mxu0 }
 0x4a3   :  { %v4746_v45 = vpack.c.bf16 %v4435_v60, %v2217_v43 }
 0x4a4   :  { %2453 = vmatmul.mubr.f32.gmra.mrb[102].mxu0 %v5451_v63  ;;  %v5487_v63 = vld [vmem:[#allocation2 + $0x2a0] sm:$0xff] }
 0x4a5   :  { %4747 = vmatpush1.bf16.msra.mxu0 %v4746_v45  ;;  %2457 = vmatprep.mubr.f32.mxu0 %v5452_v0  ;;  %v5488_v0 = vld [vmem:[#allocation2 + $0x2c8] sm:$0xff] }
 0x4a6   :  { %4748 = vmatprep.subr.bf16.mxu0 %v5725_v59 }
 0x4a8   :  { %2458 = vmatmul.mubr.f32.gmra.mrb[104].mxu0 %v5453_v47  ;;  %v5489_v47 = vld [vmem:[#allocation2 + $0x2c0] sm:$0xff] }
 0x4a9   :  { %v4438_v49 = vpop.f32.mrb[68].mxu0  ;;  %2462 = vmatprep.mubr.f32.mxu0 %v5454_v2  ;;  %v5490_v2 = vld [vmem:[#allocation2 + $0x2e8] sm:$0xff] }
 0x4aa   :  { %v2227_v3 = vpop.f32.mrb[69].mxu0 }
 0x4ab   :  { %v4749_v4 = vpack.c.bf16 %v4438_v49, %v2227_v3 }
 0x4ac   :  { %2463 = vmatmul.mubr.f32.gmra.mrb[106].mxu0 %v5455_v5  ;;  %v5491_v5 = vld [vmem:[#allocation2 + $0x2e0] sm:$0xff] }
 0x4ad   :  { %4750 = vmatpush1.bf16.msra.mxu0 %v4749_v4  ;;  %2467 = vmatprep.mubr.f32.mxu0 %v5456_v6  ;;  %v5492_v6 = vld [vmem:[#allocation2 + $0x308] sm:$0xff] }
 0x4ae   :  { %4751 = vmatprep.subr.bf16.mxu0 %v5725_v59 }
 0x4b0   :  { %2468 = vmatmul.mubr.f32.gmra.mrb[108].mxu0 %v5457_v8  ;;  %v5493_v8 = vld [vmem:[#allocation2 + $0x300] sm:$0xff] }
 0x4b1   :  { %v4441_v10 = vpop.f32.mrb[70].mxu0  ;;  %2472 = vmatprep.mubr.f32.mxu0 %v5458_v51  ;;  %v5494_v51 = vld [vmem:[#allocation2 + $0x328] sm:$0xff] }
 0x4b2   :  { %v2237_v53 = vpop.f32.mrb[71].mxu0 }
 0x4b3   :  { %v4752_v12 = vpack.c.bf16 %v4441_v10, %v2237_v53 }
 0x4b4   :  { %2473 = vmatmul.mubr.f32.gmra.mrb[110].mxu0 %v5459_v14  ;;  %v5495_v14 = vld [vmem:[#allocation2 + $0x320] sm:$0xff] }
 0x4b5   :  { %4753 = vmatpush1.bf16.msra.mxu0 %v4752_v12  ;;  %2477 = vmatprep.mubr.f32.mxu0 %v5460_v16  ;;  %v5496_v16 = vld [vmem:[#allocation2 + $0x348] sm:$0xff] }
 0x4b6   :  { %4754 = vmatprep.subr.bf16.mxu0 %v5725_v59 }
 0x4b8   :  { %2478 = vmatmul.mubr.f32.gmra.mrb[112].mxu0 %v5461_v11  ;;  %v5497_v11 = vld [vmem:[#allocation2 + $0x340] sm:$0xff] }
 0x4b9   :  { %v4444_v18 = vpop.f32.mrb[72].mxu0  ;;  %2482 = vmatprep.mubr.f32.mxu0 %v5462_v20  ;;  %v5498_v20 = vld [vmem:[#allocation2 + $0x368] sm:$0xff] }
 0x4ba   :  { %v2247_v22 = vpop.f32.mrb[73].mxu0 }
 0x4bb   :  { %v4755_v24 = vpack.c.bf16 %v4444_v18, %v2247_v22 }
 0x4bc   :  { %2483 = vmatmul.mubr.f32.gmra.mrb[114].mxu0 %v5463_v26  ;;  %v5499_v26 = vld [vmem:[#allocation2 + $0x360] sm:$0xff] }
 0x4bd   :  { %4756 = vmatpush1.bf16.msra.mxu0 %v4755_v24  ;;  %2487 = vmatprep.mubr.f32.mxu0 %v5464_v57  ;;  %v5500_v57 = vld [vmem:[#allocation2 + $0x388] sm:$0xff] }
 0x4be   :  { %4757 = vmatprep.subr.bf16.mxu0 %v5725_v59 }
 0x4c0   :  { %2488 = vmatmul.mubr.f32.gmra.mrb[116].mxu0 %v5465_v28  ;;  %v5501_v28 = vld [vmem:[#allocation2 + $0x380] sm:$0xff] }
 0x4c1   :  { %v4447_v30 = vpop.f32.mrb[74].mxu0  ;;  %2492 = vmatprep.mubr.f32.mxu0 %v5466_v32  ;;  %v5502_v32 = vld [vmem:[#allocation2 + $0x3a8] sm:$0xff] }
 0x4c2   :  { %v2257_v34 = vpop.f32.mrb[75].mxu0 }
 0x4c3   :  { %v4758_v36 = vpack.c.bf16 %v4447_v30, %v2257_v34 }
 0x4c4   :  { %2493 = vmatmul.mubr.f32.gmra.mrb[118].mxu0 %v5467_v38  ;;  %v5503_v38 = vld [vmem:[#allocation2 + $0x3a0] sm:$0xff] }
 0x4c5   :  { %4759 = vmatpush1.bf16.msra.mxu0 %v4758_v36  ;;  %2497 = vmatprep.mubr.f32.mxu0 %v5468_v40  ;;  %v5504_v40 = vld [vmem:[#allocation2 + $0x3c8] sm:$0xff] }
 0x4c6   :  { %4760 = vmatprep.subr.bf16.mxu0 %v5725_v59 }
 0x4c8   :  { %2498 = vmatmul.mubr.f32.gmra.mrb[120].mxu0 %v5469_v42  ;;  %v5505_v42 = vld [vmem:[#allocation2 + $0x3c0] sm:$0xff] }
 0x4c9   :  { %v4450_v44 = vpop.f32.mrb[76].mxu0  ;;  %2502 = vmatprep.mubr.f32.mxu0 %v5470_v61  ;;  %v5506_v61 = vld [vmem:[#allocation2 + $0x3e8] sm:$0xff] }
 0x4ca   :  { %v2267_v7 = vpop.f32.mrb[77].mxu0 }
 0x4cb   :  { %v4761_v9 = vpack.c.bf16 %v4450_v44, %v2267_v7 }
 0x4cc   :  { %2503 = vmatmul.mubr.f32.gmra.mrb[122].mxu0 %v5471_v46  ;;  %v5507_v46 = vld [vmem:[#allocation2 + $0x3e0] sm:$0xff] }
 0x4cd   :  { %4762 = vmatpush1.bf16.msra.mxu0 %v4761_v9  ;;  %2507 = vmatprep.mubr.f32.mxu0 %v5472_v13  ;;  %v5508_v13 = vld [vmem:[#allocation2 + $0x408] sm:$0xff] }
 0x4ce   :  { %4763 = vmatprep.subr.bf16.mxu0 %v5725_v59 }
 0x4d0   :  { %2508 = vmatmul.mubr.f32.gmra.mrb[124].mxu0 %v5473_v48  ;;  %v5509_v48 = vld [vmem:[#allocation2 + $0x400] sm:$0xff] }
 0x4d1   :  { %v4453_v15 = vpop.f32.mrb[78].mxu0  ;;  %2512 = vmatprep.mubr.f32.mxu0 %v5474_v17  ;;  %v5511_v17 = vld [vmem:[#allocation2 + $0x420] sm:$0xff] }
 0x4d2   :  { %v2277_v50 = vpop.f32.mrb[79].mxu0 }
 0x4d3   :  { %v4764_v1 = vpack.c.bf16 %v4453_v15, %v2277_v50  ;;  %v5510_v15 = vld [vmem:[#allocation2 + $0x428] sm:$0xff] }
 0x4d4   :  { %2513 = vmatmul.mubr.f32.gmra.mrb[126].mxu0 %v5475_v19  ;;  %v5512_v50 = vld [vmem:[#allocation2 + $0x448] sm:$0xff]  ;;  %v5515_v19 = vld [vmem:[#allocation2 + $0x460] sm:$0xff] }
 0x4d5   :  { %4765 = vmatpush1.bf16.msra.mxu0 %v4764_v1  ;;  %2517 = vmatprep.mubr.f32.mxu0 %v5476_v21  ;;  %v5514_v1 = vld [vmem:[#allocation2 + $0x468] sm:$0xff] }
 0x4d6   :  { %4766 = vmatprep.subr.bf16.mxu0 %v5725_v59  ;;  %v5516_v21 = vld [vmem:[#allocation2 + $0x488] sm:$0xff] }
 0x4d8   :  { %2518 = vmatmul.mubr.f32.gmra.mrb[128].mxu0 %v5477_v52  ;;  %v5517_v52 = vld [vmem:[#allocation2 + $0x480] sm:$0xff] }
 0x4d9   :  { %v4456_v23 = vpop.f32.mrb[80].mxu0  ;;  %2522 = vmatprep.mubr.f32.mxu0 %v5478_v25  ;;  %v5519_v25 = vld [vmem:[#allocation2 + $0x4a0] sm:$0xff] }
 0x4da   :  { %v2287_v54 = vpop.f32.mrb[81].mxu0 }
 0x4db   :  { %v4767_v27 = vpack.c.bf16 %v4456_v23, %v2287_v54  ;;  %v5518_v23 = vld [vmem:[#allocation2 + $0x4a8] sm:$0xff] }
 0x4dc   :  { %2523 = vmatmul.mubr.f32.gmra.mrb[130].mxu0 %v5479_v29  ;;  %v5520_v54 = vld [vmem:[#allocation2 + $0x4c8] sm:$0xff] }
 0x4dd   :  { %4768 = vmatpush1.bf16.msra.mxu0 %v4767_v27  ;;  %2527 = vmatprep.mubr.f32.mxu0 %v5480_v55  ;;  %v5521_v27 = vld [vmem:[#allocation2 + $0x4c0] sm:$0xff]  ;;  %v5522_v29 = vld [vmem:[#allocation2 + $0x4e8] sm:$0xff] }
 0x4de   :  { %4769 = vmatprep.subr.bf16.mxu0 %v5725_v59  ;;  %v5523_v55 = vld [vmem:[#allocation2 + $0x4e0] sm:$0xff] }
 0x4e0   :  { %2528 = vmatmul.mubr.f32.gmra.mrb[132].mxu0 %v5481_v31  ;;  %v5524_v31 = vld [vmem:[#allocation2 + $0x508] sm:$0xff] }
 0x4e1   :  { %v4459_v33 = vpop.f32.mrb[82].mxu0  ;;  %2532 = vmatprep.mubr.f32.mxu0 %v5482_v56  ;;  %v5526_v56 = vld [vmem:[#allocation2 + $0x528] sm:$0xff] }
 0x4e2   :  { %v2297_v35 = vpop.f32.mrb[83].mxu0 }
 0x4e3   :  { %v4770_v37 = vpack.c.bf16 %v4459_v33, %v2297_v35  ;;  %v5525_v33 = vld [vmem:[#allocation2 + $0x500] sm:$0xff] }
 0x4e4   :  { %2533 = vmatmul.mubr.f32.gmra.mrb[134].mxu0 %v5483_v58  ;;  %v5527_v35 = vld [vmem:[#allocation2 + $0x520] sm:$0xff] }
 0x4e5   :  { %4771 = vmatpush1.bf16.msra.mxu0 %v4770_v37  ;;  %2537 = vmatprep.mubr.f32.mxu0 %v5484_v39  ;;  %v5528_v37 = vld [vmem:[#allocation2 + $0x548] sm:$0xff]  ;;  %v5529_v58 = vld [vmem:[#allocation2 + $0x540] sm:$0xff] }
 0x4e6   :  { %4772 = vmatprep.subr.bf16.mxu0 %v5725_v59  ;;  %v5530_v39 = vld [vmem:[#allocation2 + $0x568] sm:$0xff] }
 0x4e8   :  { %2538 = vmatmul.mubr.f32.gmra.mrb[136].mxu0 %v5485_v41  ;;  %v5531_v41 = vld [vmem:[#allocation2 + $0x560] sm:$0xff] }
 0x4e9   :  { %v4462_v60 = vpop.f32.mrb[84].mxu0  ;;  %2542 = vmatprep.mubr.f32.mxu0 %v5486_v62  ;;  %v5533_v62 = vld [vmem:[#allocation2 + $0x580] sm:$0xff] }
 0x4ea   :  { %v2307_v43 = vpop.f32.mrb[85].mxu0 }
 0x4eb   :  { %v4773_v45 = vpack.c.bf16 %v4462_v60, %v2307_v43  ;;  %v5532_v60 = vld [vmem:[#allocation2 + $0x588] sm:$0xff] }
 0x4ec   :  { %2543 = vmatmul.mubr.f32.gmra.mrb[138].mxu0 %v5487_v63  ;;  %v5534_v43 = vld [vmem:[#allocation2 + $0x5a8] sm:$0xff] }
 0x4ed   :  { %4774 = vmatpush1.bf16.msra.mxu0 %v4773_v45  ;;  %2547 = vmatprep.mubr.f32.mxu0 %v5488_v0  ;;  %v5535_v45 = vld [vmem:[#allocation2 + $0x5a0] sm:$0xff]  ;;  %v5536_v63 = vld [vmem:[#allocation2 + $0x5c8] sm:$0xff] }
 0x4ee   :  { %4775 = vmatprep.subr.bf16.mxu0 %v5725_v59  ;;  %v5537_v0 = vld [vmem:[#allocation2 + $0x5c0] sm:$0xff] }
 0x4f0   :  { %2548 = vmatmul.mubr.f32.gmra.mrb[140].mxu0 %v5489_v47  ;;  %v5538_v47 = vld [vmem:[#allocation2 + $0x5e8] sm:$0xff] }
 0x4f1   :  { %2552 = vmatprep.mubr.f32.mxu0 %v5490_v2  ;;  %v5540_v2 = vld [vmem:[#allocation2 + $0x608] sm:$0xff] }
 0x4f2   :  { %v4465_v49 = vpop.f32.mrb[86].mxu0 }
 0x4f3   :  { %v2317_v3 = vpop.f32.mrb[87].mxu0 }
 0x4f4   :  { %v4776_v4 = vpack.c.bf16 %v4465_v49, %v2317_v3  ;;  %2553 = vmatmul.mubr.f32.gmra.mrb[142].mxu0 %v5491_v5  ;;  %v5539_v49 = vld [vmem:[#allocation2 + $0x5e0] sm:$0xff] }
 0x4f5   :  { %2557 = vmatprep.mubr.f32.mxu0 %v5492_v6  ;;  %v5541_v3 = vld [vmem:[#allocation2 + $0x600] sm:$0xff]  ;;  %v5544_v6 = vld [vmem:[#allocation2 + $0x648] sm:$0xff] }
 0x4f6   :  { %4777 = vmatpush1.bf16.msra.mxu0 %v4776_v4  ;;  %v5542_v4 = vld [vmem:[#allocation2 + $0x628] sm:$0xff]  ;;  %v5543_v5 = vld [vmem:[#allocation2 + $0x620] sm:$0xff] }
 0x4f7   :  { %4778 = vmatprep.subr.bf16.mxu0 %v5725_v59 }
 0x4f8   :  { %2558 = vmatmul.mubr.f32.gmra.mrb[144].mxu0 %v5493_v8  ;;  %v5545_v8 = vld [vmem:[#allocation2 + $0x640] sm:$0xff] }
 0x4f9   :  { %2562 = vmatprep.mubr.f32.mxu0 %v5494_v51  ;;  %v5547_v51 = vld [vmem:[#allocation2 + $0x660] sm:$0xff] }
 0x4fa   :  { %v4468_v10 = vpop.f32.mrb[88].mxu0 }
 0x4fb   :  { %v2327_v53 = vpop.f32.mrb[89].mxu0 }
 0x4fc   :  { %v4779_v12 = vpack.c.bf16 %v4468_v10, %v2327_v53  ;;  %2563 = vmatmul.mubr.f32.gmra.mrb[146].mxu0 %v5495_v14  ;;  %v5546_v10 = vld [vmem:[#allocation2 + $0x668] sm:$0xff] }
 0x4fd   :  { %2567 = vmatprep.mubr.f32.mxu0 %v5496_v16  ;;  %v5548_v53 = vld [vmem:[#allocation2 + $0x688] sm:$0xff]  ;;  %v5551_v16 = vld [vmem:[#allocation2 + $0x6a0] sm:$0xff] }
 0x4fe   :  { %4780 = vmatpush1.bf16.msra.mxu0 %v4779_v12  ;;  %v5549_v12 = vld [vmem:[#allocation2 + $0x680] sm:$0xff]  ;;  %v5550_v14 = vld [vmem:[#allocation2 + $0x6a8] sm:$0xff] }
 0x4ff   :  { %4781 = vmatprep.subr.bf16.mxu0 %v5725_v59 }
 0x500   :  { %2568 = vmatmul.mubr.f32.gmra.mrb[148].mxu0 %v5497_v11  ;;  %v5552_v11 = vld [vmem:[#allocation2 + $0x6c8] sm:$0xff] }
 0x501   :  { %2572 = vmatprep.mubr.f32.mxu0 %v5498_v20  ;;  %v5554_v20 = vld [vmem:[#allocation2 + $0x6e8] sm:$0xff] }
 0x502   :  { %v4471_v18 = vpop.f32.mrb[90].mxu0 }
 0x503   :  { %v2337_v22 = vpop.f32.mrb[91].mxu0 }
 0x504   :  { %v4782_v24 = vpack.c.bf16 %v4471_v18, %v2337_v22  ;;  %2573 = vmatmul.mubr.f32.gmra.mrb[150].mxu0 %v5499_v26  ;;  %v5553_v18 = vld [vmem:[#allocation2 + $0x6c0] sm:$0xff] }
 0x505   :  { %2577 = vmatprep.mubr.f32.mxu0 %v5500_v57  ;;  %v5555_v22 = vld [vmem:[#allocation2 + $0x6e0] sm:$0xff]  ;;  %v5558_v57 = vld [vmem:[#allocation2 + $0x728] sm:$0xff] }
 0x506   :  { %4783 = vmatpush1.bf16.msra.mxu0 %v4782_v24  ;;  %v5556_v24 = vld [vmem:[#allocation2 + $0x708] sm:$0xff]  ;;  %v5557_v26 = vld [vmem:[#allocation2 + $0x700] sm:$0xff] }
 0x507   :  { %4784 = vmatprep.subr.bf16.mxu0 %v5725_v59 }
 0x508   :  { %2578 = vmatmul.mubr.f32.gmra.mrb[152].mxu0 %v5501_v28  ;;  %v5559_v28 = vld [vmem:[#allocation2 + $0x720] sm:$0xff] }
 0x509   :  { %2582 = vmatprep.mubr.f32.mxu0 %v5502_v32  ;;  %v3208_v32 = vld [vmem:[%s6880_s6 + $0x8] sm:$0xff] }
 0x50a   :  { %v4474_v30 = vpop.f32.mrb[92].mxu0 }
 0x50b   :  { %v2347_v34 = vpop.f32.mrb[93].mxu0 }
 0x50c   :  { %v4785_v36 = vpack.c.bf16 %v4474_v30, %v2347_v34  ;;  %2583 = vmatmul.mubr.f32.gmra.mrb[154].mxu0 %v5503_v38  ;;  %v3207_v30 = vld [vmem:[%s6880_s6] sm:$0xff]  ;;  %v5560_v34 = vld [vmem:[#allocation2 + $0x748] sm:$0xff] }
 0x50d   :  { %2587 = vmatprep.mubr.f32.mxu0 %v5504_v40  ;;  %v5561_v38 = vld [vmem:[#allocation2 + $0x740] sm:$0xff]  ;;  %v5562_v40 = vld [vmem:[#allocation2 + $0x768] sm:$0xff] }
 0x50e   :  { %4786 = vmatpush1.bf16.msra.mxu0 %v4785_v36  ;;  %v4790_v36 = vpack.c.bf16 %v3208_v32, %v3207_v30  ;;  %v3209_v30 = vld [vmem:[%s6880_s6 + $0x10] sm:$0xff]  ;;  %v3210_v32 = vld [vmem:[%s6880_s6 + $0x18] sm:$0xff] }
 0x50f   :  { %4787 = vmatprep.subr.bf16.mxu0 %v5725_v59  ;;  %v5513_v59 = vld [vmem:[#allocation2 + $0x440] sm:$0xff] }
 0x510   :  { %2588 = vmatmul.mubr.f32.gmra.mrb[156].mxu0 %v5505_v42  ;;  %4791 = vmatprep.subr.bf16.mxu1 %v4790_v36  ;;  %v5563_v42 = vld [vmem:[#allocation2 + $0x760] sm:$0xff] }
 0x511   :  { %v4477_v44 = vpop.f32.mrb[94].mxu0  ;;  %2592 = vmatprep.mubr.f32.mxu0 %v5506_v61  ;;  %4793 = vmatpush3.bf16.msra.mxu1 %v4790_v36  ;;  %v5565_v61 = vld [vmem:[#allocation2 + $0x780] sm:$0xff]  ;;  %v5621_v36 = vld [vmem:[#allocation2 + $0x310] sm:$0xff] }
 0x512   :  { %v2357_v7 = vpop.f32.mrb[95].mxu0 }
 0x513   :  { %v4788_v9 = vpack.c.bf16 %v4477_v44, %v2357_v7  ;;  %v5564_v44 = vld [vmem:[#allocation2 + $0x788] sm:$0xff] }
 0x514   :  { %2593 = vmatmul.mubr.f32.gmra.mrb[158].mxu0 %v5507_v46  ;;  %v5566_v7 = vld [vmem:[#allocation2 + $0x7a8] sm:$0xff] }
 0x515   :  { %4789 = vmatpush1.bf16.msra.mxu0 %v4788_v9  ;;  %2597 = vmatprep.mubr.f32.mxu0 %v5508_v13  ;;  %v5567_v9 = vld [vmem:[#allocation2 + $0x7a0] sm:$0xff]  ;;  %v5568_v46 = vld [vmem:[#allocation2 + $0x7c8] sm:$0xff] }
 0x516   :  { %v5569_v13 = vld [vmem:[#allocation2 + $0x7c0] sm:$0xff] }
 0x518   :  { %2598 = vmatmul.mubr.f32.gmra.mrb[160].mxu0 %v5509_v48  ;;  %v5570_v48 = vld [vmem:[#allocation2 + $0x7e8] sm:$0xff] }
 0x519   :  { %2602 = vmatprep.mubr.f32.mxu0 %v5510_v15  ;;  %v5571_v15 = vld [vmem:[#allocation2 + $0x7e0] sm:$0xff] }
 0x51c   :  { %2603 = vmatmul.mubr.f32.gmra.mrb[162].mxu0 %v5511_v17  ;;  %v5572_v17 = vld [vmem:[#allocation2 + $0x18] sm:$0xff] }
 0x51d   :  { %2607 = vmatprep.mubr.f32.mxu0 %v5512_v50  ;;  %v5573_v50 = vld [vmem:[#allocation2 + $0x10] sm:$0xff] }
 0x520   :  { %2608 = vmatmul.mubr.f32.gmra.mrb[164].mxu0 %v5513_v59  ;;  %v5574_v59 = vld [vmem:[#allocation2 + $0x38] sm:$0xff] }
 0x521   :  { %2612 = vmatprep.mubr.f32.mxu0 %v5514_v1  ;;  %v5575_v1 = vld [vmem:[#allocation2 + $0x30] sm:$0xff] }
 0x524   :  { %2613 = vmatmul.mubr.f32.gmra.mrb[166].mxu0 %v5515_v19  ;;  %v5576_v19 = vld [vmem:[#allocation2 + $0x58] sm:$0xff] }
 0x525   :  { %2617 = vmatprep.mubr.f32.mxu0 %v5516_v21  ;;  %v5577_v21 = vld [vmem:[#allocation2 + $0x50] sm:$0xff] }
 0x528   :  { %2618 = vmatmul.mubr.f32.gmra.mrb[168].mxu0 %v5517_v52  ;;  %v5578_v52 = vld [vmem:[#allocation2 + $0x78] sm:$0xff] }
 0x529   :  { %2622 = vmatprep.mubr.f32.mxu0 %v5518_v23  ;;  %v5579_v23 = vld [vmem:[#allocation2 + $0x70] sm:$0xff] }
 0x52c   :  { %2623 = vmatmul.mubr.f32.gmra.mrb[170].mxu0 %v5519_v25  ;;  %v5580_v25 = vld [vmem:[#allocation2 + $0x98] sm:$0xff] }
 0x52d   :  { %2627 = vmatprep.mubr.f32.mxu0 %v5520_v54  ;;  %v5581_v54 = vld [vmem:[#allocation2 + $0x90] sm:$0xff] }
 0x530   :  { %2628 = vmatmul.mubr.f32.gmra.mrb[172].mxu0 %v5521_v27  ;;  %v5582_v27 = vld [vmem:[#allocation2 + $0xb8] sm:$0xff] }
 0x531   :  { %2632 = vmatprep.mubr.f32.mxu0 %v5522_v29  ;;  %v5583_v29 = vld [vmem:[#allocation2 + $0xb0] sm:$0xff] }
 0x534   :  { %2633 = vmatmul.mubr.f32.gmra.mrb[174].mxu0 %v5523_v55  ;;  %v5584_v55 = vld [vmem:[#allocation2 + $0xd8] sm:$0xff] }
 0x535   :  { %2637 = vmatprep.mubr.f32.mxu0 %v5524_v31  ;;  %v5585_v31 = vld [vmem:[#allocation2 + $0xd0] sm:$0xff] }
 0x538   :  { %2638 = vmatmul.mubr.f32.gmra.mrb[176].mxu0 %v5525_v33  ;;  %v5586_v33 = vld [vmem:[#allocation2 + $0xf8] sm:$0xff] }
 0x539   :  { %2642 = vmatprep.mubr.f32.mxu0 %v5526_v56  ;;  %v5587_v56 = vld [vmem:[#allocation2 + $0xf0] sm:$0xff] }
 0x53c   :  { %2643 = vmatmul.mubr.f32.gmra.mrb[178].mxu0 %v5527_v35  ;;  %v5588_v35 = vld [vmem:[#allocation2 + $0x118] sm:$0xff] }
 0x53d   :  { %2647 = vmatprep.mubr.f32.mxu0 %v5528_v37  ;;  %v5589_v37 = vld [vmem:[#allocation2 + $0x110] sm:$0xff] }
 0x540   :  { %2648 = vmatmul.mubr.f32.gmra.mrb[180].mxu0 %v5529_v58  ;;  %v5590_v58 = vld [vmem:[#allocation2 + $0x138] sm:$0xff] }
 0x541   :  { %2652 = vmatprep.mubr.f32.mxu0 %v5530_v39  ;;  %v5591_v39 = vld [vmem:[#allocation2 + $0x130] sm:$0xff] }
 0x544   :  { %2653 = vmatmul.mubr.f32.gmra.mrb[182].mxu0 %v5531_v41  ;;  %v5592_v41 = vld [vmem:[#allocation2 + $0x158] sm:$0xff] }
 0x545   :  { %2657 = vmatprep.mubr.f32.mxu0 %v5532_v60  ;;  %v5593_v60 = vld [vmem:[#allocation2 + $0x150] sm:$0xff] }
 0x548   :  { %2658 = vmatmul.mubr.f32.gmra.mrb[184].mxu0 %v5533_v62  ;;  %v5594_v62 = vld [vmem:[#allocation2 + $0x178] sm:$0xff] }
 0x549   :  { %2662 = vmatprep.mubr.f32.mxu0 %v5534_v43  ;;  %v5595_v43 = vld [vmem:[#allocation2 + $0x170] sm:$0xff] }
 0x54c   :  { %2663 = vmatmul.mubr.f32.gmra.mrb[186].mxu0 %v5535_v45  ;;  %v5596_v45 = vld [vmem:[#allocation2 + $0x198] sm:$0xff] }
 0x54d   :  { %2667 = vmatprep.mubr.f32.mxu0 %v5536_v63  ;;  %v5597_v63 = vld [vmem:[#allocation2 + $0x190] sm:$0xff] }
 0x550   :  { %2668 = vmatmul.mubr.f32.gmra.mrb[188].mxu0 %v5537_v0  ;;  %v5598_v0 = vld [vmem:[#allocation2 + $0x1b8] sm:$0xff] }
 0x551   :  { %2672 = vmatprep.mubr.f32.mxu0 %v5538_v47  ;;  %v5599_v47 = vld [vmem:[#allocation2 + $0x1b0] sm:$0xff] }
 0x554   :  { %2673 = vmatmul.mubr.f32.gmra.mrb[190].mxu0 %v5539_v49  ;;  %v5600_v49 = vld [vmem:[#allocation2 + $0x1d8] sm:$0xff] }
 0x555   :  { %2677 = vmatprep.mubr.f32.mxu0 %v5540_v2  ;;  %v5601_v2 = vld [vmem:[#allocation2 + $0x1d0] sm:$0xff] }
 0x558   :  { %2678 = vmatmul.mubr.f32.gmra.mrb[192].mxu0 %v5541_v3  ;;  %v5602_v3 = vld [vmem:[#allocation2 + $0x1f8] sm:$0xff] }
 0x559   :  { %2682 = vmatprep.mubr.f32.mxu0 %v5542_v4  ;;  %v5603_v4 = vld [vmem:[#allocation2 + $0x1f0] sm:$0xff] }
 0x55c   :  { %2683 = vmatmul.mubr.f32.gmra.mrb[194].mxu0 %v5543_v5  ;;  %v5604_v5 = vld [vmem:[#allocation2 + $0x218] sm:$0xff] }
 0x55d   :  { %2687 = vmatprep.mubr.f32.mxu0 %v5544_v6  ;;  %v5605_v6 = vld [vmem:[#allocation2 + $0x210] sm:$0xff] }
 0x560   :  { %2688 = vmatmul.mubr.f32.gmra.mrb[196].mxu0 %v5545_v8  ;;  %v5606_v8 = vld [vmem:[#allocation2 + $0x238] sm:$0xff] }
 0x561   :  { %2692 = vmatprep.mubr.f32.mxu0 %v5546_v10  ;;  %v5607_v10 = vld [vmem:[#allocation2 + $0x230] sm:$0xff] }
 0x564   :  { %2693 = vmatmul.mubr.f32.gmra.mrb[198].mxu0 %v5547_v51  ;;  %v5608_v51 = vld [vmem:[#allocation2 + $0x258] sm:$0xff] }
 0x565   :  { %2697 = vmatprep.mubr.f32.mxu0 %v5548_v53  ;;  %v5609_v53 = vld [vmem:[#allocation2 + $0x250] sm:$0xff] }
 0x568   :  { %2698 = vmatmul.mubr.f32.gmra.mrb[200].mxu0 %v5549_v12  ;;  %v5610_v12 = vld [vmem:[#allocation2 + $0x278] sm:$0xff] }
 0x569   :  { %2702 = vmatprep.mubr.f32.mxu0 %v5550_v14  ;;  %v5611_v14 = vld [vmem:[#allocation2 + $0x270] sm:$0xff] }
 0x56c   :  { %2703 = vmatmul.mubr.f32.gmra.mrb[202].mxu0 %v5551_v16  ;;  %v5612_v16 = vld [vmem:[#allocation2 + $0x298] sm:$0xff] }
 0x56d   :  { %2707 = vmatprep.mubr.f32.mxu0 %v5552_v11  ;;  %v5613_v11 = vld [vmem:[#allocation2 + $0x290] sm:$0xff] }
 0x570   :  { %2708 = vmatmul.mubr.f32.gmra.mrb[204].mxu0 %v5553_v18  ;;  %v5614_v18 = vld [vmem:[#allocation2 + $0x2b8] sm:$0xff] }
 0x571   :  { %2712 = vmatprep.mubr.f32.mxu0 %v5554_v20  ;;  %v5615_v20 = vld [vmem:[#allocation2 + $0x2b0] sm:$0xff] }
 0x574   :  { %2713 = vmatmul.mubr.f32.gmra.mrb[206].mxu0 %v5555_v22  ;;  %v5616_v22 = vld [vmem:[#allocation2 + $0x2d8] sm:$0xff] }
 0x575   :  { %2717 = vmatprep.mubr.f32.mxu0 %v5556_v24  ;;  %v5617_v24 = vld [vmem:[#allocation2 + $0x2d0] sm:$0xff] }
 0x578   :  { %2718 = vmatmul.mubr.f32.gmra.mrb[208].mxu0 %v5557_v26  ;;  %v5618_v26 = vld [vmem:[#allocation2 + $0x2f8] sm:$0xff] }
 0x579   :  { %2722 = vmatprep.mubr.f32.mxu0 %v5558_v57  ;;  %v5619_v57 = vld [vmem:[#allocation2 + $0x2f0] sm:$0xff] }
 0x57c   :  { %2723 = vmatmul.mubr.f32.gmra.mrb[210].mxu0 %v5559_v28  ;;  %v5620_v28 = vld [vmem:[#allocation2 + $0x318] sm:$0xff] }
 0x57d   :  { %2727 = vmatprep.mubr.f32.mxu0 %v5560_v34  ;;  %v4794_v34 = vpack.c.bf16 %v3210_v32, %v3209_v30  ;;  %v5679_v32 = vld [vmem:[#allocation2 + $0x6b0] sm:$0xff] }
 0x57f   :  { %4795 = vmatprep.subr.bf16.mxu1 %v4794_v34 }
 0x580   :  { %2728 = vmatmul.mubr.f32.gmra.mrb[212].mxu0 %v5561_v38  ;;  %v5622_v38 = vld [vmem:[#allocation2 + $0x338] sm:$0xff]  ;;  %4797 = vmatpush3.bf16.msra.mxu1 %v4794_v34 }
 0x581   :  { %2732 = vmatprep.mubr.f32.mxu0 %v5562_v40  ;;  %v5623_v40 = vld [vmem:[#allocation2 + $0x330] sm:$0xff]  ;;  %v5680_v34 = vld [vmem:[#allocation2 + $0x6d8] sm:$0xff] }
 0x584   :  { %2733 = vmatmul.mubr.f32.gmra.mrb[214].mxu0 %v5563_v42  ;;  %v5624_v42 = vld [vmem:[#allocation2 + $0x358] sm:$0xff] }
 0x585   :  { %2737 = vmatprep.mubr.f32.mxu0 %v5564_v44  ;;  %v5625_v44 = vld [vmem:[#allocation2 + $0x350] sm:$0xff] }
 0x588   :  { %2738 = vmatmul.mubr.f32.gmra.mrb[216].mxu0 %v5565_v61  ;;  %v5626_v61 = vld [vmem:[#allocation2 + $0x378] sm:$0xff] }
 0x589   :  { %2742 = vmatprep.mubr.f32.mxu0 %v5566_v7  ;;  %v5627_v7 = vld [vmem:[#allocation2 + $0x370] sm:$0xff] }
 0x58c   :  { %2743 = vmatmul.mubr.f32.gmra.mrb[218].mxu0 %v5567_v9  ;;  %v5628_v9 = vld [vmem:[#allocation2 + $0x398] sm:$0xff] }
 0x58d   :  { %2747 = vmatprep.mubr.f32.mxu0 %v5568_v46  ;;  %v5629_v46 = vld [vmem:[#allocation2 + $0x390] sm:$0xff] }
 0x590   :  { %2748 = vmatmul.mubr.f32.gmra.mrb[220].mxu0 %v5569_v13  ;;  %v5630_v13 = vld [vmem:[#allocation2 + $0x3b8] sm:$0xff] }
 0x591   :  { %2752 = vmatprep.mubr.f32.mxu0 %v5570_v48  ;;  %v5631_v48 = vld [vmem:[#allocation2 + $0x3b0] sm:$0xff] }
 0x594   :  { %2753 = vmatmul.mubr.f32.gmra.mrb[222].mxu0 %v5571_v15  ;;  %v5632_v15 = vld [vmem:[#allocation2 + $0x3d8] sm:$0xff] }
 0x595   :  { %2822 = vmatprep.mubr.f32.mxu0 %v5572_v17  ;;  %v5633_v17 = vld [vmem:[#allocation2 + $0x3d0] sm:$0xff] }
 0x598   :  { %2823 = vmatmul.mubr.f32.vlgmr.msra.gmra.mrb[96].mxu0 %v5573_v50  ;;  %v5634_v50 = vld [vmem:[#allocation2 + $0x3f8] sm:$0xff] }
 0x599   :  { %2827 = vmatprep.mubr.f32.mxu0 %v5574_v59  ;;  %v5635_v59 = vld [vmem:[#allocation2 + $0x3f0] sm:$0xff] }
 0x59c   :  { %2828 = vmatmul.mubr.f32.gmra.mrb[98].mxu0 %v5575_v1  ;;  %v5636_v1 = vld [vmem:[#allocation2 + $0x418] sm:$0xff] }
 0x59d   :  { %2832 = vmatprep.mubr.f32.mxu0 %v5576_v19  ;;  %v5637_v19 = vld [vmem:[#allocation2 + $0x410] sm:$0xff] }
 0x5a0   :  { %2833 = vmatmul.mubr.f32.gmra.mrb[100].mxu0 %v5577_v21  ;;  %v5638_v21 = vld [vmem:[#allocation2 + $0x438] sm:$0xff] }
 0x5a1   :  { %2837 = vmatprep.mubr.f32.mxu0 %v5578_v52  ;;  %v5639_v52 = vld [vmem:[#allocation2 + $0x430] sm:$0xff] }
 0x5a4   :  { %2838 = vmatmul.mubr.f32.gmra.mrb[102].mxu0 %v5579_v23  ;;  %v5640_v23 = vld [vmem:[#allocation2 + $0x458] sm:$0xff] }
 0x5a5   :  { %2842 = vmatprep.mubr.f32.mxu0 %v5580_v25  ;;  %v5641_v25 = vld [vmem:[#allocation2 + $0x450] sm:$0xff] }
 0x5a8   :  { %2843 = vmatmul.mubr.f32.gmra.mrb[104].mxu0 %v5581_v54  ;;  %v5642_v54 = vld [vmem:[#allocation2 + $0x478] sm:$0xff] }
 0x5a9   :  { %2847 = vmatprep.mubr.f32.mxu0 %v5582_v27  ;;  %v5643_v27 = vld [vmem:[#allocation2 + $0x470] sm:$0xff] }
 0x5ac   :  { %2848 = vmatmul.mubr.f32.gmra.mrb[106].mxu0 %v5583_v29  ;;  %v5644_v29 = vld [vmem:[#allocation2 + $0x498] sm:$0xff] }
 0x5ad   :  { %2852 = vmatprep.mubr.f32.mxu0 %v5584_v55  ;;  %v5645_v55 = vld [vmem:[#allocation2 + $0x490] sm:$0xff] }
 0x5b0   :  { %2853 = vmatmul.mubr.f32.gmra.mrb[108].mxu0 %v5585_v31  ;;  %v5646_v31 = vld [vmem:[#allocation2 + $0x4b8] sm:$0xff] }
 0x5b1   :  { %2857 = vmatprep.mubr.f32.mxu0 %v5586_v33  ;;  %v5647_v33 = vld [vmem:[#allocation2 + $0x4b0] sm:$0xff] }
 0x5b4   :  { %2858 = vmatmul.mubr.f32.gmra.mrb[110].mxu0 %v5587_v56  ;;  %v5648_v56 = vld [vmem:[#allocation2 + $0x4d8] sm:$0xff] }
 0x5b5   :  { %2862 = vmatprep.mubr.f32.mxu0 %v5588_v35  ;;  %v5649_v35 = vld [vmem:[#allocation2 + $0x4d0] sm:$0xff] }
 0x5b8   :  { %2863 = vmatmul.mubr.f32.gmra.mrb[112].mxu0 %v5589_v37  ;;  %v5650_v37 = vld [vmem:[#allocation2 + $0x4f8] sm:$0xff] }
 0x5b9   :  { %2867 = vmatprep.mubr.f32.mxu0 %v5590_v58  ;;  %v5651_v58 = vld [vmem:[#allocation2 + $0x4f0] sm:$0xff] }
 0x5bc   :  { %2868 = vmatmul.mubr.f32.gmra.mrb[114].mxu0 %v5591_v39  ;;  %v5652_v39 = vld [vmem:[#allocation2 + $0x518] sm:$0xff] }
 0x5bd   :  { %2872 = vmatprep.mubr.f32.mxu0 %v5592_v41  ;;  %v5653_v41 = vld [vmem:[#allocation2 + $0x510] sm:$0xff] }
 0x5c0   :  { %2873 = vmatmul.mubr.f32.gmra.mrb[116].mxu0 %v5593_v60  ;;  %v5654_v60 = vld [vmem:[#allocation2 + $0x538] sm:$0xff] }
 0x5c1   :  { %2877 = vmatprep.mubr.f32.mxu0 %v5594_v62  ;;  %v5655_v62 = vld [vmem:[#allocation2 + $0x530] sm:$0xff] }
 0x5c4   :  { %2878 = vmatmul.mubr.f32.gmra.mrb[118].mxu0 %v5595_v43  ;;  %v5656_v43 = vld [vmem:[#allocation2 + $0x558] sm:$0xff] }
 0x5c5   :  { %2882 = vmatprep.mubr.f32.mxu0 %v5596_v45  ;;  %v5657_v45 = vld [vmem:[#allocation2 + $0x550] sm:$0xff] }
 0x5c8   :  { %2883 = vmatmul.mubr.f32.gmra.mrb[120].mxu0 %v5597_v63  ;;  %v5658_v63 = vld [vmem:[#allocation2 + $0x578] sm:$0xff] }
 0x5c9   :  { %2887 = vmatprep.mubr.f32.mxu0 %v5598_v0  ;;  %v5659_v0 = vld [vmem:[#allocation2 + $0x570] sm:$0xff] }
 0x5cc   :  { %2888 = vmatmul.mubr.f32.gmra.mrb[122].mxu0 %v5599_v47  ;;  %v5660_v47 = vld [vmem:[#allocation2 + $0x598] sm:$0xff] }
 0x5cd   :  { %2892 = vmatprep.mubr.f32.mxu0 %v5600_v49  ;;  %v5661_v49 = vld [vmem:[#allocation2 + $0x590] sm:$0xff] }
 0x5d0   :  { %2893 = vmatmul.mubr.f32.gmra.mrb[124].mxu0 %v5601_v2  ;;  %v5662_v2 = vld [vmem:[#allocation2 + $0x5b8] sm:$0xff] }
 0x5d1   :  { %2897 = vmatprep.mubr.f32.mxu0 %v5602_v3  ;;  %v5663_v3 = vld [vmem:[#allocation2 + $0x5b0] sm:$0xff] }
 0x5d4   :  { %2898 = vmatmul.mubr.f32.gmra.mrb[126].mxu0 %v5603_v4  ;;  %v5664_v4 = vld [vmem:[#allocation2 + $0x5d8] sm:$0xff] }
 0x5d5   :  { %2902 = vmatprep.mubr.f32.mxu0 %v5604_v5  ;;  %v5665_v5 = vld [vmem:[#allocation2 + $0x5d0] sm:$0xff] }
 0x5d8   :  { %2903 = vmatmul.mubr.f32.gmra.mrb[128].mxu0 %v5605_v6  ;;  %v5666_v6 = vld [vmem:[#allocation2 + $0x5f8] sm:$0xff] }
 0x5d9   :  { %2907 = vmatprep.mubr.f32.mxu0 %v5606_v8  ;;  %v5667_v8 = vld [vmem:[#allocation2 + $0x5f0] sm:$0xff] }
 0x5dc   :  { %2908 = vmatmul.mubr.f32.gmra.mrb[130].mxu0 %v5607_v10  ;;  %v5668_v10 = vld [vmem:[#allocation2 + $0x618] sm:$0xff] }
 0x5dd   :  { %2912 = vmatprep.mubr.f32.mxu0 %v5608_v51  ;;  %v5669_v51 = vld [vmem:[#allocation2 + $0x610] sm:$0xff] }
 0x5e0   :  { %2913 = vmatmul.mubr.f32.gmra.mrb[132].mxu0 %v5609_v53  ;;  %v5670_v53 = vld [vmem:[#allocation2 + $0x638] sm:$0xff] }
 0x5e1   :  { %2917 = vmatprep.mubr.f32.mxu0 %v5610_v12  ;;  %v5671_v12 = vld [vmem:[#allocation2 + $0x630] sm:$0xff] }
 0x5e4   :  { %2918 = vmatmul.mubr.f32.gmra.mrb[134].mxu0 %v5611_v14  ;;  %v5672_v14 = vld [vmem:[#allocation2 + $0x658] sm:$0xff] }
 0x5e5   :  { %2922 = vmatprep.mubr.f32.mxu0 %v5612_v16  ;;  %v5673_v16 = vld [vmem:[#allocation2 + $0x650] sm:$0xff] }
 0x5e8   :  { %2923 = vmatmul.mubr.f32.gmra.mrb[136].mxu0 %v5613_v11  ;;  %v5674_v11 = vld [vmem:[#allocation2 + $0x678] sm:$0xff] }
 0x5e9   :  { %2927 = vmatprep.mubr.f32.mxu0 %v5614_v18  ;;  %v5675_v18 = vld [vmem:[#allocation2 + $0x670] sm:$0xff] }
 0x5ec   :  { %2928 = vmatmul.mubr.f32.gmra.mrb[138].mxu0 %v5615_v20  ;;  %v5676_v20 = vld [vmem:[#allocation2 + $0x698] sm:$0xff] }
 0x5ed   :  { %2932 = vmatprep.mubr.f32.mxu0 %v5616_v22  ;;  %v5677_v22 = vld [vmem:[#allocation2 + $0x690] sm:$0xff] }
 0x5f0   :  { %2933 = vmatmul.mubr.f32.gmra.mrb[140].mxu0 %v5617_v24  ;;  %v6419_v24 = vld [vmem:[%s6879_s5] ss:$0 sm:$0xff] }
 0x5f1   :  { %2937 = vmatprep.mubr.f32.mxu0 %v5618_v26  ;;  %v5678_v26 = vld [vmem:[#allocation2 + $0x6b8] sm:$0xff] }
 0x5f4   :  { %2938 = vmatmul.mubr.f32.gmra.mrb[142].mxu0 %v5619_v57 }
 0x5f5   :  { %2942 = vmatprep.mubr.f32.mxu0 %v5620_v28 }
 0x5f8   :  { %2943 = vmatmul.mubr.f32.gmra.mrb[144].mxu0 %v5621_v36 }
 0x5f9   :  { %2947 = vmatprep.mubr.f32.mxu0 %v5622_v38 }
 0x5fc   :  { %2948 = vmatmul.mubr.f32.gmra.mrb[146].mxu0 %v5623_v40 }
 0x5fd   :  { %2952 = vmatprep.mubr.f32.mxu0 %v5624_v42  ;;  %v5681_v42 = vld [vmem:[#allocation2 + $0x6d0] sm:$0xff] }
 0x600   :  { %2953 = vmatmul.mubr.f32.gmra.mrb[148].mxu0 %v5625_v44  ;;  %v5682_v44 = vld [vmem:[#allocation2 + $0x6f8] sm:$0xff] }
 0x601   :  { %2957 = vmatprep.mubr.f32.mxu0 %v5626_v61 }
 0x604   :  { %2958 = vmatmul.mubr.f32.gmra.mrb[150].mxu0 %v5627_v7 }
 0x605   :  { %2962 = vmatprep.mubr.f32.mxu0 %v5628_v9 }
 0x608   :  { %2963 = vmatmul.mubr.f32.gmra.mrb[152].mxu0 %v5629_v46  ;;  %v5683_v46 = vld [vmem:[#allocation2 + $0x6f0] sm:$0xff] }
 0x609   :  { %2967 = vmatprep.mubr.f32.mxu0 %v5630_v13  ;;  %v5684_v13 = vld [vmem:[#allocation2 + $0x718] sm:$0xff] }
 0x60c   :  { %2968 = vmatmul.mubr.f32.gmra.mrb[154].mxu0 %v5631_v48 }
 0x60d   :  { %2972 = vmatprep.mubr.f32.mxu0 %v5632_v15 }
 0x610   :  { %2973 = vmatmul.mubr.f32.gmra.mrb[156].mxu0 %v5633_v17 }
 0x611   :  { %2977 = vmatprep.mubr.f32.mxu0 %v5634_v50 }
 0x614   :  { %2978 = vmatmul.mubr.f32.gmra.mrb[158].mxu0 %v5635_v59  ;;  %v5685_v59 = vld [vmem:[#allocation2 + $0x710] sm:$0xff] }
 0x615   :  { %2982 = vmatprep.mubr.f32.mxu0 %v5636_v1  ;;  %v5686_v1 = vld [vmem:[#allocation2 + $0x738] sm:$0xff] }
 0x618   :  { %2983 = vmatmul.mubr.f32.gmra.mrb[160].mxu0 %v5637_v19 }
 0x619   :  { %2987 = vmatprep.mubr.f32.mxu0 %v5638_v21 }
 0x61c   :  { %2988 = vmatmul.mubr.f32.gmra.mrb[162].mxu0 %v5639_v52 }
 0x61d   :  { %2992 = vmatprep.mubr.f32.mxu0 %v5640_v23 }
 0x620   :  { %2993 = vmatmul.mubr.f32.gmra.mrb[164].mxu0 %v5641_v25  ;;  %v5687_v25 = vld [vmem:[#allocation2 + $0x730] sm:$0xff] }
 0x621   :  { %2997 = vmatprep.mubr.f32.mxu0 %v5642_v54  ;;  %v5688_v54 = vld [vmem:[#allocation2 + $0x758] sm:$0xff] }
 0x624   :  { %2998 = vmatmul.mubr.f32.gmra.mrb[166].mxu0 %v5643_v27 }
 0x625   :  { %3002 = vmatprep.mubr.f32.mxu0 %v5644_v29 }
 0x628   :  { %3003 = vmatmul.mubr.f32.gmra.mrb[168].mxu0 %v5645_v55 }
 0x629   :  { %3007 = vmatprep.mubr.f32.mxu0 %v5646_v31 }
 0x62c   :  { %3008 = vmatmul.mubr.f32.gmra.mrb[170].mxu0 %v5647_v33  ;;  %v5689_v33 = vld [vmem:[#allocation2 + $0x750] sm:$0xff] }
 0x62d   :  { %3012 = vmatprep.mubr.f32.mxu0 %v5648_v56  ;;  %v5690_v56 = vld [vmem:[#allocation2 + $0x778] sm:$0xff] }
 0x630   :  { %3013 = vmatmul.mubr.f32.gmra.mrb[172].mxu0 %v5649_v35 }
 0x631   :  { %3017 = vmatprep.mubr.f32.mxu0 %v5650_v37 }
 0x634   :  { %3018 = vmatmul.mubr.f32.gmra.mrb[174].mxu0 %v5651_v58 }
 0x635   :  { %3022 = vmatprep.mubr.f32.mxu0 %v5652_v39 }
 0x638   :  { %3023 = vmatmul.mubr.f32.gmra.mrb[176].mxu0 %v5653_v41  ;;  %v5691_v41 = vld [vmem:[#allocation2 + $0x770] sm:$0xff] }
 0x639   :  { %3027 = vmatprep.mubr.f32.mxu0 %v5654_v60  ;;  %v5692_v60 = vld [vmem:[#allocation2 + $0x798] sm:$0xff] }
 0x63c   :  { %3028 = vmatmul.mubr.f32.gmra.mrb[178].mxu0 %v5655_v62 }
 0x63d   :  { %3032 = vmatprep.mubr.f32.mxu0 %v5656_v43 }
 0x640   :  { %3033 = vmatmul.mubr.f32.gmra.mrb[180].mxu0 %v5657_v45 }
 0x641   :  { %3037 = vmatprep.mubr.f32.mxu0 %v5658_v63 }
 0x644   :  { %3038 = vmatmul.mubr.f32.gmra.mrb[182].mxu0 %v5659_v0  ;;  %v5693_v0 = vld [vmem:[#allocation2 + $0x790] sm:$0xff] }
 0x645   :  { %3042 = vmatprep.mubr.f32.mxu0 %v5660_v47  ;;  %v5694_v47 = vld [vmem:[#allocation2 + $0x7b8] sm:$0xff] }
 0x648   :  { %3043 = vmatmul.mubr.f32.gmra.mrb[184].mxu0 %v5661_v49 }
 0x649   :  { %3047 = vmatprep.mubr.f32.mxu0 %v5662_v2 }
 0x64c   :  { %3048 = vmatmul.mubr.f32.gmra.mrb[186].mxu0 %v5663_v3 }
 0x64d   :  { %3052 = vmatprep.mubr.f32.mxu0 %v5664_v4 }
 0x650   :  { %3053 = vmatmul.mubr.f32.gmra.mrb[188].mxu0 %v5665_v5  ;;  %v5695_v5 = vld [vmem:[#allocation2 + $0x7b0] sm:$0xff] }
 0x651   :  { %3057 = vmatprep.mubr.f32.mxu0 %v5666_v6  ;;  %v5696_v6 = vld [vmem:[#allocation2 + $0x7d8] sm:$0xff] }
 0x654   :  { %3058 = vmatmul.mubr.f32.gmra.mrb[190].mxu0 %v5667_v8 }
 0x655   :  { %3062 = vmatprep.mubr.f32.mxu0 %v5668_v10 }
 0x658   :  { %3063 = vmatmul.mubr.f32.gmra.mrb[192].mxu0 %v5669_v51 }
 0x659   :  { %3067 = vmatprep.mubr.f32.mxu0 %v5670_v53 }
 0x65c   :  { %3068 = vmatmul.mubr.f32.gmra.mrb[194].mxu0 %v5671_v12  ;;  %v5697_v12 = vld [vmem:[#allocation2 + $0x7d0] sm:$0xff] }
 0x65d   :  { %3072 = vmatprep.mubr.f32.mxu0 %v5672_v14  ;;  %v5698_v14 = vld [vmem:[#allocation2 + $0x7f8] sm:$0xff] }
 0x660   :  { %3073 = vmatmul.mubr.f32.gmra.mrb[196].mxu0 %v5673_v16 }
 0x661   :  { %3077 = vmatprep.mubr.f32.mxu0 %v5674_v11 }
 0x664   :  { %3078 = vmatmul.mubr.f32.gmra.mrb[198].mxu0 %v5675_v18 }
 0x665   :  { %3082 = vmatprep.mubr.f32.mxu0 %v5676_v20 }
 0x668   :  { %3083 = vmatmul.mubr.f32.gmra.mrb[200].mxu0 %v5677_v22  ;;  %v5699_v22 = vld [vmem:[#allocation2 + $0x7f0] sm:$0xff] }
 0x669   :  { %3087 = vmatprep.mubr.f32.mxu0 %v5678_v26 }
 0x66b   :  { %v2824_v57 = vpop.f32.mrb[96].mxu0 }
 0x66c   :  { %v4866_v28 = vadd.f32 %v6419_v24, %v2824_v57  ;;  %v2826_v30 = vpop.f32.mrb[97].mxu0  ;;  %3088 = vmatmul.mubr.f32.gmra.mrb[202].mxu0 %v5679_v32 }
 0x66d   :  { %3092 = vmatprep.mubr.f32.mxu0 %v5680_v34 }
 0x66e   :  { %5316 = vtanh.f32 %v4866_v28 }
 0x66f   :  { %v2829_v36 = vpop.f32.mrb[98].mxu0 }
 0x670   :  { %v4867_v38 = vadd.f32 %v6419_v24, %v2829_v36  ;;  %v2831_v40 = vpop.f32.mrb[99].mxu0  ;;  %3093 = vmatmul.mubr.f32.gmra.mrb[204].mxu0 %v5681_v42 }
 0x671   :  { %3097 = vmatprep.mubr.f32.mxu0 %v5682_v44 }
 0x672   :  { %5318 = vtanh.f32 %v4867_v38 }
 0x673   :  { %v2834_v61 = vpop.f32.mrb[100].mxu0 }
 0x674   :  { %v4868_v7 = vadd.f32 %v6419_v24, %v2834_v61  ;;  %v2836_v9 = vpop.f32.mrb[101].mxu0  ;;  %3098 = vmatmul.mubr.f32.gmra.mrb[206].mxu0 %v5683_v46 }
 0x675   :  { %3102 = vmatprep.mubr.f32.mxu0 %v5684_v13 }
 0x676   :  { %5320 = vtanh.f32 %v4868_v7 }
 0x677   :  { %v2839_v48 = vpop.f32.mrb[102].mxu0 }
 0x678   :  { %v5317_v15 = vpop.eup %5316  ;;  %v4869_v17 = vadd.f32 %v6419_v24, %v2839_v48  ;;  %v2841_v50 = vpop.f32.mrb[103].mxu0  ;;  %3103 = vmatmul.mubr.f32.gmra.mrb[208].mxu0 %v5685_v59 }
 0x679   :  { %4486 = vmatprep.mubr.msk.f32.mxu1 %vm106_vm0, %v5317_v15  ;;  %3107 = vmatprep.mubr.f32.mxu0 %v5686_v1 }
 0x67a   :  { %5322 = vtanh.f32 %v4869_v17 }
 0x67b   :  { %v2844_v19 = vpop.f32.mrb[104].mxu0 }
 0x67c   :  { %v5319_v21 = vpop.eup %5318  ;;  %v4870_v52 = vadd.f32 %v6419_v24, %v2844_v19  ;;  %v2846_v23 = vpop.f32.mrb[105].mxu0  ;;  %3108 = vmatmul.mubr.f32.gmra.mrb[210].mxu0 %v5687_v25 }
 0x67d   :  { %4487 = vmatmul.mubr.msk.f32.vlgmr.msra.gmra.mrb[160].mxu1 %vm106_vm0, %v5319_v21  ;;  %3112 = vmatprep.mubr.f32.mxu0 %v5688_v54 }
 0x67e   :  { %5324 = vtanh.f32 %v4870_v52 }
 0x67f   :  { %v2849_v27 = vpop.f32.mrb[106].mxu0 }
 0x680   :  { %v5321_v29 = vpop.eup %5320  ;;  %v4871_v55 = vadd.f32 %v6419_v24, %v2849_v27  ;;  %v2851_v31 = vpop.f32.mrb[107].mxu0  ;;  %3113 = vmatmul.mubr.f32.gmra.mrb[212].mxu0 %v5689_v33 }
 0x681   :  { %4489 = vmatprep.mubr.msk.f32.mxu1 %vm106_vm0, %v5321_v29  ;;  %3117 = vmatprep.mubr.f32.mxu0 %v5690_v56 }
 0x682   :  { %5326 = vtanh.f32 %v4871_v55 }
 0x683   :  { %v2854_v35 = vpop.f32.mrb[108].mxu0 }
 0x684   :  { %v5323_v37 = vpop.eup %5322  ;;  %v4872_v58 = vadd.f32 %v6419_v24, %v2854_v35  ;;  %v2856_v39 = vpop.f32.mrb[109].mxu0  ;;  %3118 = vmatmul.mubr.f32.gmra.mrb[214].mxu0 %v5691_v41 }
 0x685   :  { %4490 = vmatmul.mubr.msk.f32.gmra.mrb[162].mxu1 %vm106_vm0, %v5323_v37  ;;  %3122 = vmatprep.mubr.f32.mxu0 %v5692_v60 }
 0x686   :  { %5328 = vtanh.f32 %v4872_v58 }
 0x687   :  { %v2859_v62 = vpop.f32.mrb[110].mxu0 }
 0x688   :  { %v5325_v43 = vpop.eup %5324  ;;  %v4873_v45 = vadd.f32 %v6419_v24, %v2859_v62  ;;  %v2861_v63 = vpop.f32.mrb[111].mxu0  ;;  %3123 = vmatmul.mubr.f32.gmra.mrb[216].mxu0 %v5693_v0 }
 0x689   :  { %4492 = vmatprep.mubr.msk.f32.mxu1 %vm106_vm0, %v5325_v43  ;;  %3127 = vmatprep.mubr.f32.mxu0 %v5694_v47 }
 0x68a   :  { %5330 = vtanh.f32 %v4873_v45 }
 0x68b   :  { %v2864_v49 = vpop.f32.mrb[112].mxu0 }
 0x68c   :  { %v5327_v2 = vpop.eup %5326  ;;  %v4874_v3 = vadd.f32 %v6419_v24, %v2864_v49  ;;  %v2866_v4 = vpop.f32.mrb[113].mxu0  ;;  %3128 = vmatmul.mubr.f32.gmra.mrb[218].mxu0 %v5695_v5 }
 0x68d   :  { %4493 = vmatmul.mubr.msk.f32.gmra.mrb[164].mxu1 %vm106_vm0, %v5327_v2  ;;  %3132 = vmatprep.mubr.f32.mxu0 %v5696_v6 }
 0x68e   :  { %5332 = vtanh.f32 %v4874_v3 }
 0x68f   :  { %v2869_v8 = vpop.f32.mrb[114].mxu0 }
 0x690   :  { %v5329_v10 = vpop.eup %5328  ;;  %v4875_v51 = vadd.f32 %v6419_v24, %v2869_v8  ;;  %v2871_v53 = vpop.f32.mrb[115].mxu0  ;;  %3133 = vmatmul.mubr.f32.gmra.mrb[220].mxu0 %v5697_v12 }
 0x691   :  { %4495 = vmatprep.mubr.msk.f32.mxu1 %vm106_vm0, %v5329_v10  ;;  %3137 = vmatprep.mubr.f32.mxu0 %v5698_v14 }
 0x692   :  { %5334 = vtanh.f32 %v4875_v51 }
 0x693   :  { %v2874_v16 = vpop.f32.mrb[116].mxu0 }
 0x694   :  { %v5331_v11 = vpop.eup %5330  ;;  %v4876_v18 = vadd.f32 %v6419_v24, %v2874_v16  ;;  %v2876_v20 = vpop.f32.mrb[117].mxu0  ;;  %3138 = vmatmul.mubr.f32.gmra.mrb[222].mxu0 %v5699_v22 }
 0x695   :  { %4496 = vmatmul.mubr.msk.f32.gmra.mrb[166].mxu1 %vm106_vm0, %v5331_v11 }
 0x696   :  { %5336 = vtanh.f32 %v4876_v18 }
 0x697   :  { %v2879_v26 = vpop.f32.mrb[118].mxu0 }
 0x698   :  { %v5333_v57 = vpop.eup %5332  ;;  %v4877_v28 = vadd.f32 %v6419_v24, %v2879_v26  ;;  %v2881_v30 = vpop.f32.mrb[119].mxu0 }
 0x699   :  { %4498 = vmatprep.mubr.msk.f32.mxu1 %vm106_vm0, %v5333_v57 }
 0x69a   :  { %5338 = vtanh.f32 %v4877_v28 }
 0x69b   :  { %v2884_v32 = vpop.f32.mrb[120].mxu0 }
 0x69c   :  { %v5335_v34 = vpop.eup %5334  ;;  %v4878_v36 = vadd.f32 %v6419_v24, %v2884_v32  ;;  %v2886_v38 = vpop.f32.mrb[121].mxu0 }
 0x69d   :  { %4499 = vmatmul.mubr.msk.f32.gmra.mrb[168].mxu1 %vm106_vm0, %v5335_v34 }
 0x69e   :  { %5340 = vtanh.f32 %v4878_v36 }
 0x69f   :  { %v2889_v40 = vpop.f32.mrb[122].mxu0 }
 0x6a0   :  { %v5337_v42 = vpop.eup %5336  ;;  %v4879_v44 = vadd.f32 %v6419_v24, %v2889_v40  ;;  %v2891_v61 = vpop.f32.mrb[123].mxu0 }
 0x6a1   :  { %4501 = vmatprep.mubr.msk.f32.mxu1 %vm106_vm0, %v5337_v42 }
 0x6a2   :  { %5342 = vtanh.f32 %v4879_v44 }
 0x6a3   :  { %v2894_v7 = vpop.f32.mrb[124].mxu0 }
 0x6a4   :  { %v5339_v9 = vpop.eup %5338  ;;  %v4880_v46 = vadd.f32 %v6419_v24, %v2894_v7  ;;  %v2896_v13 = vpop.f32.mrb[125].mxu0 }
 0x6a5   :  { %4502 = vmatmul.mubr.msk.f32.gmra.mrb[170].mxu1 %vm106_vm0, %v5339_v9 }
 0x6a6   :  { %5344 = vtanh.f32 %v4880_v46 }
 0x6a7   :  { %v2899_v48 = vpop.f32.mrb[126].mxu0 }
 0x6a8   :  { %v5341_v15 = vpop.eup %5340  ;;  %v4881_v17 = vadd.f32 %v6419_v24, %v2899_v48  ;;  %v2901_v50 = vpop.f32.mrb[127].mxu0 }
 0x6a9   :  { %4504 = vmatprep.mubr.msk.f32.mxu1 %vm106_vm0, %v5341_v15 }
 0x6aa   :  { %5346 = vtanh.f32 %v4881_v17 }
 0x6ab   :  { %v2904_v59 = vpop.f32.mrb[128].mxu0 }
 0x6ac   :  { %v5343_v1 = vpop.eup %5342  ;;  %v4882_v19 = vadd.f32 %v6419_v24, %v2904_v59  ;;  %v2906_v21 = vpop.f32.mrb[129].mxu0 }
 0x6ad   :  { %4505 = vmatmul.mubr.msk.f32.gmra.mrb[172].mxu1 %vm106_vm0, %v5343_v1 }
 0x6ae   :  { %5348 = vtanh.f32 %v4882_v19 }
 0x6af   :  { %v2909_v52 = vpop.f32.mrb[130].mxu0 }
 0x6b0   :  { %v5345_v23 = vpop.eup %5344  ;;  %v4883_v25 = vadd.f32 %v6419_v24, %v2909_v52  ;;  %v2911_v54 = vpop.f32.mrb[131].mxu0 }
 0x6b1   :  { %4507 = vmatprep.mubr.msk.f32.mxu1 %vm106_vm0, %v5345_v23 }
 0x6b2   :  { %5350 = vtanh.f32 %v4883_v25 }
 0x6b3   :  { %v2914_v27 = vpop.f32.mrb[132].mxu0 }
 0x6b4   :  { %v5347_v29 = vpop.eup %5346  ;;  %v4884_v55 = vadd.f32 %v6419_v24, %v2914_v27  ;;  %v2916_v31 = vpop.f32.mrb[133].mxu0 }
 0x6b5   :  { %4508 = vmatmul.mubr.msk.f32.gmra.mrb[174].mxu1 %vm106_vm0, %v5347_v29 }
 0x6b6   :  { %5352 = vtanh.f32 %v4884_v55 }
 0x6b7   :  { %v2919_v33 = vpop.f32.mrb[134].mxu0 }
 0x6b8   :  { %v5349_v56 = vpop.eup %5348  ;;  %v4885_v35 = vadd.f32 %v6419_v24, %v2919_v33  ;;  %v2921_v37 = vpop.f32.mrb[135].mxu0 }
 0x6b9   :  { %4510 = vmatprep.mubr.msk.f32.mxu1 %vm106_vm0, %v5349_v56 }
 0x6ba   :  { %5354 = vtanh.f32 %v4885_v35 }
 0x6bb   :  { %v2924_v58 = vpop.f32.mrb[136].mxu0 }
 0x6bc   :  { %v5351_v39 = vpop.eup %5350  ;;  %v4886_v41 = vadd.f32 %v6419_v24, %v2924_v58  ;;  %v2926_v60 = vpop.f32.mrb[137].mxu0 }
 0x6bd   :  { %4511 = vmatmul.mubr.msk.f32.gmra.mrb[176].mxu1 %vm106_vm0, %v5351_v39 }
 0x6be   :  { %5356 = vtanh.f32 %v4886_v41 }
 0x6bf   :  { %v2929_v62 = vpop.f32.mrb[138].mxu0 }
 0x6c0   :  { %v5353_v43 = vpop.eup %5352  ;;  %v4887_v45 = vadd.f32 %v6419_v24, %v2929_v62  ;;  %v2931_v63 = vpop.f32.mrb[139].mxu0 }
 0x6c1   :  { %4513 = vmatprep.mubr.msk.f32.mxu1 %vm106_vm0, %v5353_v43 }
 0x6c2   :  { %5358 = vtanh.f32 %v4887_v45 }
 0x6c3   :  { %v2934_v0 = vpop.f32.mrb[140].mxu0 }
 0x6c4   :  { %v5355_v47 = vpop.eup %5354  ;;  %v4888_v49 = vadd.f32 %v6419_v24, %v2934_v0  ;;  %v2936_v2 = vpop.f32.mrb[141].mxu0 }
 0x6c5   :  { %4514 = vmatmul.mubr.msk.f32.gmra.mrb[178].mxu1 %vm106_vm0, %v5355_v47 }
 0x6c6   :  { %5360 = vtanh.f32 %v4888_v49 }
 0x6c7   :  { %v2939_v3 = vpop.f32.mrb[142].mxu0 }
 0x6c8   :  { %v5357_v4 = vpop.eup %5356  ;;  %v4889_v5 = vadd.f32 %v6419_v24, %v2939_v3  ;;  %v2941_v6 = vpop.f32.mrb[143].mxu0 }
 0x6c9   :  { %4516 = vmatprep.mubr.msk.f32.mxu1 %vm106_vm0, %v5357_v4 }
 0x6ca   :  { %5362 = vtanh.f32 %v4889_v5 }
 0x6cb   :  { %v2944_v8 = vpop.f32.mrb[144].mxu0 }
 0x6cc   :  { %v5359_v10 = vpop.eup %5358  ;;  %v4890_v51 = vadd.f32 %v6419_v24, %v2944_v8  ;;  %v2946_v53 = vpop.f32.mrb[145].mxu0 }
 0x6cd   :  { %4517 = vmatmul.mubr.msk.f32.gmra.mrb[180].mxu1 %vm106_vm0, %v5359_v10 }
 0x6ce   :  { %5364 = vtanh.f32 %v4890_v51 }
 0x6cf   :  { %v2949_v12 = vpop.f32.mrb[146].mxu0 }
 0x6d0   :  { %v5361_v14 = vpop.eup %5360  ;;  %v4891_v16 = vadd.f32 %v6419_v24, %v2949_v12  ;;  %v2951_v11 = vpop.f32.mrb[147].mxu0 }
 0x6d1   :  { %4519 = vmatprep.mubr.msk.f32.mxu1 %vm106_vm0, %v5361_v14 }
 0x6d2   :  { %5366 = vtanh.f32 %v4891_v16 }
 0x6d3   :  { %v2954_v18 = vpop.f32.mrb[148].mxu0 }
 0x6d4   :  { %v5363_v20 = vpop.eup %5362  ;;  %v4892_v22 = vadd.f32 %v6419_v24, %v2954_v18  ;;  %v2956_v26 = vpop.f32.mrb[149].mxu0 }
 0x6d5   :  { %4520 = vmatmul.mubr.msk.f32.gmra.mrb[182].mxu1 %vm106_vm0, %v5363_v20 }
 0x6d6   :  { %5368 = vtanh.f32 %v4892_v22 }
 0x6d7   :  { %v2959_v57 = vpop.f32.mrb[150].mxu0 }
 0x6d8   :  { %v5365_v28 = vpop.eup %5364  ;;  %v4893_v30 = vadd.f32 %v6419_v24, %v2959_v57  ;;  %v2961_v32 = vpop.f32.mrb[151].mxu0 }
 0x6d9   :  { %4522 = vmatprep.mubr.msk.f32.mxu1 %vm106_vm0, %v5365_v28 }
 0x6da   :  { %5370 = vtanh.f32 %v4893_v30 }
 0x6db   :  { %v2964_v34 = vpop.f32.mrb[152].mxu0 }
 0x6dc   :  { %v5367_v36 = vpop.eup %5366  ;;  %v4894_v38 = vadd.f32 %v6419_v24, %v2964_v34  ;;  %v2966_v40 = vpop.f32.mrb[153].mxu0 }
 0x6dd   :  { %4523 = vmatmul.mubr.msk.f32.gmra.mrb[184].mxu1 %vm106_vm0, %v5367_v36 }
 0x6de   :  { %5372 = vtanh.f32 %v4894_v38 }
 0x6df   :  { %v2969_v42 = vpop.f32.mrb[154].mxu0 }
 0x6e0   :  { %v5369_v44 = vpop.eup %5368  ;;  %v4895_v61 = vadd.f32 %v6419_v24, %v2969_v42  ;;  %v2971_v7 = vpop.f32.mrb[155].mxu0 }
 0x6e1   :  { %4525 = vmatprep.mubr.msk.f32.mxu1 %vm106_vm0, %v5369_v44 }
 0x6e2   :  { %5374 = vtanh.f32 %v4895_v61 }
 0x6e3   :  { %v2974_v9 = vpop.f32.mrb[156].mxu0 }
 0x6e4   :  { %v5371_v46 = vpop.eup %5370  ;;  %v4896_v13 = vadd.f32 %v6419_v24, %v2974_v9  ;;  %v2976_v48 = vpop.f32.mrb[157].mxu0 }
 0x6e5   :  { %4526 = vmatmul.mubr.msk.f32.gmra.mrb[186].mxu1 %vm106_vm0, %v5371_v46 }
 0x6e6   :  { %5376 = vtanh.f32 %v4896_v13 }
 0x6e7   :  { %v2979_v15 = vpop.f32.mrb[158].mxu0 }
 0x6e8   :  { %v5373_v17 = vpop.eup %5372  ;;  %v4897_v50 = vadd.f32 %v6419_v24, %v2979_v15  ;;  %v2981_v59 = vpop.f32.mrb[159].mxu0 }
 0x6e9   :  { %4528 = vmatprep.mubr.msk.f32.mxu1 %vm106_vm0, %v5373_v17 }
 0x6ea   :  { %5378 = vtanh.f32 %v4897_v50 }
 0x6eb   :  { %v2984_v1 = vpop.f32.mrb[160].mxu0 }
 0x6ec   :  { %v5375_v19 = vpop.eup %5374  ;;  %v4898_v21 = vadd.f32 %v6419_v24, %v2984_v1  ;;  %v2986_v52 = vpop.f32.mrb[161].mxu0 }
 0x6ed   :  { %4529 = vmatmul.mubr.msk.f32.gmra.mrb[188].mxu1 %vm106_vm0, %v5375_v19 }
 0x6ee   :  { %5380 = vtanh.f32 %v4898_v21 }
 0x6ef   :  { %v2989_v23 = vpop.f32.mrb[162].mxu0 }
 0x6f0   :  { %v5377_v25 = vpop.eup %5376  ;;  %v4899_v54 = vadd.f32 %v6419_v24, %v2989_v23  ;;  %v2991_v27 = vpop.f32.mrb[163].mxu0 }
 0x6f1   :  { %4531 = vmatprep.mubr.msk.f32.mxu1 %vm106_vm0, %v5377_v25 }
 0x6f2   :  { %5382 = vtanh.f32 %v4899_v54 }
 0x6f3   :  { %v2994_v29 = vpop.f32.mrb[164].mxu0 }
 0x6f4   :  { %v5379_v55 = vpop.eup %5378  ;;  %v4900_v31 = vadd.f32 %v6419_v24, %v2994_v29  ;;  %v2996_v33 = vpop.f32.mrb[165].mxu0 }
 0x6f5   :  { %4532 = vmatmul.mubr.msk.f32.gmra.mrb[190].mxu1 %vm106_vm0, %v5379_v55 }
 0x6f6   :  { %5384 = vtanh.f32 %v4900_v31 }
 0x6f7   :  { %v2999_v56 = vpop.f32.mrb[166].mxu0 }
 0x6f8   :  { %v5381_v35 = vpop.eup %5380  ;;  %v4901_v37 = vadd.f32 %v6419_v24, %v2999_v56  ;;  %v3001_v58 = vpop.f32.mrb[167].mxu0 }
 0x6f9   :  { %4534 = vmatprep.mubr.msk.f32.mxu1 %vm106_vm0, %v5381_v35 }
 0x6fa   :  { %5386 = vtanh.f32 %v4901_v37 }
 0x6fb   :  { %v3004_v39 = vpop.f32.mrb[168].mxu0 }
 0x6fc   :  { %v5383_v41 = vpop.eup %5382  ;;  %v4902_v60 = vadd.f32 %v6419_v24, %v3004_v39  ;;  %v3006_v62 = vpop.f32.mrb[169].mxu0 }
 0x6fd   :  { %4535 = vmatmul.mubr.msk.f32.gmra.mrb[192].mxu1 %vm106_vm0, %v5383_v41 }
 0x6fe   :  { %5388 = vtanh.f32 %v4902_v60 }
 0x6ff   :  { %v3009_v43 = vpop.f32.mrb[170].mxu0 }
 0x700   :  { %v5385_v45 = vpop.eup %5384  ;;  %v4903_v63 = vadd.f32 %v6419_v24, %v3009_v43  ;;  %v3011_v0 = vpop.f32.mrb[171].mxu0 }
 0x701   :  { %4537 = vmatprep.mubr.msk.f32.mxu1 %vm106_vm0, %v5385_v45 }
 0x702   :  { %5390 = vtanh.f32 %v4903_v63 }
 0x703   :  { %v3014_v47 = vpop.f32.mrb[172].mxu0 }
 0x704   :  { %v5387_v49 = vpop.eup %5386  ;;  %v4904_v2 = vadd.f32 %v6419_v24, %v3014_v47  ;;  %v3016_v3 = vpop.f32.mrb[173].mxu0 }
 0x705   :  { %4538 = vmatmul.mubr.msk.f32.gmra.mrb[194].mxu1 %vm106_vm0, %v5387_v49 }
 0x706   :  { %5392 = vtanh.f32 %v4904_v2 }
 0x707   :  { %v3019_v4 = vpop.f32.mrb[174].mxu0 }
 0x708   :  { %v5389_v5 = vpop.eup %5388  ;;  %v4905_v6 = vadd.f32 %v6419_v24, %v3019_v4  ;;  %v3021_v8 = vpop.f32.mrb[175].mxu0 }
 0x709   :  { %4540 = vmatprep.mubr.msk.f32.mxu1 %vm106_vm0, %v5389_v5 }
 0x70a   :  { %5394 = vtanh.f32 %v4905_v6 }
 0x70b   :  { %v3024_v10 = vpop.f32.mrb[176].mxu0 }
 0x70c   :  { %v5391_v51 = vpop.eup %5390  ;;  %v4906_v53 = vadd.f32 %v6419_v24, %v3024_v10  ;;  %v3026_v12 = vpop.f32.mrb[177].mxu0 }
 0x70d   :  { %4541 = vmatmul.mubr.msk.f32.gmra.mrb[196].mxu1 %vm106_vm0, %v5391_v51 }
 0x70e   :  { %5396 = vtanh.f32 %v4906_v53 }
 0x70f   :  { %v3029_v14 = vpop.f32.mrb[178].mxu0 }
 0x710   :  { %v5393_v16 = vpop.eup %5392  ;;  %v4907_v11 = vadd.f32 %v6419_v24, %v3029_v14  ;;  %v3031_v18 = vpop.f32.mrb[179].mxu0 }
 0x711   :  { %4543 = vmatprep.mubr.msk.f32.mxu1 %vm106_vm0, %v5393_v16  ;;  %v6535_v16 = vld [vmem:[%s6881_s7] ss:$0 sm:$0xff] }
 0x712   :  { %5398 = vtanh.f32 %v4907_v11 }
 0x713   :  { %v3034_v20 = vpop.f32.mrb[180].mxu0 }
 0x714   :  { %v5395_v22 = vpop.eup %5394  ;;  %v4908_v26 = vadd.f32 %v6419_v24, %v3034_v20  ;;  %v3036_v57 = vpop.f32.mrb[181].mxu0 }
 0x715   :  { %4544 = vmatmul.mubr.msk.f32.gmra.mrb[198].mxu1 %vm106_vm0, %v5395_v22 }
 0x716   :  { %5400 = vtanh.f32 %v4908_v26 }
 0x717   :  { %v3039_v28 = vpop.f32.mrb[182].mxu0 }
 0x718   :  { %v5397_v30 = vpop.eup %5396  ;;  %v4909_v32 = vadd.f32 %v6419_v24, %v3039_v28  ;;  %v3041_v34 = vpop.f32.mrb[183].mxu0 }
 0x719   :  { %4546 = vmatprep.mubr.msk.f32.mxu1 %vm106_vm0, %v5397_v30 }
 0x71a   :  { %5402 = vtanh.f32 %v4909_v32 }
 0x71b   :  { %v3044_v36 = vpop.f32.mrb[184].mxu0 }
 0x71c   :  { %v5399_v38 = vpop.eup %5398  ;;  %v4910_v40 = vadd.f32 %v6419_v24, %v3044_v36  ;;  %v3046_v42 = vpop.f32.mrb[185].mxu0 }
 0x71d   :  { %4547 = vmatmul.mubr.msk.f32.gmra.mrb[200].mxu1 %vm106_vm0, %v5399_v38 }
 0x71e   :  { %5404 = vtanh.f32 %v4910_v40 }
 0x71f   :  { %v3049_v44 = vpop.f32.mrb[186].mxu0 }
 0x720   :  { %v5401_v61 = vpop.eup %5400  ;;  %v4911_v7 = vadd.f32 %v6419_v24, %v3049_v44  ;;  %v3051_v9 = vpop.f32.mrb[187].mxu0 }
 0x721   :  { %4549 = vmatprep.mubr.msk.f32.mxu1 %vm106_vm0, %v5401_v61 }
 0x722   :  { %5406 = vtanh.f32 %v4911_v7 }
 0x723   :  { %v3054_v46 = vpop.f32.mrb[188].mxu0 }
 0x724   :  { %v5403_v13 = vpop.eup %5402  ;;  %v4912_v48 = vadd.f32 %v6419_v24, %v3054_v46  ;;  %v3056_v15 = vpop.f32.mrb[189].mxu0 }
 0x725   :  { %4550 = vmatmul.mubr.msk.f32.gmra.mrb[202].mxu1 %vm106_vm0, %v5403_v13 }
 0x726   :  { %5408 = vtanh.f32 %v4912_v48 }
 0x727   :  { %v3059_v17 = vpop.f32.mrb[190].mxu0 }
 0x728   :  { %v5405_v50 = vpop.eup %5404  ;;  %v4913_v59 = vadd.f32 %v6419_v24, %v3059_v17  ;;  %v3061_v1 = vpop.f32.mrb[191].mxu0 }
 0x729   :  { %4552 = vmatprep.mubr.msk.f32.mxu1 %vm106_vm0, %v5405_v50 }
 0x72a   :  { %5410 = vtanh.f32 %v4913_v59 }
 0x72b   :  { %v3064_v19 = vpop.f32.mrb[192].mxu0 }
 0x72c   :  { %v5407_v21 = vpop.eup %5406  ;;  %v4914_v52 = vadd.f32 %v6419_v24, %v3064_v19  ;;  %v3066_v23 = vpop.f32.mrb[193].mxu0 }
 0x72d   :  { %4553 = vmatmul.mubr.msk.f32.gmra.mrb[204].mxu1 %vm106_vm0, %v5407_v21 }
 0x72e   :  { %5412 = vtanh.f32 %v4914_v52 }
 0x72f   :  { %v3069_v25 = vpop.f32.mrb[194].mxu0 }
 0x730   :  { %v5409_v54 = vpop.eup %5408  ;;  %v4915_v27 = vadd.f32 %v6419_v24, %v3069_v25  ;;  %v3071_v29 = vpop.f32.mrb[195].mxu0 }
 0x731   :  { %4555 = vmatprep.mubr.msk.f32.mxu1 %vm106_vm0, %v5409_v54 }
 0x732   :  { %5414 = vtanh.f32 %v4915_v27 }
 0x733   :  { %v3074_v55 = vpop.f32.mrb[196].mxu0 }
 0x734   :  { %v5411_v31 = vpop.eup %5410  ;;  %v4916_v33 = vadd.f32 %v6419_v24, %v3074_v55  ;;  %v3076_v56 = vpop.f32.mrb[197].mxu0 }
 0x735   :  { %4556 = vmatmul.mubr.msk.f32.gmra.mrb[206].mxu1 %vm106_vm0, %v5411_v31 }
 0x736   :  { %5416 = vtanh.f32 %v4916_v33 }
 0x737   :  { %v3079_v35 = vpop.f32.mrb[198].mxu0 }
 0x738   :  { %v5413_v37 = vpop.eup %5412  ;;  %v4917_v58 = vadd.f32 %v6419_v24, %v3079_v35  ;;  %v3081_v39 = vpop.f32.mrb[199].mxu0 }
 0x739   :  { %4558 = vmatprep.mubr.msk.f32.mxu1 %vm106_vm0, %v5413_v37 }
 0x73a   :  { %5418 = vtanh.f32 %v4917_v58 }
 0x73b   :  { %v3084_v41 = vpop.f32.mrb[200].mxu0 }
 0x73c   :  { %v5415_v60 = vpop.eup %5414  ;;  %v4918_v62 = vadd.f32 %v6419_v24, %v3084_v41  ;;  %v3086_v43 = vpop.f32.mrb[201].mxu0 }
 0x73d   :  { %4559 = vmatmul.mubr.msk.f32.gmra.mrb[208].mxu1 %vm106_vm0, %v5415_v60 }
 0x73e   :  { %5420 = vtanh.f32 %v4918_v62 }
 0x73f   :  { %v3089_v45 = vpop.f32.mrb[202].mxu0 }
 0x740   :  { %v5417_v63 = vpop.eup %5416  ;;  %v4919_v0 = vadd.f32 %v6419_v24, %v3089_v45  ;;  %v3091_v47 = vpop.f32.mrb[203].mxu0 }
 0x741   :  { %4561 = vmatprep.mubr.msk.f32.mxu1 %vm106_vm0, %v5417_v63 }
 0x742   :  { %5422 = vtanh.f32 %v4919_v0 }
 0x743   :  { %v3094_v49 = vpop.f32.mrb[204].mxu0 }
 0x744   :  { %v5419_v2 = vpop.eup %5418  ;;  %v4920_v3 = vadd.f32 %v6419_v24, %v3094_v49  ;;  %v3096_v4 = vpop.f32.mrb[205].mxu0 }
 0x745   :  { %4562 = vmatmul.mubr.msk.f32.gmra.mrb[210].mxu1 %vm106_vm0, %v5419_v2 }
 0x746   :  { %5424 = vtanh.f32 %v4920_v3 }
 0x747   :  { %v3099_v5 = vpop.f32.mrb[206].mxu0 }
 0x748   :  { %v5421_v6 = vpop.eup %5420  ;;  %v4921_v8 = vadd.f32 %v6419_v24, %v3099_v5  ;;  %v3101_v10 = vpop.f32.mrb[207].mxu0 }
 0x749   :  { %4564 = vmatprep.mubr.msk.f32.mxu1 %vm106_vm0, %v5421_v6 }
 0x74a   :  { %5426 = vtanh.f32 %v4921_v8 }
 0x74b   :  { %v3104_v51 = vpop.f32.mrb[208].mxu0 }
 0x74c   :  { %v5423_v53 = vpop.eup %5422  ;;  %v4922_v12 = vadd.f32 %v6419_v24, %v3104_v51  ;;  %v3106_v14 = vpop.f32.mrb[209].mxu0 }
 0x74d   :  { %4565 = vmatmul.mubr.msk.f32.gmra.mrb[212].mxu1 %vm106_vm0, %v5423_v53 }
 0x74e   :  { %5428 = vtanh.f32 %v4922_v12 }
 0x74f   :  { %v3109_v11 = vpop.f32.mrb[210].mxu0 }
 0x750   :  { %v5425_v18 = vpop.eup %5424  ;;  %v4923_v20 = vadd.f32 %v6419_v24, %v3109_v11  ;;  %v3111_v22 = vpop.f32.mrb[211].mxu0 }
 0x751   :  { %v4488_v26 = vpop.f32.mrb[160].mxu1  ;;  %4567 = vmatprep.mubr.msk.f32.mxu1 %vm106_vm0, %v5425_v18 }
 0x752   :  { %v3482_v57 = vadd.f32 %v4488_v26, %v6535_v16  ;;  %v3476_v28 = vpop.f32.mrb[161].mxu1  ;;  %5430 = vtanh.f32 %v4923_v20 }
 0x753   :  { %v3477_v30 = vadd.f32 %v6535_v16, %v3476_v28  ;;  %v3114_v32 = vpop.f32.mrb[212].mxu0 }
 0x754   :  { %3797 = vst.msk [vmem:[%s6882_s8 + $0x8] sm:$0xff] %vm3795_vm1, %v3482_v57  ;;  %v5427_v34 = vpop.eup %5426  ;;  %v4924_v36 = vadd.f32 %v6419_v24, %v3114_v32  ;;  %v3116_v38 = vpop.f32.mrb[213].mxu0 }
 0x755   :  { %3796 = vst.msk [vmem:[%s6882_s8] sm:$0xff] %vm3795_vm1, %v3477_v30  ;;  %4568 = vmatmul.mubr.msk.f32.gmra.mrb[214].mxu1 %vm106_vm0, %v5427_v34 }
 0x756   :  { %5432 = vtanh.f32 %v4924_v36 }
 0x757   :  { %v3119_v40 = vpop.f32.mrb[214].mxu0 }
 0x758   :  { %v5429_v42 = vpop.eup %5428  ;;  %v4925_v44 = vadd.f32 %v6419_v24, %v3119_v40  ;;  %v3121_v61 = vpop.f32.mrb[215].mxu0 }
 0x759   :  { %v4491_v7 = vpop.f32.mrb[162].mxu1  ;;  %4570 = vmatprep.mubr.msk.f32.mxu1 %vm106_vm0, %v5429_v42 }
 0x75a   :  { %v3492_v9 = vadd.f32 %v4491_v7, %v6535_v16  ;;  %v3486_v46 = vpop.f32.mrb[163].mxu1  ;;  %5434 = vtanh.f32 %v4925_v44 }
 0x75b   :  { %v3487_v13 = vadd.f32 %v6535_v16, %v3486_v46  ;;  %v3124_v48 = vpop.f32.mrb[216].mxu0 }
 0x75c   :  { %3799 = vst.msk [vmem:[%s6882_s8 + $0x18] sm:$0xff] %vm3795_vm1, %v3492_v9  ;;  %v5431_v15 = vpop.eup %5430  ;;  %v4926_v17 = vadd.f32 %v6419_v24, %v3124_v48  ;;  %v3126_v50 = vpop.f32.mrb[217].mxu0 }
 0x75d   :  { %3798 = vst.msk [vmem:[%s6882_s8 + $0x10] sm:$0xff] %vm3795_vm1, %v3487_v13  ;;  %4571 = vmatmul.mubr.msk.f32.gmra.mrb[216].mxu1 %vm106_vm0, %v5431_v15 }
 0x75e   :  { %5436 = vtanh.f32 %v4926_v17 }
 0x75f   :  { %v3129_v59 = vpop.f32.mrb[218].mxu0 }
 0x760   :  { %v5433_v1 = vpop.eup %5432  ;;  %v4927_v19 = vadd.f32 %v6419_v24, %v3129_v59  ;;  %v3131_v21 = vpop.f32.mrb[219].mxu0 }
 0x761   :  { %v4494_v52 = vpop.f32.mrb[164].mxu1  ;;  %4573 = vmatprep.mubr.msk.f32.mxu1 %vm106_vm0, %v5433_v1 }
 0x762   :  { %v3502_v23 = vadd.f32 %v4494_v52, %v6535_v16  ;;  %v3496_v25 = vpop.f32.mrb[165].mxu1  ;;  %5438 = vtanh.f32 %v4927_v19 }
 0x763   :  { %v3497_v54 = vadd.f32 %v6535_v16, %v3496_v25  ;;  %v3134_v27 = vpop.f32.mrb[220].mxu0 }
 0x764   :  { %3801 = vst.msk [vmem:[%s6882_s8 + $0x28] sm:$0xff] %vm3795_vm1, %v3502_v23  ;;  %v5435_v29 = vpop.eup %5434  ;;  %v4928_v55 = vadd.f32 %v6419_v24, %v3134_v27  ;;  %v3136_v31 = vpop.f32.mrb[221].mxu0 }
 0x765   :  { %3800 = vst.msk [vmem:[%s6882_s8 + $0x20] sm:$0xff] %vm3795_vm1, %v3497_v54  ;;  %4574 = vmatmul.mubr.msk.f32.gmra.mrb[218].mxu1 %vm106_vm0, %v5435_v29 }
 0x766   :  { %5440 = vtanh.f32 %v4928_v55 }
 0x767   :  { %v3139_v33 = vpop.f32.mrb[222].mxu0 }
 0x768   :  { %v5437_v56 = vpop.eup %5436  ;;  %v4929_v35 = vadd.f32 %v6419_v24, %v3139_v33  ;;  %v3141_v37 = vpop.f32.mrb[223].mxu0 }
 0x769   :  { %v4497_v58 = vpop.f32.mrb[166].mxu1  ;;  %4576 = vmatprep.mubr.msk.f32.mxu1 %vm106_vm0, %v5437_v56 }
 0x76a   :  { %v3512_v39 = vadd.f32 %v4497_v58, %v6535_v16  ;;  %v3506_v41 = vpop.f32.mrb[167].mxu1  ;;  %5442 = vtanh.f32 %v4929_v35 }
 0x76b   :  { %v3507_v60 = vadd.f32 %v6535_v16, %v3506_v41 }
 0x76c   :  { %3803 = vst.msk [vmem:[%s6882_s8 + $0x38] sm:$0xff] %vm3795_vm1, %v3512_v39  ;;  %v5439_v62 = vpop.eup %5438 }
 0x76d   :  { %3802 = vst.msk [vmem:[%s6882_s8 + $0x30] sm:$0xff] %vm3795_vm1, %v3507_v60  ;;  %4577 = vmatmul.mubr.msk.f32.gmra.mrb[220].mxu1 %vm106_vm0, %v5439_v62 }
 0x770   :  { %v5441_v24 = vpop.eup %5440  ;;  %v4500_v43 = vpop.f32.mrb[168].mxu1 }
 0x771   :  { %v3522_v45 = vadd.f32 %v4500_v43, %v6535_v16  ;;  %v3516_v63 = vpop.f32.mrb[169].mxu1  ;;  %4579 = vmatprep.mubr.msk.f32.mxu1 %vm106_vm0, %v5441_v24 }
 0x772   :  { %v3517_v0 = vadd.f32 %v6535_v16, %v3516_v63 }
 0x773   :  { %3805 = vst.msk [vmem:[%s6882_s8 + $0x48] sm:$0xff] %vm3795_vm1, %v3522_v45 }
 0x774   :  { %v5443_v47 = vpop.eup %5442  ;;  %3804 = vst.msk [vmem:[%s6882_s8 + $0x40] sm:$0xff] %vm3795_vm1, %v3517_v0 }
 0x775   :  { %4580 = vmatmul.mubr.msk.f32.gmra.mrb[222].mxu1 %vm106_vm0, %v5443_v47 }
 0x778   :  { %v4503_v49 = vpop.f32.mrb[170].mxu1 }
 0x779   :  { %v3532_v2 = vadd.f32 %v4503_v49, %v6535_v16  ;;  %v3526_v3 = vpop.f32.mrb[171].mxu1 }
 0x77a   :  { %v3527_v4 = vadd.f32 %v6535_v16, %v3526_v3 }
 0x77b   :  { %3807 = vst.msk [vmem:[%s6882_s8 + $0x58] sm:$0xff] %vm3795_vm1, %v3532_v2 }
 0x77c   :  { %3806 = vst.msk [vmem:[%s6882_s8 + $0x50] sm:$0xff] %vm3795_vm1, %v3527_v4 }
 0x780   :  { %v4506_v5 = vpop.f32.mrb[172].mxu1 }
 0x781   :  { %v3542_v6 = vadd.f32 %v4506_v5, %v6535_v16  ;;  %v3536_v8 = vpop.f32.mrb[173].mxu1 }
 0x782   :  { %v3537_v10 = vadd.f32 %v6535_v16, %v3536_v8 }
 0x783   :  { %3809 = vst.msk [vmem:[%s6882_s8 + $0x68] sm:$0xff] %vm3795_vm1, %v3542_v6 }
 0x784   :  { %3808 = vst.msk [vmem:[%s6882_s8 + $0x60] sm:$0xff] %vm3795_vm1, %v3537_v10 }
 0x788   :  { %v4509_v51 = vpop.f32.mrb[174].mxu1 }
 0x789   :  { %v3552_v53 = vadd.f32 %v4509_v51, %v6535_v16  ;;  %v3546_v12 = vpop.f32.mrb[175].mxu1 }
 0x78a   :  { %v3547_v14 = vadd.f32 %v6535_v16, %v3546_v12 }
 0x78b   :  { %3811 = vst.msk [vmem:[%s6882_s8 + $0x78] sm:$0xff] %vm3795_vm1, %v3552_v53 }
 0x78c   :  { %3810 = vst.msk [vmem:[%s6882_s8 + $0x70] sm:$0xff] %vm3795_vm1, %v3547_v14 }
 0x790   :  { %v4512_v11 = vpop.f32.mrb[176].mxu1 }
 0x791   :  { %v3562_v18 = vadd.f32 %v4512_v11, %v6535_v16  ;;  %v3556_v20 = vpop.f32.mrb[177].mxu1 }
 0x792   :  { %v3557_v22 = vadd.f32 %v6535_v16, %v3556_v20 }
 0x793   :  { %3813 = vst.msk [vmem:[%s6882_s8 + $0x88] sm:$0xff] %vm3795_vm1, %v3562_v18 }
 0x794   :  { %3812 = vst.msk [vmem:[%s6882_s8 + $0x80] sm:$0xff] %vm3795_vm1, %v3557_v22 }
 0x798   :  { %v4515_v26 = vpop.f32.mrb[178].mxu1 }
 0x799   :  { %v3572_v57 = vadd.f32 %v4515_v26, %v6535_v16  ;;  %v3566_v28 = vpop.f32.mrb[179].mxu1 }
 0x79a   :  { %v3567_v30 = vadd.f32 %v6535_v16, %v3566_v28 }
 0x79b   :  { %3815 = vst.msk [vmem:[%s6882_s8 + $0x98] sm:$0xff] %vm3795_vm1, %v3572_v57 }
 0x79c   :  { %3814 = vst.msk [vmem:[%s6882_s8 + $0x90] sm:$0xff] %vm3795_vm1, %v3567_v30 }
 0x7a0   :  { %v4518_v32 = vpop.f32.mrb[180].mxu1 }
 0x7a1   :  { %v3582_v34 = vadd.f32 %v4518_v32, %v6535_v16  ;;  %v3576_v36 = vpop.f32.mrb[181].mxu1 }
 0x7a2   :  { %v3577_v38 = vadd.f32 %v6535_v16, %v3576_v36 }
 0x7a3   :  { %3817 = vst.msk [vmem:[%s6882_s8 + $0xa8] sm:$0xff] %vm3795_vm1, %v3582_v34 }
 0x7a4   :  { %3816 = vst.msk [vmem:[%s6882_s8 + $0xa0] sm:$0xff] %vm3795_vm1, %v3577_v38 }
 0x7a8   :  { %v4521_v40 = vpop.f32.mrb[182].mxu1 }
 0x7a9   :  { %v3592_v42 = vadd.f32 %v4521_v40, %v6535_v16  ;;  %v3586_v44 = vpop.f32.mrb[183].mxu1 }
 0x7aa   :  { %v3587_v61 = vadd.f32 %v6535_v16, %v3586_v44 }
 0x7ab   :  { %3819 = vst.msk [vmem:[%s6882_s8 + $0xb8] sm:$0xff] %vm3795_vm1, %v3592_v42 }
 0x7ac   :  { %3818 = vst.msk [vmem:[%s6882_s8 + $0xb0] sm:$0xff] %vm3795_vm1, %v3587_v61 }
 0x7b0   :  { %v4524_v7 = vpop.f32.mrb[184].mxu1 }
 0x7b1   :  { %v3602_v9 = vadd.f32 %v4524_v7, %v6535_v16  ;;  %v3596_v46 = vpop.f32.mrb[185].mxu1 }
 0x7b2   :  { %v3597_v13 = vadd.f32 %v6535_v16, %v3596_v46 }
 0x7b3   :  { %3821 = vst.msk [vmem:[%s6882_s8 + $0xc8] sm:$0xff] %vm3795_vm1, %v3602_v9 }
 0x7b4   :  { %3820 = vst.msk [vmem:[%s6882_s8 + $0xc0] sm:$0xff] %vm3795_vm1, %v3597_v13 }
 0x7b8   :  { %v4527_v48 = vpop.f32.mrb[186].mxu1 }
 0x7b9   :  { %v3612_v15 = vadd.f32 %v4527_v48, %v6535_v16  ;;  %v3606_v17 = vpop.f32.mrb[187].mxu1 }
 0x7ba   :  { %v3607_v50 = vadd.f32 %v6535_v16, %v3606_v17 }
 0x7bb   :  { %3823 = vst.msk [vmem:[%s6882_s8 + $0xd8] sm:$0xff] %vm3795_vm1, %v3612_v15 }
 0x7bc   :  { %3822 = vst.msk [vmem:[%s6882_s8 + $0xd0] sm:$0xff] %vm3795_vm1, %v3607_v50 }
 0x7c0   :  { %v4530_v59 = vpop.f32.mrb[188].mxu1 }
 0x7c1   :  { %v3622_v1 = vadd.f32 %v4530_v59, %v6535_v16  ;;  %v3616_v19 = vpop.f32.mrb[189].mxu1 }
 0x7c2   :  { %v3617_v21 = vadd.f32 %v6535_v16, %v3616_v19 }
 0x7c3   :  { %3825 = vst.msk [vmem:[%s6882_s8 + $0xe8] sm:$0xff] %vm3795_vm1, %v3622_v1 }
 0x7c4   :  { %3824 = vst.msk [vmem:[%s6882_s8 + $0xe0] sm:$0xff] %vm3795_vm1, %v3617_v21 }
 0x7c8   :  { %v4533_v52 = vpop.f32.mrb[190].mxu1 }
 0x7c9   :  { %v3632_v23 = vadd.f32 %v4533_v52, %v6535_v16  ;;  %v3626_v25 = vpop.f32.mrb[191].mxu1 }
 0x7ca   :  { %v3627_v54 = vadd.f32 %v6535_v16, %v3626_v25 }
 0x7cb   :  { %3827 = vst.msk [vmem:[%s6882_s8 + $0xf8] sm:$0xff] %vm3795_vm1, %v3632_v23 }
 0x7cc   :  { %3826 = vst.msk [vmem:[%s6882_s8 + $0xf0] sm:$0xff] %vm3795_vm1, %v3627_v54 }
 0x7d0   :  { %v4536_v27 = vpop.f32.mrb[192].mxu1 }
 0x7d1   :  { %v3642_v29 = vadd.f32 %v4536_v27, %v6535_v16  ;;  %v3636_v55 = vpop.f32.mrb[193].mxu1 }
 0x7d2   :  { %v3637_v31 = vadd.f32 %v6535_v16, %v3636_v55 }
 0x7d3   :  { %3829 = vst.msk [vmem:[%s6882_s8 + $0x108] sm:$0xff] %vm3795_vm1, %v3642_v29 }
 0x7d4   :  { %3828 = vst.msk [vmem:[%s6882_s8 + $0x100] sm:$0xff] %vm3795_vm1, %v3637_v31 }
 0x7d8   :  { %v4539_v33 = vpop.f32.mrb[194].mxu1 }
 0x7d9   :  { %v3652_v56 = vadd.f32 %v4539_v33, %v6535_v16  ;;  %v3646_v35 = vpop.f32.mrb[195].mxu1 }
 0x7da   :  { %v3647_v37 = vadd.f32 %v6535_v16, %v3646_v35 }
 0x7db   :  { %3831 = vst.msk [vmem:[%s6882_s8 + $0x118] sm:$0xff] %vm3795_vm1, %v3652_v56 }
 0x7dc   :  { %3830 = vst.msk [vmem:[%s6882_s8 + $0x110] sm:$0xff] %vm3795_vm1, %v3647_v37 }
 0x7e0   :  { %v4542_v58 = vpop.f32.mrb[196].mxu1 }
 0x7e1   :  { %v3662_v39 = vadd.f32 %v4542_v58, %v6535_v16  ;;  %v3656_v41 = vpop.f32.mrb[197].mxu1 }
 0x7e2   :  { %v3657_v60 = vadd.f32 %v6535_v16, %v3656_v41 }
 0x7e3   :  { %3833 = vst.msk [vmem:[%s6882_s8 + $0x128] sm:$0xff] %vm3795_vm1, %v3662_v39 }
 0x7e4   :  { %3832 = vst.msk [vmem:[%s6882_s8 + $0x120] sm:$0xff] %vm3795_vm1, %v3657_v60 }
 0x7e8   :  { %v4545_v62 = vpop.f32.mrb[198].mxu1 }
 0x7e9   :  { %v3672_v24 = vadd.f32 %v4545_v62, %v6535_v16  ;;  %v3666_v43 = vpop.f32.mrb[199].mxu1 }
 0x7ea   :  { %v3667_v45 = vadd.f32 %v6535_v16, %v3666_v43 }
 0x7eb   :  { %3835 = vst.msk [vmem:[%s6882_s8 + $0x138] sm:$0xff] %vm3795_vm1, %v3672_v24 }
 0x7ec   :  { %3834 = vst.msk [vmem:[%s6882_s8 + $0x130] sm:$0xff] %vm3795_vm1, %v3667_v45 }
 0x7f0   :  { %v4548_v63 = vpop.f32.mrb[200].mxu1 }
 0x7f1   :  { %v3682_v0 = vadd.f32 %v4548_v63, %v6535_v16  ;;  %v3676_v47 = vpop.f32.mrb[201].mxu1 }
 0x7f2   :  { %v3677_v49 = vadd.f32 %v6535_v16, %v3676_v47 }
 0x7f3   :  { %3837 = vst.msk [vmem:[%s6882_s8 + $0x148] sm:$0xff] %vm3795_vm1, %v3682_v0 }
 0x7f4   :  { %3836 = vst.msk [vmem:[%s6882_s8 + $0x140] sm:$0xff] %vm3795_vm1, %v3677_v49 }
 0x7f8   :  { %v4551_v2 = vpop.f32.mrb[202].mxu1 }
 0x7f9   :  { %v3692_v3 = vadd.f32 %v4551_v2, %v6535_v16  ;;  %v3686_v4 = vpop.f32.mrb[203].mxu1 }
 0x7fa   :  { %v3687_v5 = vadd.f32 %v6535_v16, %v3686_v4 }
 0x7fb   :  { %3839 = vst.msk [vmem:[%s6882_s8 + $0x158] sm:$0xff] %vm3795_vm1, %v3692_v3 }
 0x7fc   :  { %3838 = vst.msk [vmem:[%s6882_s8 + $0x150] sm:$0xff] %vm3795_vm1, %v3687_v5 }
 0x800   :  { %v4554_v6 = vpop.f32.mrb[204].mxu1 }
 0x801   :  { %v3702_v8 = vadd.f32 %v4554_v6, %v6535_v16  ;;  %v3696_v10 = vpop.f32.mrb[205].mxu1 }
 0x802   :  { %v3697_v51 = vadd.f32 %v6535_v16, %v3696_v10 }
 0x803   :  { %3841 = vst.msk [vmem:[%s6882_s8 + $0x168] sm:$0xff] %vm3795_vm1, %v3702_v8 }
 0x804   :  { %3840 = vst.msk [vmem:[%s6882_s8 + $0x160] sm:$0xff] %vm3795_vm1, %v3697_v51 }
 0x808   :  { %v4557_v53 = vpop.f32.mrb[206].mxu1 }
 0x809   :  { %v3712_v12 = vadd.f32 %v4557_v53, %v6535_v16  ;;  %v3706_v14 = vpop.f32.mrb[207].mxu1 }
 0x80a   :  { %v3707_v11 = vadd.f32 %v6535_v16, %v3706_v14 }
 0x80b   :  { %3843 = vst.msk [vmem:[%s6882_s8 + $0x178] sm:$0xff] %vm3795_vm1, %v3712_v12 }
 0x80c   :  { %3842 = vst.msk [vmem:[%s6882_s8 + $0x170] sm:$0xff] %vm3795_vm1, %v3707_v11 }
 0x810   :  { %v4560_v18 = vpop.f32.mrb[208].mxu1 }
 0x811   :  { %v3722_v20 = vadd.f32 %v4560_v18, %v6535_v16  ;;  %v3716_v22 = vpop.f32.mrb[209].mxu1 }
 0x812   :  { %v3717_v26 = vadd.f32 %v6535_v16, %v3716_v22 }
 0x813   :  { %3845 = vst.msk [vmem:[%s6882_s8 + $0x188] sm:$0xff] %vm3795_vm1, %v3722_v20 }
 0x814   :  { %3844 = vst.msk [vmem:[%s6882_s8 + $0x180] sm:$0xff] %vm3795_vm1, %v3717_v26 }
 0x818   :  { %v4563_v57 = vpop.f32.mrb[210].mxu1 }
 0x819   :  { %v3732_v28 = vadd.f32 %v4563_v57, %v6535_v16  ;;  %v3726_v30 = vpop.f32.mrb[211].mxu1 }
 0x81a   :  { %v3727_v32 = vadd.f32 %v6535_v16, %v3726_v30 }
 0x81b   :  { %3847 = vst.msk [vmem:[%s6882_s8 + $0x198] sm:$0xff] %vm3795_vm1, %v3732_v28 }
 0x81c   :  { %3846 = vst.msk [vmem:[%s6882_s8 + $0x190] sm:$0xff] %vm3795_vm1, %v3727_v32 }
 0x820   :  { %v4566_v34 = vpop.f32.mrb[212].mxu1 }
 0x821   :  { %v3742_v36 = vadd.f32 %v4566_v34, %v6535_v16  ;;  %v3736_v38 = vpop.f32.mrb[213].mxu1 }
 0x822   :  { %v3737_v40 = vadd.f32 %v6535_v16, %v3736_v38 }
 0x823   :  { %3849 = vst.msk [vmem:[%s6882_s8 + $0x1a8] sm:$0xff] %vm3795_vm1, %v3742_v36 }
 0x824   :  { %3848 = vst.msk [vmem:[%s6882_s8 + $0x1a0] sm:$0xff] %vm3795_vm1, %v3737_v40 }
 0x828   :  { %v4569_v42 = vpop.f32.mrb[214].mxu1 }
 0x829   :  { %v3752_v44 = vadd.f32 %v4569_v42, %v6535_v16  ;;  %v3746_v61 = vpop.f32.mrb[215].mxu1 }
 0x82a   :  { %v3747_v7 = vadd.f32 %v6535_v16, %v3746_v61 }
 0x82b   :  { %3851 = vst.msk [vmem:[%s6882_s8 + $0x1b8] sm:$0xff] %vm3795_vm1, %v3752_v44 }
 0x82c   :  { %3850 = vst.msk [vmem:[%s6882_s8 + $0x1b0] sm:$0xff] %vm3795_vm1, %v3747_v7 }
 0x830   :  { %v4572_v9 = vpop.f32.mrb[216].mxu1 }
 0x831   :  { %v3762_v46 = vadd.f32 %v4572_v9, %v6535_v16  ;;  %v3756_v13 = vpop.f32.mrb[217].mxu1 }
 0x832   :  { %v3757_v48 = vadd.f32 %v6535_v16, %v3756_v13 }
 0x833   :  { %3853 = vst.msk [vmem:[%s6882_s8 + $0x1c8] sm:$0xff] %vm3795_vm1, %v3762_v46 }
 0x834   :  { %3852 = vst.msk [vmem:[%s6882_s8 + $0x1c0] sm:$0xff] %vm3795_vm1, %v3757_v48 }
 0x838   :  { %v4575_v15 = vpop.f32.mrb[218].mxu1 }
 0x839   :  { %v3772_v17 = vadd.f32 %v4575_v15, %v6535_v16  ;;  %v3766_v50 = vpop.f32.mrb[219].mxu1 }
 0x83a   :  { %v3767_v59 = vadd.f32 %v6535_v16, %v3766_v50 }
 0x83b   :  { %3855 = vst.msk [vmem:[%s6882_s8 + $0x1d8] sm:$0xff] %vm3795_vm1, %v3772_v17 }
 0x83c   :  { %3854 = vst.msk [vmem:[%s6882_s8 + $0x1d0] sm:$0xff] %vm3795_vm1, %v3767_v59 }
 0x840   :  { %v4578_v1 = vpop.f32.mrb[220].mxu1 }
 0x841   :  { %v3782_v19 = vadd.f32 %v4578_v1, %v6535_v16  ;;  %v3776_v21 = vpop.f32.mrb[221].mxu1 }
 0x842   :  { %v3777_v52 = vadd.f32 %v6535_v16, %v3776_v21 }
 0x843   :  { %3857 = vst.msk [vmem:[%s6882_s8 + $0x1e8] sm:$0xff] %vm3795_vm1, %v3782_v19 }
 0x844   :  { %3856 = vst.msk [vmem:[%s6882_s8 + $0x1e0] sm:$0xff] %vm3795_vm1, %v3777_v52 }
 0x848   :  { %v4581_v23 = vpop.f32.mrb[222].mxu1 }
 0x849   :  { %v3792_v25 = vadd.f32 %v4581_v23, %v6535_v16  ;;  %v3786_v54 = vpop.f32.mrb[223].mxu1 }
 0x84a   :  { %v3787_v27 = vadd.f32 %v6535_v16, %v3786_v54 }
 0x84b   :  { %3859 = vst.msk [vmem:[%s6882_s8 + $0x1f8] sm:$0xff] %vm3795_vm1, %v3792_v25 }
 0x84c   :  { %3858 = vst.msk [vmem:[%s6882_s8 + $0x1f0] sm:$0xff] %vm3795_vm1, %v3787_v27 }
 0x84d   :  { %3864 = vsyncmov [#allocation3] }
 0x850   :  { %s3865_s1 = vpop.sfrf %3864 }
 0x851   :  { %p4065_p8 = scmp.ne.s32.totalorder %s3865_s1, 0 }
 0x853   :  { %3869 = shalt.err (%p4065_p8)  }

</bundles_post_ra>
